<compile_context>
chip_gen: v6e
topology: v6e:2x2x1
jax: 0.10.0
libtpu: 0.0.40
codegen_flags: <defaults>
</compile_context>

<pallas_src>
import functools
import math

import numpy as np
import jax
import jax.numpy as jnp
from jax import lax
from jax.experimental import pallas as pl
from jax.experimental.pallas import tpu as pltpu


# ----------------------------- tiling helpers ------------------------------

def _row_tile_and_pad(R, target=256):
    """16-aligned row tile (<= target) and the padded row count."""
    tile = min(target, ((R + 15) // 16) * 16)
    tile = max(16, (tile // 16) * 16)
    Rp = ((R + tile - 1) // tile) * tile
    return tile, Rp


def _pad_rows(x, Rp):
    R = x.shape[0]
    return x if Rp == R else jnp.pad(x, ((0, Rp - R), (0, 0)))


# ----------------------------- Pallas kernels ------------------------------

def _ln_qkv_kernel(x_ref, g_ref, b_ref, wqkv_ref, bqkv_ref, o_ref, *, eps):
    x = x_ref[...]                                            # (TR, C) f32
    mean = jnp.mean(x, axis=-1, keepdims=True)
    var = jnp.mean((x - mean) ** 2, axis=-1, keepdims=True)
    ln = (x - mean) * lax.rsqrt(var + eps) * g_ref[...] + b_ref[...]
    qkv = jnp.dot(ln.astype(jnp.bfloat16), wqkv_ref[...],
                  preferred_element_type=jnp.float32) + bqkv_ref[...]
    o_ref[...] = qkv.astype(o_ref.dtype)                      # bf16 out


def ln_qkv(x2d, params, *, eps):
    R, C = x2d.shape
    C3 = 3 * C
    tile, Rp = _row_tile_and_pad(R)
    xp = _pad_rows(x2d, Rp)
    out = pl.pallas_call(
        functools.partial(_ln_qkv_kernel, eps=eps),
        out_shape=jax.ShapeDtypeStruct((Rp, C3), jnp.bfloat16),
        grid=(Rp // tile,),
        in_specs=[
            pl.BlockSpec((tile, C), lambda i: (i, 0)),
            pl.BlockSpec((1, C), lambda i: (0, 0)),
            pl.BlockSpec((1, C), lambda i: (0, 0)),
            pl.BlockSpec((C, C3), lambda i: (0, 0)),
            pl.BlockSpec((1, C3), lambda i: (0, 0)),
        ],
        out_specs=pl.BlockSpec((tile, C3), lambda i: (i, 0)),
        compiler_params=pltpu.CompilerParams(dimension_semantics=("parallel",)),
    )(xp, params["ln_before_g"], params["ln_before_b"],
      params["wqkv"], params["bqkv"])
    return out[:R] if Rp != R else out


def _window_attn_kernel(*refs, nW_tile, num_heads, scale, use_mask):
    if use_mask:
        q_ref, k_ref, v_ref, bias_ref, mask_ref, o_ref = refs
    else:
        q_ref, k_ref, v_ref, bias_ref, o_ref = refs
        mask_ref = None
    q = q_ref[...].astype(jnp.bfloat16)                       # (G, N, hd)
    k = k_ref[...].astype(jnp.bfloat16)
    v = v_ref[...].astype(jnp.bfloat16)
    G, N, _ = q_ref.shape
    # heads-batched scores: (G, N, hd) x (G, N, hd) contracting hd -> (G, N, N)
    s = lax.dot_general(q, k, (((2,), (2,)), ((0,), (0,))),
                        preferred_element_type=jnp.float32)
    s = s.reshape(nW_tile, num_heads, N, N) * scale           # split (win, head)
    s = s + bias_ref[...][None]                               # (1, nH, N, N)
    if use_mask:
        s = s + mask_ref[...][:, None]                        # (nW, 1, N, N)
    s = s - jnp.max(s, axis=-1, keepdims=True)
    p = jnp.exp(s)
    p = p * pl.reciprocal(jnp.sum(p, axis=-1, keepdims=True), approx=True)
    p = p.reshape(G, N, N).astype(jnp.bfloat16)
    ctx = lax.dot_general(p, v, (((2,), (1,)), ((0,), (0,))),
                          preferred_element_type=jnp.float32)  # (G, N, hd)
    o_ref[...] = ctx.astype(o_ref.dtype)                       # bf16 out


def window_attention(q, k, v, rel_bias, mask, *, batch, nW_img, num_heads,
                     head_dim):
    total, N, hd = q.shape
    G = nW_img * num_heads                                    # rows per grid step
    assert total == batch * G
    use_mask = mask is not None
    kern = functools.partial(_window_attn_kernel, nW_tile=nW_img,
                             num_heads=num_heads,
                             scale=1.0 / math.sqrt(head_dim), use_mask=use_mask)
    in_specs = [
        pl.BlockSpec((G, N, hd), lambda b: (b, 0, 0)),
        pl.BlockSpec((G, N, hd), lambda b: (b, 0, 0)),
        pl.BlockSpec((G, N, hd), lambda b: (b, 0, 0)),
        pl.BlockSpec((num_heads, N, N), lambda b: (0, 0, 0)),
    ]
    args = [q, k, v, rel_bias]
    if use_mask:
        in_specs.append(pl.BlockSpec((nW_img, N, N), lambda b: (0, 0, 0)))
        args.append(mask)
    return pl.pallas_call(
        kern,
        out_shape=jax.ShapeDtypeStruct((total, N, hd), jnp.bfloat16),
        grid=(batch,),
        in_specs=in_specs,
        out_specs=pl.BlockSpec((G, N, hd), lambda b: (b, 0, 0)),
        compiler_params=pltpu.CompilerParams(dimension_semantics=("parallel",)),
    )(*args)


def _erf(x):
    # Abramowitz & Stegun 7.1.26 (|err| <= 1.5e-7), exp/mul only (f32 VPU+EUP).
    a1, a2, a3, a4, a5 = 0.254829592, -0.284496736, 1.421413741, -1.453152027, 1.061405429
    p = 0.3275911
    s = jnp.where(x >= 0.0, 1.0, -1.0)
    ax = jnp.abs(x)
    t = 1.0 / (1.0 + p * ax)
    y = 1.0 - ((((a5 * t + a4) * t + a3) * t + a2) * t + a1) * t * jnp.exp(-ax * ax)
    return s * y


def _gelu_exact(x):
    return 0.5 * x * (1.0 + _erf(x * 0.7071067811865476))


def _out_ln_mlp_kernel(short_ref, ctx_ref, wo_ref, bo_ref, g_ref, b_ref,
                       w1_ref, b1_ref, w2_ref, b2_ref, o_ref, *, eps):
    # attention output projection (hoisted out of the window loop)
    attn = jnp.dot(ctx_ref[...].astype(jnp.bfloat16), wo_ref[...],
                   preferred_element_type=jnp.float32) + bo_ref[...]
    h = short_ref[...] + attn                                 # first residual
    mean = jnp.mean(h, axis=-1, keepdims=True)
    var = jnp.mean((h - mean) ** 2, axis=-1, keepdims=True)
    ln = (h - mean) * lax.rsqrt(var + eps) * g_ref[...] + b_ref[...]
    inter = jnp.dot(ln.astype(jnp.bfloat16), w1_ref[...],
                    preferred_element_type=jnp.float32) + b1_ref[...]
    inter = _gelu_exact(inter)
    out = jnp.dot(inter.astype(jnp.bfloat16), w2_ref[...],
                  preferred_element_type=jnp.float32) + b2_ref[...]
    o_ref[...] = h + out                                      # second residual


def out_ln_mlp(shortcut2d, ctx2d, params, *, eps):
    R, C = shortcut2d.shape
    Hm = params["w1"].shape[1]
    tile, Rp = _row_tile_and_pad(R)
    sp = _pad_rows(shortcut2d, Rp)
    cp = _pad_rows(ctx2d, Rp)
    # TODO(synk): at full Swin dims on v7x (64 MiB VMEM), tile Hm with a
    # reduction grid axis + accumulator instead of keeping w1/w2 fully resident.
    out = pl.pallas_call(
        functools.partial(_out_ln_mlp_kernel, eps=eps),
        out_shape=jax.ShapeDtypeStruct((Rp, C), jnp.float32),
        grid=(Rp // tile,),
        in_specs=[
            pl.BlockSpec((tile, C), lambda i: (i, 0)),
            pl.BlockSpec((tile, C), lambda i: (i, 0)),
            pl.BlockSpec((C, C), lambda i: (0, 0)),
            pl.BlockSpec((1, C), lambda i: (0, 0)),
            pl.BlockSpec((1, C), lambda i: (0, 0)),
            pl.BlockSpec((1, C), lambda i: (0, 0)),
            pl.BlockSpec((C, Hm), lambda i: (0, 0)),
            pl.BlockSpec((1, Hm), lambda i: (0, 0)),
            pl.BlockSpec((Hm, C), lambda i: (0, 0)),
            pl.BlockSpec((1, C), lambda i: (0, 0)),
        ],
        out_specs=pl.BlockSpec((tile, C), lambda i: (i, 0)),
        compiler_params=pltpu.CompilerParams(dimension_semantics=("parallel",)),
    )(sp, cp, params["wo"], params["bo"],
      params["ln_after_g"], params["ln_after_b"],
      params["w1"], params["b1"], params["w2"], params["b2"])
    return out[:R] if Rp != R else out


# -------------------------------- JAX glue ---------------------------------

def get_attn_mask(hp, wp, ws, shift):
    if shift <= 0:
        return None
    img = np.zeros((hp, wp), dtype=np.float32)
    slices = (slice(0, -ws), slice(-ws, -shift), slice(-shift, None))
    cnt = 0
    for hs in slices:
        for wsl in slices:
            img[hs, wsl] = cnt
            cnt += 1
    win = img.reshape(hp // ws, ws, wp // ws, ws).transpose(0, 2, 1, 3).reshape(-1, ws * ws)
    diff = win[:, None, :] - win[:, :, None]
    mask = np.where(diff != 0, -100.0, 0.0).astype(np.float32)
    return jnp.asarray(mask)                                  # (nW_img, N, N)


def relative_position_bias(table, window_size, num_heads):
    ws = window_size
    coords = np.stack(np.meshgrid(np.arange(ws), np.arange(ws), indexing="ij"))
    cf = coords.reshape(2, -1)
    rel = (cf[:, :, None] - cf[:, None, :]).transpose(1, 2, 0)
    rel[:, :, 0] += ws - 1
    rel[:, :, 1] += ws - 1
    rel[:, :, 0] *= 2 * ws - 1
    idx = rel.sum(-1)
    N = ws * ws
    bias = table[jnp.asarray(idx.reshape(-1))]                # (N*N, nH)
    return bias.reshape(N, N, num_heads).transpose(2, 0, 1)   # (nH, N, N)


def init_params(key, dim, num_heads, window_size, mlp_ratio=4.0):
    hid = int(mlp_ratio * dim)
    ks = jax.random.split(key, 14)

    def w(k, shape, scale=0.02):
        return (scale * jax.random.normal(k, shape)).astype(jnp.float32)

    return dict(
        ln_before_g=(1.0 + 0.02 * jax.random.normal(ks[0], (1, dim))).astype(jnp.float32),
        ln_before_b=w(ks[1], (1, dim)),
        wqkv=w(ks[2], (dim, 3 * dim)).astype(jnp.bfloat16),   # bf16 matmul operands
        bqkv=w(ks[3], (1, 3 * dim)),
        wo=w(ks[4], (dim, dim)).astype(jnp.bfloat16),
        bo=w(ks[5], (1, dim)),
        rel_bias_table=w(ks[6], ((2 * window_size - 1) ** 2, num_heads)),
        ln_after_g=(1.0 + 0.02 * jax.random.normal(ks[7], (1, dim))).astype(jnp.float32),
        ln_after_b=w(ks[8], (1, dim)),
        w1=w(ks[9], (dim, hid)).astype(jnp.bfloat16),
        b1=w(ks[10], (1, hid)),
        w2=w(ks[11], (hid, dim)).astype(jnp.bfloat16),
        b2=w(ks[12], (1, dim)),
    )


def tt_swin_layer_forward(params, hidden_states, input_dimensions, *,
                          window_size, shift_size, num_heads, eps=1e-5,
                          always_partition=False):
    # hidden_states: (B, H*W, C) float32
    height, width = input_dimensions
    if not always_partition:
        if min(input_dimensions) <= window_size:              # set_shift_and_window_size
            shift_size = 0
            window_size = min(input_dimensions)
    B, L, C = hidden_states.shape
    head_dim = C // num_heads
    shortcut2d = hidden_states.reshape(B * L, C)

    # fused layernorm_before + QKV projection (Pallas, row-tiled, bf16 output)
    qkv2d = ln_qkv(shortcut2d, params, eps=eps)               # (B*L, 3C) bf16

    # maybe_pad + cyclic shift (XLA glue on the small bf16 qkv tensor)
    x = qkv2d.reshape(B, height, width, 3 * C)
    pad_r = (window_size - width % window_size) % window_size
    pad_b = (window_size - height % window_size) % window_size
    if pad_r or pad_b:
        x = jnp.pad(x, ((0, 0), (0, pad_b), (0, pad_r), (0, 0)))
    hp, wp = height + pad_b, width + pad_r
    if shift_size > 0:
        x = jnp.roll(x, (-shift_size, -shift_size), axis=(1, 2))

    ws = window_size
    nWh, nWw = hp // ws, wp // ws
    nW_img = nWh * nWw
    N = ws * ws

    # window partition + head split + q/k/v split in a single XLA transpose
    xw = x.reshape(B, nWh, ws, nWw, ws, 3, num_heads, head_dim)
    xw = xw.transpose(5, 0, 1, 3, 6, 2, 4, 7).reshape(
        3, B * nW_img * num_heads, N, head_dim)
    q, k, v = xw[0], xw[1], xw[2]

    rel_bias = relative_position_bias(params["rel_bias_table"], ws, num_heads)
    mask = get_attn_mask(hp, wp, ws, shift_size)              # (nW_img, N, N) or None

    # windowed MHSA (Pallas): all windows of one image * all heads per grid step
    ctx = window_attention(q, k, v, rel_bias, mask, batch=B, nW_img=nW_img,
                           num_heads=num_heads, head_dim=head_dim)  # bf16

    # window reverse + head merge (single XLA transpose), un-shift, un-pad
    ctx = ctx.reshape(B, nWh, nWw, num_heads, ws, ws, head_dim)
    ctx = ctx.transpose(0, 1, 4, 2, 5, 3, 6).reshape(B, hp, wp, C)
    if shift_size > 0:
        ctx = jnp.roll(ctx, (shift_size, shift_size), axis=(1, 2))
    if pad_r or pad_b:
        ctx = ctx[:, :height, :width, :]
    ctx2d = ctx.reshape(B * L, C)

    # fused out-proj + residual + layernorm_after + MLP(GELU) + residual
    out2d = out_ln_mlp(shortcut2d, ctx2d, params, eps=eps)
    # TODO(synk): head_mask / output_attentions branches of the torch module
    # are not implemented.
    return out2d.reshape(B, L, C)


# ---------------------------------- main ------------------------------------

if __name__ == "__main__":
    dim = 32
    num_heads = 4
    window_size = 4
    shift_size = 2
    B, H, W = 2, 8, 8

    key = jax.random.PRNGKey(0)
    kx, kp = jax.random.split(key)
    params = init_params(kp, dim, num_heads, window_size)
    hidden_states = jax.random.normal(kx, (B, H * W, dim), jnp.float32)

    fwd = jax.jit(lambda p, x: tt_swin_layer_forward(
        p, x, (H, W), window_size=window_size, shift_size=shift_size,
        num_heads=num_heads))
    out = fwd(params, hidden_states)
    out = jax.block_until_ready(out)
    assert out.shape == (B, H * W, dim)
    assert bool(jnp.all(jnp.isfinite(out)))
    print("KERNEL_OK")
</pallas_src>

<mosaic_0001>
module attributes {stable_mosaic.version = 11 : i64} {
  func.func @_ln_qkv_kernel(%arg0: i32, %arg1: memref<128x32xf32, #tpu.memory_space<vmem>>, %arg2: memref<1x32xf32, #tpu.memory_space<vmem>>, %arg3: memref<1x32xf32, #tpu.memory_space<vmem>>, %arg4: memref<32x96xbf16, #tpu.memory_space<vmem>>, %arg5: memref<1x96xf32, #tpu.memory_space<vmem>>, %arg6: memref<128x96xbf16, #tpu.memory_space<vmem>>) attributes {dimension_semantics = [#tpu.dimension_semantics<parallel>], iteration_bounds = array<i64: 1>, scalar_prefetch = 0 : i64, scratch_operands = 0 : i64, tpu.core_type = #tpu.core_type<tc>, window_params = [{transform_indices = @transform_0, window_bounds = array<i64: 128, 32>}, {pipeline_mode = #tpu.pipeline_mode<synchronous>, transform_indices = @transform_1, window_bounds = array<i64: 1, 32>}, {pipeline_mode = #tpu.pipeline_mode<synchronous>, transform_indices = @transform_2, window_bounds = array<i64: 1, 32>}, {pipeline_mode = #tpu.pipeline_mode<synchronous>, transform_indices = @transform_3, window_bounds = array<i64: 32, 96>}, {pipeline_mode = #tpu.pipeline_mode<synchronous>, transform_indices = @transform_4, window_bounds = array<i64: 1, 96>}, {transform_indices = @transform_5, window_bounds = array<i64: 128, 96>}]} {
    %c0 = arith.constant 0 : index
    %c0_0 = arith.constant 0 : index
    %0 = vector.load %arg1[%c0, %c0_0] : memref<128x32xf32, #tpu.memory_space<vmem>>, vector<128x32xf32>
    %cst = arith.constant dense<0.000000e+00> : vector<128xf32>
    %1 = vector.multi_reduction <add>, %0, %cst [1] : vector<128x32xf32> to vector<128xf32>
    %2 = vector.shape_cast %1 : vector<128xf32> to vector<128x1xf32>
    %cst_1 = arith.constant 3.200000e+01 : f32
    %3 = vector.broadcast %cst_1 : f32 to vector<128x1xf32>
    %4 = arith.divf %2, %3 : vector<128x1xf32>
    %5 = vector.broadcast %4 : vector<128x1xf32> to vector<128x32xf32>
    %6 = arith.subf %0, %5 : vector<128x32xf32>
    %7 = arith.mulf %6, %6 : vector<128x32xf32>
    %cst_2 = arith.constant dense<0.000000e+00> : vector<128xf32>
    %8 = vector.multi_reduction <add>, %7, %cst_2 [1] : vector<128x32xf32> to vector<128xf32>
    %9 = vector.shape_cast %8 : vector<128xf32> to vector<128x1xf32>
    %cst_3 = arith.constant 3.200000e+01 : f32
    %10 = vector.broadcast %cst_3 : f32 to vector<128x1xf32>
    %11 = arith.divf %9, %10 : vector<128x1xf32>
    %12 = vector.broadcast %4 : vector<128x1xf32> to vector<128x32xf32>
    %13 = arith.subf %0, %12 : vector<128x32xf32>
    %cst_4 = arith.constant 9.99999974E-6 : f32
    %14 = vector.broadcast %cst_4 : f32 to vector<128x1xf32>
    %15 = arith.addf %11, %14 : vector<128x1xf32>
    %16 = math.rsqrt %15 : vector<128x1xf32>
    %17 = vector.broadcast %16 : vector<128x1xf32> to vector<128x32xf32>
    %18 = arith.mulf %13, %17 : vector<128x32xf32>
    %c0_5 = arith.constant 0 : index
    %c0_6 = arith.constant 0 : index
    %19 = vector.load %arg2[%c0_5, %c0_6] : memref<1x32xf32, #tpu.memory_space<vmem>>, vector<1x32xf32>
    %20 = vector.broadcast %19 : vector<1x32xf32> to vector<128x32xf32>
    %21 = arith.mulf %18, %20 : vector<128x32xf32>
    %c0_7 = arith.constant 0 : index
    %c0_8 = arith.constant 0 : index
    %22 = vector.load %arg3[%c0_7, %c0_8] : memref<1x32xf32, #tpu.memory_space<vmem>>, vector<1x32xf32>
    %23 = vector.broadcast %22 : vector<1x32xf32> to vector<128x32xf32>
    %24 = arith.addf %21, %23 : vector<128x32xf32>
    %25 = arith.truncf %24 : vector<128x32xf32> to vector<128x32xbf16>
    %c0_9 = arith.constant 0 : index
    %c0_10 = arith.constant 0 : index
    %26 = vector.load %arg4[%c0_9, %c0_10] : memref<32x96xbf16, #tpu.memory_space<vmem>>, vector<32x96xbf16>
    %cst_11 = arith.constant dense<0.000000e+00> : vector<128x96xf32>
    %27 = tpu.matmul %25, %26, %cst_11 {dimension_numbers = #tpu.dot_dimension_numbers<[1], [0], [0], [1], [0, 0, 1, 1], [], []>} : vector<128x32xbf16>, vector<32x96xbf16>, vector<128x96xf32> -> vector<128x96xf32>
    %c0_12 = arith.constant 0 : index
    %c0_13 = arith.constant 0 : index
    %28 = vector.load %arg5[%c0_12, %c0_13] : memref<1x96xf32, #tpu.memory_space<vmem>>, vector<1x96xf32>
    %29 = vector.broadcast %28 : vector<1x96xf32> to vector<128x96xf32>
    %30 = arith.addf %27, %29 : vector<128x96xf32>
    %31 = arith.truncf %30 : vector<128x96xf32> to vector<128x96xbf16>
    %c0_14 = arith.constant 0 : index
    %c0_15 = arith.constant 0 : index
    %32 = vector.load %arg6[%c0_14, %c0_15] : memref<128x96xbf16, #tpu.memory_space<vmem>>, vector<128x96xbf16>
    tpu.vector_store %arg6[%c0_14, %c0_15], %31 {strides = array<i32>} : memref<128x96xbf16, #tpu.memory_space<vmem>>, vector<128x96xbf16>,
    return
  }
  func.func @transform_0(%arg0: i32) -> (i32, i32) {
    %c0_i32 = arith.constant 0 : i32
    %c0_i32_0 = arith.constant 0 : i32
    return %arg0, %c0_i32 : i32, i32
  }
  func.func @transform_1(%arg0: i32) -> (i32, i32) {
    %c0_i32 = arith.constant 0 : i32
    %c0_i32_0 = arith.constant 0 : i32
    %c0_i32_1 = arith.constant 0 : i32
    return %c0_i32, %c0_i32_0 : i32, i32
  }
  func.func @transform_2(%arg0: i32) -> (i32, i32) {
    %c0_i32 = arith.constant 0 : i32
    %c0_i32_0 = arith.constant 0 : i32
    %c0_i32_1 = arith.constant 0 : i32
    return %c0_i32, %c0_i32_0 : i32, i32
  }
  func.func @transform_3(%arg0: i32) -> (i32, i32) {
    %c0_i32 = arith.constant 0 : i32
    %c0_i32_0 = arith.constant 0 : i32
    %c0_i32_1 = arith.constant 0 : i32
    return %c0_i32, %c0_i32_0 : i32, i32
  }
  func.func @transform_4(%arg0: i32) -> (i32, i32) {
    %c0_i32 = arith.constant 0 : i32
    %c0_i32_0 = arith.constant 0 : i32
    %c0_i32_1 = arith.constant 0 : i32
    return %c0_i32, %c0_i32_0 : i32, i32
  }
  func.func @transform_5(%arg0: i32) -> (i32, i32) {
    %c0_i32 = arith.constant 0 : i32
    %c0_i32_0 = arith.constant 0 : i32
    return %arg0, %c0_i32 : i32, i32
  }
}

module attributes {stable_mosaic.version = 11 : i64} {
  func.func @_window_attn_kernel(%arg0: i32, %arg1: memref<16x16x8xbf16, #tpu.memory_space<vmem>>, %arg2: memref<16x16x8xbf16, #tpu.memory_space<vmem>>, %arg3: memref<16x16x8xbf16, #tpu.memory_space<vmem>>, %arg4: memref<4x16x16xf32, #tpu.memory_space<vmem>>, %arg5: memref<4x16x16xf32, #tpu.memory_space<vmem>>, %arg6: memref<16x16x8xbf16, #tpu.memory_space<vmem>>) attributes {dimension_semantics = [#tpu.dimension_semantics<parallel>], iteration_bounds = array<i64: 2>, scalar_prefetch = 0 : i64, scratch_operands = 0 : i64, tpu.core_type = #tpu.core_type<tc>, window_params = [{transform_indices = @transform_0, window_bounds = array<i64: 16, 16, 8>}, {transform_indices = @transform_1, window_bounds = array<i64: 16, 16, 8>}, {transform_indices = @transform_2, window_bounds = array<i64: 16, 16, 8>}, {pipeline_mode = #tpu.pipeline_mode<synchronous>, transform_indices = @transform_3, window_bounds = array<i64: 4, 16, 16>}, {pipeline_mode = #tpu.pipeline_mode<synchronous>, transform_indices = @transform_4, window_bounds = array<i64: 4, 16, 16>}, {transform_indices = @transform_5, window_bounds = array<i64: 16, 16, 8>}]} {
    %c0 = arith.constant 0 : index
    %c0_0 = arith.constant 0 : index
    %c0_1 = arith.constant 0 : index
    %0 = vector.load %arg1[%c0, %c0_0, %c0_1] : memref<16x16x8xbf16, #tpu.memory_space<vmem>>, vector<16x16x8xbf16>
    %c0_2 = arith.constant 0 : index
    %c0_3 = arith.constant 0 : index
    %c0_4 = arith.constant 0 : index
    %1 = vector.load %arg2[%c0_2, %c0_3, %c0_4] : memref<16x16x8xbf16, #tpu.memory_space<vmem>>, vector<16x16x8xbf16>
    %c0_5 = arith.constant 0 : index
    %c0_6 = arith.constant 0 : index
    %c0_7 = arith.constant 0 : index
    %2 = vector.load %arg3[%c0_5, %c0_6, %c0_7] : memref<16x16x8xbf16, #tpu.memory_space<vmem>>, vector<16x16x8xbf16>
    %cst = arith.constant dense<0.000000e+00> : vector<16x16x16xf32>
    %3 = tpu.matmul %0, %1, %cst {dimension_numbers = #tpu.dot_dimension_numbers<[2], [2], [1], [1], [0, 0, 0, 1, 1, 1], [0], [0]>} : vector<16x16x8xbf16>, vector<16x16x8xbf16>, vector<16x16x16xf32> -> vector<16x16x16xf32>
    %4 = vector.shape_cast %3 : vector<16x16x16xf32> to vector<4x4x16x16xf32>
    %cst_8 = arith.constant 0.353553385 : f32
    %5 = vector.broadcast %cst_8 : f32 to vector<4x4x16x16xf32>
    %6 = arith.mulf %4, %5 : vector<4x4x16x16xf32>
    %c0_9 = arith.constant 0 : index
    %c0_10 = arith.constant 0 : index
    %c0_11 = arith.constant 0 : index
    %7 = vector.load %arg4[%c0_9, %c0_10, %c0_11] : memref<4x16x16xf32, #tpu.memory_space<vmem>>, vector<4x16x16xf32>
    %8 = vector.shape_cast %7 : vector<4x16x16xf32> to vector<1x4x16x16xf32>
    %9 = vector.broadcast %8 : vector<1x4x16x16xf32> to vector<4x4x16x16xf32>
    %10 = arith.addf %6, %9 : vector<4x4x16x16xf32>
    %c0_12 = arith.constant 0 : index
    %c0_13 = arith.constant 0 : index
    %c0_14 = arith.constant 0 : index
    %11 = vector.load %arg5[%c0_12, %c0_13, %c0_14] : memref<4x16x16xf32, #tpu.memory_space<vmem>>, vector<4x16x16xf32>
    %12 = vector.shape_cast %11 : vector<4x16x16xf32> to vector<4x1x16x16xf32>
    %13 = vector.broadcast %12 : vector<4x1x16x16xf32> to vector<4x4x16x16xf32>
    %14 = arith.addf %10, %13 : vector<4x4x16x16xf32>
    %cst_15 = arith.constant dense<0xFF800000> : vector<4x4x16xf32>
    %15 = vector.multi_reduction <maximumf>, %14, %cst_15 [3] : vector<4x4x16x16xf32> to vector<4x4x16xf32>
    %16 = vector.shape_cast %15 : vector<4x4x16xf32> to vector<4x4x16x1xf32>
    %17 = vector.broadcast %16 : vector<4x4x16x1xf32> to vector<4x4x16x16xf32>
    %18 = arith.subf %14, %17 : vector<4x4x16x16xf32>
    %19 = math.exp %18 : vector<4x4x16x16xf32>
    %cst_16 = arith.constant dense<0.000000e+00> : vector<4x4x16xf32>
    %20 = vector.multi_reduction <add>, %19, %cst_16 [3] : vector<4x4x16x16xf32> to vector<4x4x16xf32>
    %21 = vector.shape_cast %20 : vector<4x4x16xf32> to vector<4x4x16x1xf32>
    %22 = tpu.reciprocal %21 {approx = true} : vector<4x4x16x1xf32> -> vector<4x4x16x1xf32>
    %23 = vector.broadcast %22 : vector<4x4x16x1xf32> to vector<4x4x16x16xf32>
    %24 = arith.mulf %19, %23 : vector<4x4x16x16xf32>
    %25 = vector.shape_cast %24 : vector<4x4x16x16xf32> to vector<16x16x16xf32>
    %26 = arith.truncf %25 : vector<16x16x16xf32> to vector<16x16x16xbf16>
    %cst_17 = arith.constant dense<0.000000e+00> : vector<16x16x8xf32>
    %27 = tpu.matmul %26, %2, %cst_17 {dimension_numbers = #tpu.dot_dimension_numbers<[2], [1], [1], [2], [0, 0, 0, 1, 1, 2], [0], [0]>} : vector<16x16x16xbf16>, vector<16x16x8xbf16>, vector<16x16x8xf32> -> vector<16x16x8xf32>
    %28 = arith.truncf %27 : vector<16x16x8xf32> to vector<16x16x8xbf16>
    %c0_18 = arith.constant 0 : index
    %c0_19 = arith.constant 0 : index
    %c0_20 = arith.constant 0 : index
    %29 = vector.load %arg6[%c0_18, %c0_19, %c0_20] : memref<16x16x8xbf16, #tpu.memory_space<vmem>>, vector<16x16x8xbf16>
    tpu.vector_store %arg6[%c0_18, %c0_19, %c0_20], %28 {strides = array<i32>} : memref<16x16x8xbf16, #tpu.memory_space<vmem>>, vector<16x16x8xbf16>,
    return
  }
  func.func @transform_0(%arg0: i32) -> (i32, i32, i32) {
    %c0_i32 = arith.constant 0 : i32
    %c0_i32_0 = arith.constant 0 : i32
    %c0_i32_1 = arith.constant 0 : i32
    return %arg0, %c0_i32, %c0_i32_0 : i32, i32, i32
  }
  func.func @transform_1(%arg0: i32) -> (i32, i32, i32) {
    %c0_i32 = arith.constant 0 : i32
    %c0_i32_0 = arith.constant 0 : i32
    %c0_i32_1 = arith.constant 0 : i32
    return %arg0, %c0_i32, %c0_i32_0 : i32, i32, i32
  }
  func.func @transform_2(%arg0: i32) -> (i32, i32, i32) {
    %c0_i32 = arith.constant 0 : i32
    %c0_i32_0 = arith.constant 0 : i32
    %c0_i32_1 = arith.constant 0 : i32
    return %arg0, %c0_i32, %c0_i32_0 : i32, i32, i32
  }
  func.func @transform_3(%arg0: i32) -> (i32, i32, i32) {
    %c0_i32 = arith.constant 0 : i32
    %c0_i32_0 = arith.constant 0 : i32
    %c0_i32_1 = arith.constant 0 : i32
    %c0_i32_2 = arith.constant 0 : i32
    return %c0_i32, %c0_i32_0, %c0_i32_1 : i32, i32, i32
  }
  func.func @transform_4(%arg0: i32) -> (i32, i32, i32) {
    %c0_i32 = arith.constant 0 : i32
    %c0_i32_0 = arith.constant 0 : i32
    %c0_i32_1 = arith.constant 0 : i32
    %c0_i32_2 = arith.constant 0 : i32
    return %c0_i32, %c0_i32_0, %c0_i32_1 : i32, i32, i32
  }
  func.func @transform_5(%arg0: i32) -> (i32, i32, i32) {
    %c0_i32 = arith.constant 0 : i32
    %c0_i32_0 = arith.constant 0 : i32
    %c0_i32_1 = arith.constant 0 : i32
    return %arg0, %c0_i32, %c0_i32_0 : i32, i32, i32
  }
}

module attributes {stable_mosaic.version = 11 : i64} {
  func.func @_out_ln_mlp_kernel(%arg0: i32, %arg1: memref<128x32xf32, #tpu.memory_space<vmem>>, %arg2: memref<128x32xbf16, #tpu.memory_space<vmem>>, %arg3: memref<32x32xbf16, #tpu.memory_space<vmem>>, %arg4: memref<1x32xf32, #tpu.memory_space<vmem>>, %arg5: memref<1x32xf32, #tpu.memory_space<vmem>>, %arg6: memref<1x32xf32, #tpu.memory_space<vmem>>, %arg7: memref<32x128xbf16, #tpu.memory_space<vmem>>, %arg8: memref<1x128xf32, #tpu.memory_space<vmem>>, %arg9: memref<128x32xbf16, #tpu.memory_space<vmem>>, %arg10: memref<1x32xf32, #tpu.memory_space<vmem>>, %arg11: memref<128x32xf32, #tpu.memory_space<vmem>>) attributes {dimension_semantics = [#tpu.dimension_semantics<parallel>], iteration_bounds = array<i64: 1>, scalar_prefetch = 0 : i64, scratch_operands = 0 : i64, tpu.core_type = #tpu.core_type<tc>, window_params = [{transform_indices = @transform_0, window_bounds = array<i64: 128, 32>}, {transform_indices = @transform_1, window_bounds = array<i64: 128, 32>}, {pipeline_mode = #tpu.pipeline_mode<synchronous>, transform_indices = @transform_2, window_bounds = array<i64: 32, 32>}, {pipeline_mode = #tpu.pipeline_mode<synchronous>, transform_indices = @transform_3, window_bounds = array<i64: 1, 32>}, {pipeline_mode = #tpu.pipeline_mode<synchronous>, transform_indices = @transform_4, window_bounds = array<i64: 1, 32>}, {pipeline_mode = #tpu.pipeline_mode<synchronous>, transform_indices = @transform_5, window_bounds = array<i64: 1, 32>}, {pipeline_mode = #tpu.pipeline_mode<synchronous>, transform_indices = @transform_6, window_bounds = array<i64: 32, 128>}, {pipeline_mode = #tpu.pipeline_mode<synchronous>, transform_indices = @transform_7, window_bounds = array<i64: 1, 128>}, {pipeline_mode = #tpu.pipeline_mode<synchronous>, transform_indices = @transform_8, window_bounds = array<i64: 128, 32>}, {pipeline_mode = #tpu.pipeline_mode<synchronous>, transform_indices = @transform_9, window_bounds = array<i64: 1, 32>}, {transform_indices = @transform_10, window_bounds = array<i64: 128, 32>}]} {
    %c0 = arith.constant 0 : index
    %c0_0 = arith.constant 0 : index
    %0 = vector.load %arg2[%c0, %c0_0] : memref<128x32xbf16, #tpu.memory_space<vmem>>, vector<128x32xbf16>
    %c0_1 = arith.constant 0 : index
    %c0_2 = arith.constant 0 : index
    %1 = vector.load %arg3[%c0_1, %c0_2] : memref<32x32xbf16, #tpu.memory_space<vmem>>, vector<32x32xbf16>
    %cst = arith.constant dense<0.000000e+00> : vector<128x32xf32>
    %2 = tpu.matmul %0, %1, %cst {dimension_numbers = #tpu.dot_dimension_numbers<[1], [0], [0], [1], [0, 0, 1, 1], [], []>} : vector<128x32xbf16>, vector<32x32xbf16>, vector<128x32xf32> -> vector<128x32xf32>
    %c0_3 = arith.constant 0 : index
    %c0_4 = arith.constant 0 : index
    %3 = vector.load %arg4[%c0_3, %c0_4] : memref<1x32xf32, #tpu.memory_space<vmem>>, vector<1x32xf32>
    %4 = vector.broadcast %3 : vector<1x32xf32> to vector<128x32xf32>
    %5 = arith.addf %2, %4 : vector<128x32xf32>
    %c0_5 = arith.constant 0 : index
    %c0_6 = arith.constant 0 : index
    %6 = vector.load %arg1[%c0_5, %c0_6] : memref<128x32xf32, #tpu.memory_space<vmem>>, vector<128x32xf32>
    %7 = arith.addf %6, %5 : vector<128x32xf32>
    %cst_7 = arith.constant dense<0.000000e+00> : vector<128xf32>
    %8 = vector.multi_reduction <add>, %7, %cst_7 [1] : vector<128x32xf32> to vector<128xf32>
    %9 = vector.shape_cast %8 : vector<128xf32> to vector<128x1xf32>
    %cst_8 = arith.constant 3.200000e+01 : f32
    %10 = vector.broadcast %cst_8 : f32 to vector<128x1xf32>
    %11 = arith.divf %9, %10 : vector<128x1xf32>
    %12 = vector.broadcast %11 : vector<128x1xf32> to vector<128x32xf32>
    %13 = arith.subf %7, %12 : vector<128x32xf32>
    %14 = arith.mulf %13, %13 : vector<128x32xf32>
    %cst_9 = arith.constant dense<0.000000e+00> : vector<128xf32>
    %15 = vector.multi_reduction <add>, %14, %cst_9 [1] : vector<128x32xf32> to vector<128xf32>
    %16 = vector.shape_cast %15 : vector<128xf32> to vector<128x1xf32>
    %cst_10 = arith.constant 3.200000e+01 : f32
    %17 = vector.broadcast %cst_10 : f32 to vector<128x1xf32>
    %18 = arith.divf %16, %17 : vector<128x1xf32>
    %19 = vector.broadcast %11 : vector<128x1xf32> to vector<128x32xf32>
    %20 = arith.subf %7, %19 : vector<128x32xf32>
    %cst_11 = arith.constant 9.99999974E-6 : f32
    %21 = vector.broadcast %cst_11 : f32 to vector<128x1xf32>
    %22 = arith.addf %18, %21 : vector<128x1xf32>
    %23 = math.rsqrt %22 : vector<128x1xf32>
    %24 = vector.broadcast %23 : vector<128x1xf32> to vector<128x32xf32>
    %25 = arith.mulf %20, %24 : vector<128x32xf32>
    %c0_12 = arith.constant 0 : index
    %c0_13 = arith.constant 0 : index
    %26 = vector.load %arg5[%c0_12, %c0_13] : memref<1x32xf32, #tpu.memory_space<vmem>>, vector<1x32xf32>
    %27 = vector.broadcast %26 : vector<1x32xf32> to vector<128x32xf32>
    %28 = arith.mulf %25, %27 : vector<128x32xf32>
    %c0_14 = arith.constant 0 : index
    %c0_15 = arith.constant 0 : index
    %29 = vector.load %arg6[%c0_14, %c0_15] : memref<1x32xf32, #tpu.memory_space<vmem>>, vector<1x32xf32>
    %30 = vector.broadcast %29 : vector<1x32xf32> to vector<128x32xf32>
    %31 = arith.addf %28, %30 : vector<128x32xf32>
    %32 = arith.truncf %31 : vector<128x32xf32> to vector<128x32xbf16>
    %c0_16 = arith.constant 0 : index
    %c0_17 = arith.constant 0 : index
    %33 = vector.load %arg7[%c0_16, %c0_17] : memref<32x128xbf16, #tpu.memory_space<vmem>>, vector<32x128xbf16>
    %cst_18 = arith.constant dense<0.000000e+00> : vector<128x128xf32>
    %34 = tpu.matmul %32, %33, %cst_18 {dimension_numbers = #tpu.dot_dimension_numbers<[1], [0], [0], [1], [0, 0, 1, 1], [], []>} : vector<128x32xbf16>, vector<32x128xbf16>, vector<128x128xf32> -> vector<128x128xf32>
    %c0_19 = arith.constant 0 : index
    %c0_20 = arith.constant 0 : index
    %35 = vector.load %arg8[%c0_19, %c0_20] : memref<1x128xf32, #tpu.memory_space<vmem>>, vector<1x128xf32>
    %36 = vector.broadcast %35 : vector<1x128xf32> to vector<128x128xf32>
    %37 = arith.addf %34, %36 : vector<128x128xf32>
    %cst_21 = arith.constant 5.000000e-01 : f32
    %38 = vector.broadcast %cst_21 : f32 to vector<128x128xf32>
    %39 = arith.mulf %38, %37 : vector<128x128xf32>
    %cst_22 = arith.constant 0.707106769 : f32
    %40 = vector.broadcast %cst_22 : f32 to vector<128x128xf32>
    %41 = arith.mulf %37, %40 : vector<128x128xf32>
    %cst_23 = arith.constant 0.000000e+00 : f32
    %42 = vector.broadcast %cst_23 : f32 to vector<128x128xf32>
    %43 = arith.cmpf oge, %41, %42 : vector<128x128xf32>
    %cst_24 = arith.constant 1.000000e+00 : f32
    %cst_25 = arith.constant -1.000000e+00 : f32
    %44 = vector.broadcast %cst_24 : f32 to vector<128x128xf32>
    %45 = vector.broadcast %cst_25 : f32 to vector<128x128xf32>
    %46 = arith.select %43, %44, %45 : vector<128x128xi1>, vector<128x128xf32>
    %47 = math.absf %41 : vector<128x128xf32>
    %cst_26 = arith.constant 0.327591091 : f32
    %48 = vector.broadcast %cst_26 : f32 to vector<128x128xf32>
    %49 = arith.mulf %48, %47 : vector<128x128xf32>
    %cst_27 = arith.constant 1.000000e+00 : f32
    %50 = vector.broadcast %cst_27 : f32 to vector<128x128xf32>
    %51 = arith.addf %50, %49 : vector<128x128xf32>
    %cst_28 = arith.constant 1.000000e+00 : f32
    %52 = vector.broadcast %cst_28 : f32 to vector<128x128xf32>
    %53 = arith.divf %52, %51 : vector<128x128xf32>
    %cst_29 = arith.constant 1.06140542 : f32
    %54 = vector.broadcast %cst_29 : f32 to vector<128x128xf32>
    %55 = arith.mulf %54, %53 : vector<128x128xf32>
    %cst_30 = arith.constant -1.45315206 : f32
    %56 = vector.broadcast %cst_30 : f32 to vector<128x128xf32>
    %57 = arith.addf %55, %56 : vector<128x128xf32>
    %58 = arith.mulf %57, %53 : vector<128x128xf32>
    %cst_31 = arith.constant 1.42141378 : f32
    %59 = vector.broadcast %cst_31 : f32 to vector<128x128xf32>
    %60 = arith.addf %58, %59 : vector<128x128xf32>
    %61 = arith.mulf %60, %53 : vector<128x128xf32>
    %cst_32 = arith.constant -0.284496725 : f32
    %62 = vector.broadcast %cst_32 : f32 to vector<128x128xf32>
    %63 = arith.addf %61, %62 : vector<128x128xf32>
    %64 = arith.mulf %63, %53 : vector<128x128xf32>
    %cst_33 = arith.constant 0.254829586 : f32
    %65 = vector.broadcast %cst_33 : f32 to vector<128x128xf32>
    %66 = arith.addf %64, %65 : vector<128x128xf32>
    %67 = arith.mulf %66, %53 : vector<128x128xf32>
    %cst_34 = arith.constant 0.000000e+00 : f32
    %68 = vector.broadcast %cst_34 : f32 to vector<128x128xf32>
    %69 = arith.subf %68, %47 : vector<128x128xf32>
    %70 = arith.mulf %69, %47 : vector<128x128xf32>
    %71 = math.exp %70 : vector<128x128xf32>
    %72 = arith.mulf %67, %71 : vector<128x128xf32>
    %cst_35 = arith.constant 1.000000e+00 : f32
    %73 = vector.broadcast %cst_35 : f32 to vector<128x128xf32>
    %74 = arith.subf %73, %72 : vector<128x128xf32>
    %75 = arith.mulf %46, %74 : vector<128x128xf32>
    %cst_36 = arith.constant 1.000000e+00 : f32
    %76 = vector.broadcast %cst_36 : f32 to vector<128x128xf32>
    %77 = arith.addf %76, %75 : vector<128x128xf32>
    %78 = arith.mulf %39, %77 : vector<128x128xf32>
    %79 = arith.truncf %78 : vector<128x128xf32> to vector<128x128xbf16>
    %c0_37 = arith.constant 0 : index
    %c0_38 = arith.constant 0 : index
    %80 = vector.load %arg9[%c0_37, %c0_38] : memref<128x32xbf16, #tpu.memory_space<vmem>>, vector<128x32xbf16>
    %cst_39 = arith.constant dense<0.000000e+00> : vector<128x32xf32>
    %81 = tpu.matmul %79, %80, %cst_39 {dimension_numbers = #tpu.dot_dimension_numbers<[1], [0], [0], [1], [0, 0, 1, 1], [], []>} : vector<128x128xbf16>, vector<128x32xbf16>, vector<128x32xf32> -> vector<128x32xf32>
    %c0_40 = arith.constant 0 : index
    %c0_41 = arith.constant 0 : index
    %82 = vector.load %arg10[%c0_40, %c0_41] : memref<1x32xf32, #tpu.memory_space<vmem>>, vector<1x32xf32>
    %83 = vector.broadcast %82 : vector<1x32xf32> to vector<128x32xf32>
    %84 = arith.addf %81, %83 : vector<128x32xf32>
    %85 = arith.addf %7, %84 : vector<128x32xf32>
    %c0_42 = arith.constant 0 : index
    %c0_43 = arith.constant 0 : index
    %86 = vector.load %arg11[%c0_42, %c0_43] : memref<128x32xf32, #tpu.memory_space<vmem>>, vector<128x32xf32>
    tpu.vector_store %arg11[%c0_42, %c0_43], %85 {strides = array<i32>} : memref<128x32xf32, #tpu.memory_space<vmem>>, vector<128x32xf32>,
    return
  }
  func.func @transform_0(%arg0: i32) -> (i32, i32) {
    %c0_i32 = arith.constant 0 : i32
    %c0_i32_0 = arith.constant 0 : i32
    return %arg0, %c0_i32 : i32, i32
  }
  func.func @transform_1(%arg0: i32) -> (i32, i32) {
    %c0_i32 = arith.constant 0 : i32
    %c0_i32_0 = arith.constant 0 : i32
    return %arg0, %c0_i32 : i32, i32
  }
  func.func @transform_2(%arg0: i32) -> (i32, i32) {
    %c0_i32 = arith.constant 0 : i32
    %c0_i32_0 = arith.constant 0 : i32
    %c0_i32_1 = arith.constant 0 : i32
    return %c0_i32, %c0_i32_0 : i32, i32
  }
  func.func @transform_3(%arg0: i32) -> (i32, i32) {
    %c0_i32 = arith.constant 0 : i32
    %c0_i32_0 = arith.constant 0 : i32
    %c0_i32_1 = arith.constant 0 : i32
    return %c0_i32, %c0_i32_0 : i32, i32
  }
  func.func @transform_4(%arg0: i32) -> (i32, i32) {
    %c0_i32 = arith.constant 0 : i32
    %c0_i32_0 = arith.constant 0 : i32
    %c0_i32_1 = arith.constant 0 : i32
    return %c0_i32, %c0_i32_0 : i32, i32
  }
  func.func @transform_5(%arg0: i32) -> (i32, i32) {
    %c0_i32 = arith.constant 0 : i32
    %c0_i32_0 = arith.constant 0 : i32
    %c0_i32_1 = arith.constant 0 : i32
    return %c0_i32, %c0_i32_0 : i32, i32
  }
  func.func @transform_6(%arg0: i32) -> (i32, i32) {
    %c0_i32 = arith.constant 0 : i32
    %c0_i32_0 = arith.constant 0 : i32
    %c0_i32_1 = arith.constant 0 : i32
    return %c0_i32, %c0_i32_0 : i32, i32
  }
  func.func @transform_7(%arg0: i32) -> (i32, i32) {
    %c0_i32 = arith.constant 0 : i32
    %c0_i32_0 = arith.constant 0 : i32
    %c0_i32_1 = arith.constant 0 : i32
    return %c0_i32, %c0_i32_0 : i32, i32
  }
  func.func @transform_8(%arg0: i32) -> (i32, i32) {
    %c0_i32 = arith.constant 0 : i32
    %c0_i32_0 = arith.constant 0 : i32
    %c0_i32_1 = arith.constant 0 : i32
    return %c0_i32, %c0_i32_0 : i32, i32
  }
  func.func @transform_9(%arg0: i32) -> (i32, i32) {
    %c0_i32 = arith.constant 0 : i32
    %c0_i32_0 = arith.constant 0 : i32
    %c0_i32_1 = arith.constant 0 : i32
    return %c0_i32, %c0_i32_0 : i32, i32
  }
  func.func @transform_10(%arg0: i32) -> (i32, i32) {
    %c0_i32 = arith.constant 0 : i32
    %c0_i32_0 = arith.constant 0 : i32
    return %arg0, %c0_i32 : i32, i32
  }
}

</mosaic_0001>

<bundles_post_ra>
// kernel: _lambda_.3
= control target key start
LH: loop header
LB: loop body
LE: loop exit
PB: predicated region body
PF: predicated region fallthrough
CT: control target
= control target key end

     0   :  { %vm37_vm0 = vcmask 261120   ;;  %vm509_vm1 = vcmask 781312   ;;  %s1014_s0 = inlined_call_operand.vmem [shape: f32[128,32], index: 0, kind: input, shape index: {}]   ;;  %s1015_s3 = inlined_call_operand.vmem [shape: bf16[32,96], index: 3, kind: input, shape index: {}]   ;;  %s1016_s1 = inlined_call_operand.vmem [shape: f32[1,32], index: 1, kind: input, shape index: {}]   ;;  %s1017_s2 = inlined_call_operand.vmem [shape: f32[1,32], index: 2, kind: input, shape index: {}]   ;;  %s1018_s4 = inlined_call_operand.vmem [shape: f32[1,96], index: 4, kind: input, shape index: {}]   ;;  %s1019_s5 = inlined_call_operand.vmem [shape: bf16[128,96], index: 5, kind: output, shape index: {}]  }
   0x1   :  { %v21_v0 = vld [vmem:[%s1014_s0] sm:$0xff]  ;;  %v22_v2 = vld [vmem:[%s1014_s0 + $0x8] sm:$0xff]  ;;  %v23_v8 = vld [vmem:[%s1014_s0 + $0x10] sm:$0xff] }
   0x2   :  { %v29_v1 = vld [vmem:[%s1014_s0 + $0x40] sm:$0xff]  ;;  %v38_v3 = vsel %vm37_vm0, %v21_v0, 0.0  ;;  %v30_v5 = vld [vmem:[%s1014_s0 + $0x48] sm:$0xff]  ;;  %v41_v6 = vsel %vm37_vm0, %v22_v2, 0.0  ;;  %v24_v9 = vld [vmem:[%s1014_s0 + $0x18] sm:$0xff]  ;;  %v44_v10 = vsel %vm37_vm0, %v23_v8, 0.0 }
   0x3   :  { %v62_v4 = vsel %vm37_vm0, %v29_v1, 0.0  ;;  %39 = vadd.xlane.f32.xlu0 %v38_v3  ;;  %v65_v7 = vsel %vm37_vm0, %v30_v5, 0.0  ;;  %v47_v11 = vsel %vm37_vm0, %v24_v9, 0.0  ;;  %v700_v12 = vld [vmem:[%s1014_s0 + $0x50] sm:$0xff]  ;;  %v705_v13 = vld [vmem:[%s1014_s0 + $0x58] sm:$0xff]  ;;  %v714_v16 = vld [vmem:[%s1014_s0 + $0x20] sm:$0xff] }
   0x4   :  { %63 = vadd.xlane.f32.xlu1 %v62_v4  ;;  %v68_v14 = vsel %vm37_vm0, %v700_v12, 0.0  ;;  %v71_v15 = vsel %vm37_vm0, %v705_v13, 0.0  ;;  %v719_v17 = vld [vmem:[%s1014_s0 + $0x28] sm:$0xff]  ;;  %v50_v18 = vsel %vm37_vm0, %v714_v16, 0.0  ;;  %v728_v20 = vld [vmem:[%s1014_s0 + $0x60] sm:$0xff]  ;;  %v742_v24 = vld [vmem:[%s1014_s0 + $0x30] sm:$0xff] }
   0x5   :  { %v53_v19 = vsel %vm37_vm0, %v719_v17, 0.0  ;;  %v733_v21 = vld [vmem:[%s1014_s0 + $0x68] sm:$0xff]  ;;  %v74_v22 = vsel %vm37_vm0, %v728_v20, 0.0  ;;  %v747_v25 = vld [vmem:[%s1014_s0 + $0x38] sm:$0xff]  ;;  %v56_v26 = vsel %vm37_vm0, %v742_v24, 0.0  ;;  %v756_v28 = vld [vmem:[%s1014_s0 + $0x70] sm:$0xff] }
   0x6   :  { %v77_v23 = vsel %vm37_vm0, %v733_v21, 0.0  ;;  %v59_v27 = vsel %vm37_vm0, %v747_v25, 0.0  ;;  %v761_v29 = vld [vmem:[%s1014_s0 + $0x78] sm:$0xff]  ;;  %v80_v30 = vsel %vm37_vm0, %v756_v28, 0.0 }
   0x7   :  { %42 = vadd.xlane.f32.xlu0 %v41_v6  ;;  %v83_v31 = vsel %vm37_vm0, %v761_v29, 0.0 }
   0x8   :  { %66 = vadd.xlane.f32.xlu1 %v65_v7 }
   0xb   :  { %45 = vadd.xlane.f32.xlu0 %v44_v10 }
   0xc   :  { %48 = vadd.xlane.f32.xlu1 %v47_v11 }
   0xf   :  { %69 = vadd.xlane.f32.xlu0 %v68_v14 }
  0x10   :  { %72 = vadd.xlane.f32.xlu1 %v71_v15 }
  0x13   :  { %51 = vadd.xlane.f32.xlu0 %v50_v18 }
  0x14   :  { %54 = vadd.xlane.f32.xlu1 %v53_v19 }
  0x17   :  { %75 = vadd.xlane.f32.xlu0 %v74_v22 }
  0x18   :  { %78 = vadd.xlane.f32.xlu1 %v77_v23 }
  0x1b   :  { %57 = vadd.xlane.f32.xlu0 %v56_v26 }
  0x1c   :  { %60 = vadd.xlane.f32.xlu1 %v59_v27 }
  0x1f   :  { %81 = vadd.xlane.f32.xlu0 %v80_v30 }
  0x20   :  { %84 = vadd.xlane.f32.xlu1 %v83_v31 }
  0x8c   :  { %v40_v32 = vpop.xlane.xlu0 %39 }
  0x8d   :  { %v64_v33 = vpop.xlane.xlu1 %63  ;;  %v87_v34 = vmul.f32 0.03125, %v40_v32 }
  0x8e   :  { %v95_v35 = vmul.f32 0.03125, %v64_v33 }
  0x8f   :  { %v767_v36 = vsub.f32 %v21_v0, %v87_v34 }
  0x90   :  { %v769_v37 = vsub.f32 %v29_v1, %v95_v35  ;;  %v43_v38 = vpop.xlane.xlu0 %42 }
  0x91   :  { %v67_v39 = vpop.xlane.xlu1 %66  ;;  %v88_v40 = vmul.f32 0.03125, %v43_v38  ;;  %v119_v42 = vmul.f32 %v767_v36, %v767_v36 }
  0x92   :  { %v96_v41 = vmul.f32 0.03125, %v67_v39  ;;  %v127_v43 = vmul.f32 %v769_v37, %v769_v37 }
  0x93   :  { %v775_v44 = vsub.f32 %v22_v2, %v88_v40  ;;  %v135_v46 = vsel %vm37_vm0, %v119_v42, 0.0 }
  0x94   :  { %v777_v45 = vsub.f32 %v30_v5, %v96_v41  ;;  %136 = vadd.xlane.f32.xlu0 %v135_v46  ;;  %v46_v47 = vpop.xlane.xlu0 %45  ;;  %v159_v49 = vsel %vm37_vm0, %v127_v43, 0.0 }
  0x95   :  { %v49_v48 = vpop.xlane.xlu1 %48  ;;  %v89_v50 = vmul.f32 0.03125, %v46_v47  ;;  %v120_v52 = vmul.f32 %v775_v44, %v775_v44 }
  0x96   :  { %v90_v51 = vmul.f32 0.03125, %v49_v48  ;;  %v128_v53 = vmul.f32 %v777_v45, %v777_v45 }
  0x97   :  { %v785_v54 = vsub.f32 %v23_v8, %v89_v50  ;;  %v138_v56 = vsel %vm37_vm0, %v120_v52, 0.0 }
  0x98   :  { %v787_v55 = vsub.f32 %v24_v9, %v90_v51  ;;  %160 = vadd.xlane.f32.xlu0 %v159_v49  ;;  %139 = vadd.xlane.f32.xlu1 %v138_v56  ;;  %v70_v57 = vpop.xlane.xlu0 %69  ;;  %v162_v59 = vsel %vm37_vm0, %v128_v53, 0.0  ;;  %v610_v53 = vld [vmem:[%s1015_s3] sm:$0xff]  }
  0x99   :  { %v73_v58 = vpop.xlane.xlu1 %72  ;;  %v97_v60 = vmul.f32 0.03125, %v70_v57  ;;  %v121_v62 = vmul.f32 %v785_v54, %v785_v54 }
  0x9a   :  { %v98_v61 = vmul.f32 0.03125, %v73_v58  ;;  %v122_v63 = vmul.f32 %v787_v55, %v787_v55 }
  0x9b   :  { %v796_v0 = vsub.f32 %v700_v12, %v97_v60  ;;  %v141_v2 = vsel %vm37_vm0, %v121_v62, 0.0 }
  0x9c   :  { %v799_v1 = vsub.f32 %v705_v13, %v98_v61  ;;  %163 = vadd.xlane.f32.xlu1 %v162_v59  ;;  %142 = vadd.xlane.f32.xlu0 %v141_v2  ;;  %v52_v3 = vpop.xlane.xlu0 %51  ;;  %v144_v5 = vsel %vm37_vm0, %v122_v63, 0.0 }
  0x9d   :  { %v55_v4 = vpop.xlane.xlu1 %54  ;;  %v91_v6 = vmul.f32 0.03125, %v52_v3  ;;  %v129_v8 = vmul.f32 %v796_v0, %v796_v0 }
  0x9e   :  { %v92_v7 = vmul.f32 0.03125, %v55_v4  ;;  %v130_v9 = vmul.f32 %v799_v1, %v799_v1 }
  0x9f   :  { %v808_v10 = vsub.f32 %v714_v16, %v91_v6  ;;  %v165_v12 = vsel %vm37_vm0, %v129_v8, 0.0 }
  0xa0   :  { %v811_v11 = vsub.f32 %v719_v17, %v92_v7  ;;  %145 = vadd.xlane.f32.xlu1 %v144_v5  ;;  %166 = vadd.xlane.f32.xlu0 %v165_v12  ;;  %v76_v13 = vpop.xlane.xlu0 %75  ;;  %v168_v15 = vsel %vm37_vm0, %v130_v9, 0.0 }
  0xa1   :  { %v79_v14 = vpop.xlane.xlu1 %78  ;;  %v99_v18 = vmul.f32 0.03125, %v76_v13  ;;  %v123_v22 = vmul.f32 %v808_v10, %v808_v10 }
  0xa2   :  { %v100_v19 = vmul.f32 0.03125, %v79_v14  ;;  %v124_v16 = vmul.f32 %v811_v11, %v811_v11 }
  0xa3   :  { %v820_v23 = vsub.f32 %v728_v20, %v99_v18  ;;  %v147_v26 = vsel %vm37_vm0, %v123_v22, 0.0 }
  0xa4   :  { %v823_v17 = vsub.f32 %v733_v21, %v100_v19  ;;  %169 = vadd.xlane.f32.xlu1 %v168_v15  ;;  %148 = vadd.xlane.f32.xlu0 %v147_v26  ;;  %v58_v27 = vpop.xlane.xlu0 %57  ;;  %v150_v31 = vsel %vm37_vm0, %v124_v16, 0.0 }
  0xa5   :  { %v61_v30 = vpop.xlane.xlu1 %60  ;;  %v93_v32 = vmul.f32 0.03125, %v58_v27  ;;  %v131_v34 = vmul.f32 %v820_v23, %v820_v23 }
  0xa6   :  { %v94_v33 = vmul.f32 0.03125, %v61_v30  ;;  %v132_v20 = vmul.f32 %v823_v17, %v823_v17 }
  0xa7   :  { %v832_v35 = vsub.f32 %v742_v24, %v93_v32  ;;  %v171_v38 = vsel %vm37_vm0, %v131_v34, 0.0 }
  0xa8   :  { %v835_v21 = vsub.f32 %v747_v25, %v94_v33  ;;  %151 = vadd.xlane.f32.xlu1 %v150_v31  ;;  %172 = vadd.xlane.f32.xlu0 %v171_v38  ;;  %v82_v39 = vpop.xlane.xlu0 %81  ;;  %v174_v41 = vsel %vm37_vm0, %v132_v20, 0.0  ;;  %v867_v33 = vld [vmem:[%s1016_s1] ss:$0 sm:$0xff] }
  0xa9   :  { %v85_v40 = vpop.xlane.xlu1 %84  ;;  %v101_v42 = vmul.f32 0.03125, %v82_v39  ;;  %v125_v46 = vmul.f32 %v832_v35, %v832_v35 }
  0xaa   :  { %v102_v43 = vmul.f32 0.03125, %v85_v40  ;;  %v126_v24 = vmul.f32 %v835_v21, %v835_v21 }
  0xab   :  { %v844_v47 = vsub.f32 %v756_v28, %v101_v42  ;;  %v153_v48 = vsel %vm37_vm0, %v125_v46, 0.0 }
  0xac   :  { %v847_v25 = vsub.f32 %v761_v29, %v102_v43  ;;  %175 = vadd.xlane.f32.xlu1 %v174_v41  ;;  %154 = vadd.xlane.f32.xlu0 %v153_v48  ;;  %v156_v49 = vsel %vm37_vm0, %v126_v24, 0.0  ;;  %v609_v29 = vld [vmem:[%s1015_s3 + $0x8] sm:$0xff]  }
  0xad   :  { %v133_v50 = vmul.f32 %v844_v47, %v844_v47  ;;  %585 = vmatprep.subr.bf16.mxu0 %v609_v29  ;;  %605 = vmatprep.subr.bf16.mxu1 %v609_v29 }
  0xae   :  { %v134_v51 = vmul.f32 %v847_v25, %v847_v25  ;;  %586 = vmatpush3.bf16.msra.mxu0 %v609_v29  ;;  %607 = vmatpush3.bf16.msra.mxu1 %v609_v29 }
  0xaf   :  { %v177_v52 = vsel %vm37_vm0, %v133_v50, 0.0  ;;  %587 = vmatprep.subr.bf16.mxu0 %v610_v53  ;;  %606 = vmatprep.subr.bf16.mxu1 %v610_v53 }
  0xb0   :  { %157 = vadd.xlane.f32.xlu1 %v156_v49  ;;  %178 = vadd.xlane.f32.xlu0 %v177_v52  ;;  %v180_v28 = vsel %vm37_vm0, %v134_v51, 0.0 }
  0xb2   :  { %588 = vmatpush3.bf16.msra.mxu0 %v610_v53  ;;  %608 = vmatpush3.bf16.msra.mxu1 %v610_v53 }
  0xb4   :  { %181 = vadd.xlane.f32.xlu1 %v180_v28 }
 0x11d   :  { %v137_v56 = vpop.xlane.xlu0 %136 }
 0x11e   :  { %v183_v57 = vmul.f32 0.03125, %v137_v56 }
 0x120   :  { %v199_v58 = vadd.f32 1e-05, %v183_v57 }
 0x121   :  { %v140_v59 = vpop.xlane.xlu1 %139  ;;  %v161_v60 = vpop.xlane.xlu0 %160 }
 0x122   :  { %611 = vrsqrt.f32 %v199_v58  ;;  %v184_v61 = vmul.f32 0.03125, %v140_v59  ;;  %v191_v62 = vmul.f32 0.03125, %v161_v60 }
 0x124   :  { %v200_v63 = vadd.f32 1e-05, %v184_v61  ;;  %v207_v2 = vadd.f32 1e-05, %v191_v62 }
 0x125   :  { %v164_v3 = vpop.xlane.xlu1 %163  ;;  %v143_v4 = vpop.xlane.xlu0 %142 }
 0x126   :  { %613 = vrsqrt.f32 %v200_v63  ;;  %v192_v5 = vmul.f32 0.03125, %v164_v3  ;;  %v185_v6 = vmul.f32 0.03125, %v143_v4 }
 0x127   :  { %615 = vrsqrt.f32 %v207_v2 }
 0x128   :  { %v208_v7 = vadd.f32 1e-05, %v192_v5  ;;  %v201_v8 = vadd.f32 1e-05, %v185_v6 }
 0x129   :  { %v146_v9 = vpop.xlane.xlu1 %145  ;;  %v167_v12 = vpop.xlane.xlu0 %166 }
 0x12a   :  { %617 = vrsqrt.f32 %v208_v7  ;;  %v186_v13 = vmul.f32 0.03125, %v146_v9  ;;  %v193_v14 = vmul.f32 0.03125, %v167_v12 }
 0x12b   :  { %619 = vrsqrt.f32 %v201_v8 }
 0x12c   :  { %v202_v15 = vadd.f32 1e-05, %v186_v13  ;;  %v209_v18 = vadd.f32 1e-05, %v193_v14 }
 0x12d   :  { %v170_v19 = vpop.xlane.xlu1 %169  ;;  %v149_v22 = vpop.xlane.xlu0 %148 }
 0x12e   :  { %621 = vrsqrt.f32 %v202_v15  ;;  %v194_v16 = vmul.f32 0.03125, %v170_v19  ;;  %v187_v26 = vmul.f32 0.03125, %v149_v22 }
 0x12f   :  { %v612_v27 = vpop.eup %611  ;;  %623 = vrsqrt.f32 %v209_v18 }
 0x130   :  { %v210_v30 = vadd.f32 1e-05, %v194_v16  ;;  %v203_v31 = vadd.f32 1e-05, %v187_v26  ;;  %v231_v32 = vmul.f32 %v612_v27, %v767_v36  ;;  %v874_v36 = vld [vmem:[%s1017_s2] ss:$0 sm:$0xff] }
 0x131   :  { %v152_v34 = vpop.xlane.xlu1 %151  ;;  %v173_v20 = vpop.xlane.xlu0 %172 }
 0x132   :  { %625 = vrsqrt.f32 %v210_v30  ;;  %v188_v38 = vmul.f32 0.03125, %v152_v34  ;;  %v195_v39 = vmul.f32 0.03125, %v173_v20  ;;  %v254_v41 = vmul.f32 %v867_v33, %v231_v32 }
 0x133   :  { %v614_v40 = vpop.eup %613  ;;  %627 = vrsqrt.f32 %v203_v31 }
 0x134   :  { %v616_v42 = vpop.eup %615  ;;  %v204_v43 = vadd.f32 1e-05, %v188_v38  ;;  %v211_v46 = vadd.f32 1e-05, %v195_v39  ;;  %v232_v24 = vmul.f32 %v614_v40, %v775_v44  ;;  %v277_v53 = vadd.f32 %v874_v36, %v254_v41 }
 0x135   :  { %v176_v48 = vpop.xlane.xlu1 %175  ;;  %v155_v49 = vpop.xlane.xlu0 %154  ;;  %v239_v50 = vmul.f32 %v616_v42, %v769_v37 }
 0x136   :  { %629 = vrsqrt.f32 %v204_v43  ;;  %v196_v51 = vmul.f32 0.03125, %v176_v48  ;;  %v189_v52 = vmul.f32 0.03125, %v155_v49  ;;  %v255_v28 = vmul.f32 %v867_v33, %v232_v24 }
 0x137   :  { %v618_v29 = vpop.eup %617  ;;  %631 = vrsqrt.f32 %v211_v46  ;;  %v262_v37 = vmul.f32 %v867_v33, %v239_v50 }
 0x138   :  { %v620_v56 = vpop.eup %619  ;;  %v212_v44 = vadd.f32 1e-05, %v196_v51  ;;  %v205_v57 = vadd.f32 1e-05, %v189_v52  ;;  %v278_v58 = vadd.f32 %v874_v36, %v255_v28  ;;  %v240_v59 = vmul.f32 %v618_v29, %v777_v45 }
 0x139   :  { %v158_v60 = vpop.xlane.xlu1 %157  ;;  %v179_v61 = vpop.xlane.xlu0 %178  ;;  %v233_v62 = vmul.f32 %v620_v56, %v785_v54  ;;  %v285_v54 = vadd.f32 %v874_v36, %v262_v37 }
 0x13a   :  { %633 = vrsqrt.f32 %v212_v44  ;;  %v190_v63 = vmul.f32 0.03125, %v158_v60  ;;  %v197_v2 = vmul.f32 0.03125, %v179_v61  ;;  %v293_v3 = vpack.c.bf16 %v278_v58, %v277_v53 }
 0x13b   :  { %v622_v4 = vpop.eup %621  ;;  %635 = vrsqrt.f32 %v205_v57  ;;  %v263_v5 = vmul.f32 %v867_v33, %v240_v59  ;;  %v256_v6 = vmul.f32 %v867_v33, %v233_v62 }
 0x13c   :  { %v624_v7 = vpop.eup %623  ;;  %v206_v8 = vadd.f32 1e-05, %v190_v63  ;;  %v213_v9 = vadd.f32 1e-05, %v197_v2  ;;  %589 = vmatprep.mubr.msk.bf16.mxu0 %vm37_vm0, %v293_v3  ;;  %v234_v45 = vmul.f32 %v622_v4, %v787_v55  ;;  %v932_v4 = vld [vmem:[%s1018_s4] ss:$0 sm:$0xff] }
 0x13d   :  { %v182_v12 = vpop.xlane.xlu1 %181  ;;  %v286_v13 = vadd.f32 %v874_v36, %v263_v5  ;;  %v241_v14 = vmul.f32 %v624_v7, %v796_v0  ;;  %v279_v16 = vadd.f32 %v874_v36, %v256_v6 }
 0x13e   :  { %637 = vrsqrt.f32 %v206_v8  ;;  %v198_v15 = vmul.f32 0.03125, %v182_v12  ;;  %v257_v18 = vmul.f32 %v867_v33, %v234_v45 }
 0x13f   :  { %v626_v19 = vpop.eup %625  ;;  %639 = vrsqrt.f32 %v213_v9  ;;  %v297_v22 = vpack.c.bf16 %v286_v13, %v285_v54  ;;  %v264_v31 = vmul.f32 %v867_v33, %v241_v14 }
 0x140   :  { %v628_v26 = vpop.eup %627  ;;  %v214_v27 = vadd.f32 1e-05, %v198_v15  ;;  %v280_v55 = vadd.f32 %v874_v36, %v257_v18  ;;  %v242_v30 = vmul.f32 %v626_v19, %v799_v1 }
 0x141   :  { %597 = vmatprep.mubr.msk.bf16.mxu1 %vm37_vm0, %v297_v22  ;;  %v235_v0 = vmul.f32 %v628_v26, %v808_v10  ;;  %v287_v39 = vadd.f32 %v874_v36, %v264_v31 }
 0x142   :  { %641 = vrsqrt.f32 %v214_v27  ;;  %v294_v32 = vpack.c.bf16 %v280_v55, %v279_v16  ;;  %v265_v34 = vmul.f32 %v867_v33, %v242_v30 }
 0x143   :  { %v630_v20 = vpop.eup %629  ;;  %v258_v41 = vmul.f32 %v867_v33, %v235_v0 }
 0x144   :  { %v632_v38 = vpop.eup %631  ;;  %590 = vmatmul.mubr.msk.bf16.vlgmr.msra.gmra.mxu0 %vm37_vm0, %v294_v32  ;;  %v288_v40 = vadd.f32 %v874_v36, %v265_v34  ;;  %v236_v1 = vmul.f32 %v630_v20, %v811_v11 }
 0x145   :  { %v243_v42 = vmul.f32 %v632_v38, %v820_v23  ;;  %v281_v48 = vadd.f32 %v874_v36, %v258_v41 }
 0x146   :  { %v298_v43 = vpack.c.bf16 %v288_v40, %v287_v39  ;;  %v259_v10 = vmul.f32 %v867_v33, %v236_v1 }
 0x147   :  { %v634_v46 = vpop.eup %633  ;;  %v266_v51 = vmul.f32 %v867_v33, %v243_v42 }
 0x148   :  { %v636_v24 = vpop.eup %635  ;;  %598 = vmatmul.mubr.msk.bf16.vlgmr.msra.gmra.mxu1 %vm37_vm0, %v298_v43  ;;  %v282_v49 = vadd.f32 %v874_v36, %v259_v10  ;;  %v244_v50 = vmul.f32 %v634_v46, %v823_v17 }
 0x149   :  { %v237_v11 = vmul.f32 %v636_v24, %v832_v35  ;;  %v289_v53 = vadd.f32 %v874_v36, %v266_v51 }
 0x14a   :  { %v295_v52 = vpack.c.bf16 %v282_v49, %v281_v48  ;;  %v267_v23 = vmul.f32 %v867_v33, %v244_v50 }
 0x14b   :  { %v638_v28 = vpop.eup %637  ;;  %v260_v57 = vmul.f32 %v867_v33, %v237_v11 }
 0x14c   :  { %v640_v29 = vpop.eup %639  ;;  %593 = vmatprep.mubr.msk.bf16.mxu0 %vm37_vm0, %v295_v52  ;;  %v290_v56 = vadd.f32 %v874_v36, %v267_v23  ;;  %v238_v44 = vmul.f32 %v638_v28, %v835_v21 }
 0x14d   :  { %v245_v17 = vmul.f32 %v640_v29, %v844_v47  ;;  %v283_v60 = vadd.f32 %v874_v36, %v260_v57 }
 0x14e   :  { %v299_v58 = vpack.c.bf16 %v290_v56, %v289_v53  ;;  %v261_v35 = vmul.f32 %v867_v33, %v238_v44 }
 0x14f   :  { %v642_v59 = vpop.eup %641  ;;  %v268_v62 = vmul.f32 %v867_v33, %v245_v17 }
 0x150   :  { %601 = vmatprep.mubr.msk.bf16.mxu1 %vm37_vm0, %v299_v58  ;;  %v284_v61 = vadd.f32 %v874_v36, %v261_v35  ;;  %v246_v37 = vmul.f32 %v642_v59, %v847_v25 }
 0x151   :  { %v291_v47 = vadd.f32 %v874_v36, %v268_v62 }
 0x152   :  { %v296_v63 = vpack.c.bf16 %v284_v61, %v283_v60  ;;  %v269_v21 = vmul.f32 %v867_v33, %v246_v37 }
 0x154   :  { %594 = vmatmul.mubr.msk.bf16.gmra.mxu0 %vm37_vm0, %v296_v63  ;;  %v292_v2 = vadd.f32 %v874_v36, %v269_v21 }
 0x156   :  { %v300_v3 = vpack.c.bf16 %v292_v2, %v291_v47 }
 0x158   :  { %602 = vmatmul.mubr.msk.bf16.gmra.mxu1 %vm37_vm0, %v300_v3 }
 0x204   :  { %v591_v25 = vpop.f32.mrf.mxu0 }
 0x205   :  { %v391_v5 = vadd.f32 %v591_v25, %v932_v4 }
 0x206   :  { %v382_v6 = vpop.f32.mrf.mxu0 }
 0x207   :  { %v561_v33 = vpack.c.bf16 %v391_v5, %v391_v5  ;;  %v383_v7 = vadd.f32 %v932_v4, %v382_v6 }
 0x208   :  { %v592_v8 = vpop.f32.mrf.mxu0  ;;  %v599_v9 = vpop.f32.mrf.mxu1 }
 0x209   :  { %512 = vst.msk [vmem:[%s1019_s5 + $0x8] sm:$0xf] %vm509_vm1, %v561_v33  ;;  %v559_v36 = vpack.c.bf16 %v383_v7, %v383_v7  ;;  %v394_v45 = vadd.f32 %v592_v8, %v932_v4  ;;  %v423_v12 = vadd.f32 %v599_v9, %v932_v4 }
 0x20a   :  { %v385_v54 = vpop.f32.mrf.mxu0  ;;  %v414_v13 = vpop.f32.mrf.mxu1 }
 0x20b   :  { %510 = vst.msk [vmem:[%s1019_s5] sm:$0xf] %vm509_vm1, %v559_v36  ;;  %v562_v14 = vpack.c.bf16 %v394_v45, %v394_v45  ;;  %v569_v15 = vpack.c.bf16 %v423_v12, %v423_v12  ;;  %v386_v18 = vadd.f32 %v932_v4, %v385_v54  ;;  %v415_v19 = vadd.f32 %v932_v4, %v414_v13 }
 0x20c   :  { %v600_v22 = vpop.f32.mrf.mxu1 }
 0x20d   :  { %513 = vst.msk [vmem:[%s1019_s5 + $0xc] sm:$0xf] %vm509_vm1, %v562_v14  ;;  %520 = vst.msk [vmem:[%s1019_s5 + $0x28] sm:$0xf] %vm509_vm1, %v569_v15  ;;  %v560_v16 = vpack.c.bf16 %v386_v18, %v386_v18  ;;  %v567_v26 = vpack.c.bf16 %v415_v19, %v415_v19  ;;  %v426_v27 = vadd.f32 %v600_v22, %v932_v4 }
 0x20e   :  { %v417_v55 = vpop.f32.mrf.mxu1 }
 0x20f   :  { %511 = vst.msk [vmem:[%s1019_s5 + $0x4] sm:$0xf] %vm509_vm1, %v560_v16  ;;  %518 = vst.msk [vmem:[%s1019_s5 + $0x20] sm:$0xf] %vm509_vm1, %v567_v26  ;;  %v570_v30 = vpack.c.bf16 %v426_v27, %v426_v27  ;;  %v418_v31 = vadd.f32 %v932_v4, %v417_v55 }
 0x211   :  { %521 = vst.msk [vmem:[%s1019_s5 + $0x2c] sm:$0xf] %vm509_vm1, %v570_v30  ;;  %v568_v0 = vpack.c.bf16 %v418_v31, %v418_v31 }
 0x213   :  { %519 = vst.msk [vmem:[%s1019_s5 + $0x24] sm:$0xf] %vm509_vm1, %v568_v0 }
 0x214   :  { %v595_v32 = vpop.f32.mrf.mxu0 }
 0x215   :  { %v407_v34 = vadd.f32 %v595_v32, %v932_v4 }
 0x216   :  { %v398_v20 = vpop.f32.mrf.mxu0 }
 0x217   :  { %v565_v38 = vpack.c.bf16 %v407_v34, %v407_v34  ;;  %v399_v39 = vadd.f32 %v932_v4, %v398_v20 }
 0x218   :  { %v596_v40 = vpop.f32.mrf.mxu0  ;;  %v603_v1 = vpop.f32.mrf.mxu1 }
 0x219   :  { %516 = vst.msk [vmem:[%s1019_s5 + $0x18] sm:$0xf] %vm509_vm1, %v565_v38  ;;  %v563_v41 = vpack.c.bf16 %v399_v39, %v399_v39  ;;  %v410_v42 = vadd.f32 %v596_v40, %v932_v4  ;;  %v439_v43 = vadd.f32 %v603_v1, %v932_v4 }
 0x21a   :  { %v401_v10 = vpop.f32.mrf.mxu0  ;;  %v430_v46 = vpop.f32.mrf.mxu1 }
 0x21b   :  { %514 = vst.msk [vmem:[%s1019_s5 + $0x10] sm:$0xf] %vm509_vm1, %v563_v41  ;;  %v566_v24 = vpack.c.bf16 %v410_v42, %v410_v42  ;;  %v573_v48 = vpack.c.bf16 %v439_v43, %v439_v43  ;;  %v402_v49 = vadd.f32 %v932_v4, %v401_v10  ;;  %v431_v50 = vadd.f32 %v932_v4, %v430_v46 }
 0x21c   :  { %v604_v51 = vpop.f32.mrf.mxu1 }
 0x21d   :  { %517 = vst.msk [vmem:[%s1019_s5 + $0x1c] sm:$0xf] %vm509_vm1, %v566_v24  ;;  %524 = vst.msk [vmem:[%s1019_s5 + $0x38] sm:$0xf] %vm509_vm1, %v573_v48  ;;  %v564_v11 = vpack.c.bf16 %v402_v49, %v402_v49  ;;  %v571_v52 = vpack.c.bf16 %v431_v50, %v431_v50  ;;  %v442_v23 = vadd.f32 %v604_v51, %v932_v4 }
 0x21e   :  { %v433_v28 = vpop.f32.mrf.mxu1 }
 0x21f   :  { %515 = vst.msk [vmem:[%s1019_s5 + $0x14] sm:$0xf] %vm509_vm1, %v564_v11  ;;  %522 = vst.msk [vmem:[%s1019_s5 + $0x30] sm:$0xf] %vm509_vm1, %v571_v52  ;;  %v574_v29 = vpack.c.bf16 %v442_v23, %v442_v23  ;;  %v434_v53 = vadd.f32 %v932_v4, %v433_v28 }
 0x221   :  { %525 = vst.msk [vmem:[%s1019_s5 + $0x3c] sm:$0xf] %vm509_vm1, %v574_v29  ;;  %v572_v56 = vpack.c.bf16 %v434_v53, %v434_v53 }
 0x223   :  { %523 = vst.msk [vmem:[%s1019_s5 + $0x34] sm:$0xf] %vm509_vm1, %v572_v56 }

// kernel: _lambda_.4
= control target key start
LH: loop header
LB: loop body
LE: loop exit
PB: predicated region body
PF: predicated region fallthrough
CT: control target
= control target key end

     0   :  { %s3466_s18 = smov 0   ;;  %s4175_s0 = inlined_call_operand.vmem [shape: bf16[32,16,8], index: 0, kind: input, shape index: {}]   ;;  %s4176_s1 = inlined_call_operand.vmem [shape: bf16[32,16,8], index: 1, kind: input, shape index: {}]   ;;  %s4177_s2 = inlined_call_operand.vmem [shape: bf16[32,16,8], index: 2, kind: input, shape index: {}]   ;;  %s4178_s3 = inlined_call_operand.vmem [shape: f32[4,16,16], index: 3, kind: input, shape index: {}]   ;;  %s4179_s4 = inlined_call_operand.vmem [shape: f32[4,16,16], index: 4, kind: input, shape index: {}]   ;;  %s4180_s5 = inlined_call_operand.vmem [shape: bf16[32,16,8], index: 5, kind: output, shape index: {}]  }
   0x1 LB: > { %s2817_s19 = sadd.s32 4294967295, %s3432_s18   ;;  %p2821_p0 = scmp.ge.s32.totalorder %s3432_s18, 1  ;;  %s3432_s18 = sphi %s3466_s18, %s15_s18  }
   0x2   : > { %p213_p1 = scmp.lt.s32.totalorder %s3432_s18, 3 }
   0x4   : > { %p214_p2 = pnand %p2821_p0, %p213_p1 }
   0x5   : > { %s2822_s20 = sshll.u32 (!%p214_p2), %s2817_s19, 4 }
   0x6   : > { %217 = sbr.rel (%p214_p2) target bundleno = 801 (0x321), region = 40  ;;  %p256_p3 = scmp.lt.s32.totalorder (!%p214_p2), %s2822_s20, 31 }
   0xb   : > { %v3434_v0 = vmov 0.0   ;;  %vm3435_vm0 = vmmov 0   ;;  %s4182_s20 = smov (!%p256_p3, %s2822_s20), 31  ;;  %vm390_vm1 = vcmask 64512   ;;  %v3609_v50 = vld [vmem:[%s4178_s3] sm:$0xff]  ;;  %v3614_v53 = vld [vmem:[%s4178_s3 + $0x10] sm:$0xff] }
   0xc   : > { %3048 = vmatprep.subr.bf16.mxu0 %v3434_v0  ;;  %3054 = vmatprep.subr.bf16.mxu1 %v3434_v0  ;;  %s3480_s21 = sshll.u32 %s4182_s20, 3  ;;  %v1365_v56 = vld [vmem:[%s4179_s4] sm:$0xff]  ;;  %v3624_v61 = vld [vmem:[%s4178_s3 + $0x8] sm:$0xff]  ;;  %vm1405_vm2 = vcmask 130048   ;;  %vm2702_vm3 = vcmask 60416  }
   0xd   : > { %3050 = vmatprep.mubr.msk.bf16.mxu0 %vm3435_vm0, %v3434_v0  ;;  %3056 = vmatprep.mubr.msk.bf16.mxu1 %vm3435_vm0, %v3434_v0  ;;  %s3486_s24 = scalar_lea.vmem %s4176_s1, %s3480_s21  ;;  %s3494_s27 = scalar_lea.vmem %s4175_s0, %s3480_s21 }
   0xe   : > { %v3250_v1 = vld [vmem:[%s3486_s24] sm:$0xff]   ;;  %v3251_v2 = vld [vmem:[%s3486_s24 + $0x8] sm:$0xff]   ;;  %v3254_v5 = vld [vmem:[%s3486_s24 + $0x10] sm:$0xff]   ;;  %s3917_s14 = scalar_lea.vmem %s4177_s2, %s3480_s21  ;;  %s4106_s17 = scalar_lea.vmem %s4180_s5, %s3480_s21 }
   0xf   : > { %v395_v3 = vsel %vm390_vm1, %v3250_v1, 0  ;;  %v452_v4 = vsel %vm390_vm1, %v3251_v2, 0  ;;  %v3255_v6 = vld [vmem:[%s3486_s24 + $0x18] sm:$0xff]   ;;  %v3252_v7 = vld [vmem:[%s3494_s27] sm:$0xff]   ;;  %v3253_v8 = vld [vmem:[%s3494_s27 + $0x8] sm:$0xff]   ;;  %v509_v9 = vsel %vm390_vm1, %v3254_v5, 0 }
  0x10   : > { %3049 = vmatpush3.bf16.xpose.msra.mxu0 %v395_v3  ;;  %3055 = vmatpush3.bf16.xpose.msra.mxu1 %v452_v4  ;;  %v566_v10 = vsel %vm390_vm1, %v3255_v6, 0  ;;  %v3258_v11 = vld [vmem:[%s3486_s24 + $0x20] sm:$0xff]   ;;  %v3259_v12 = vld [vmem:[%s3486_s24 + $0x28] sm:$0xff]   ;;  %v3256_v13 = vld [vmem:[%s3494_s27 + $0x10] sm:$0xff]  }
  0x11   : > { %3060 = vmatprep.subr.bf16.mxu0 %v3434_v0  ;;  %3066 = vmatprep.subr.bf16.mxu1 %v3434_v0  ;;  %v3257_v14 = vld [vmem:[%s3494_s27 + $0x18] sm:$0xff]   ;;  %v623_v15 = vsel %vm390_vm1, %v3258_v11, 0  ;;  %v680_v16 = vsel %vm390_vm1, %v3259_v12, 0  ;;  %v3262_v17 = vld [vmem:[%s3486_s24 + $0x30] sm:$0xff]   ;;  %v3260_v19 = vld [vmem:[%s3494_s27 + $0x20] sm:$0xff]  }
  0x12   : > { %v3263_v18 = vld [vmem:[%s3486_s24 + $0x38] sm:$0xff]   ;;  %v3261_v20 = vld [vmem:[%s3494_s27 + $0x28] sm:$0xff]   ;;  %v737_v21 = vsel %vm390_vm1, %v3262_v17, 0  ;;  %v3266_v23 = vld [vmem:[%s3486_s24 + $0x40] sm:$0xff]  }
  0x13   : > { %v794_v22 = vsel %vm390_vm1, %v3263_v18, 0  ;;  %v3267_v24 = vld [vmem:[%s3486_s24 + $0x48] sm:$0xff]   ;;  %v3264_v25 = vld [vmem:[%s3494_s27 + $0x30] sm:$0xff]   ;;  %v3265_v26 = vld [vmem:[%s3494_s27 + $0x38] sm:$0xff]   ;;  %v851_v27 = vsel %vm390_vm1, %v3266_v23, 0 }
  0x14   : > { %v908_v28 = vsel %vm390_vm1, %v3267_v24, 0  ;;  %v3270_v29 = vld [vmem:[%s3486_s24 + $0x50] sm:$0xff]   ;;  %v3271_v30 = vld [vmem:[%s3486_s24 + $0x58] sm:$0xff]   ;;  %v3268_v31 = vld [vmem:[%s3494_s27 + $0x40] sm:$0xff]  }
  0x15   : > { %v3269_v32 = vld [vmem:[%s3494_s27 + $0x48] sm:$0xff]   ;;  %v965_v33 = vsel %vm390_vm1, %v3270_v29, 0  ;;  %v1022_v34 = vsel %vm390_vm1, %v3271_v30, 0  ;;  %v3274_v35 = vld [vmem:[%s3486_s24 + $0x60] sm:$0xff]   ;;  %v3272_v37 = vld [vmem:[%s3494_s27 + $0x50] sm:$0xff]  }
  0x16   : > { %v3275_v36 = vld [vmem:[%s3486_s24 + $0x68] sm:$0xff]   ;;  %v3273_v38 = vld [vmem:[%s3494_s27 + $0x58] sm:$0xff]   ;;  %v1079_v39 = vsel %vm390_vm1, %v3274_v35, 0  ;;  %v3278_v41 = vld [vmem:[%s3486_s24 + $0x70] sm:$0xff]  }
  0x17   : > { %3051 = vmatmul.mubr.msk.bf16.vlgmr.msra.gmra.mxu0 %vm390_vm1, %v3252_v7  ;;  %3057 = vmatmul.mubr.msk.bf16.vlgmr.msra.gmra.mxu1 %vm390_vm1, %v3253_v8  ;;  %v1136_v40 = vsel %vm390_vm1, %v3275_v36, 0  ;;  %v3279_v42 = vld [vmem:[%s3486_s24 + $0x78] sm:$0xff]   ;;  %v3276_v43 = vld [vmem:[%s3494_s27 + $0x60] sm:$0xff]   ;;  %v3277_v44 = vld [vmem:[%s3494_s27 + $0x68] sm:$0xff]   ;;  %v1193_v45 = vsel %vm390_vm1, %v3278_v41, 0 }
  0x18   : > { %3061 = vmatpush3.bf16.xpose.msra.mxu0 %v509_v9  ;;  %3067 = vmatpush3.bf16.xpose.msra.mxu1 %v566_v10  ;;  %v1250_v46 = vsel %vm390_vm1, %v3279_v42, 0  ;;  %v3280_v47 = vld [vmem:[%s3494_s27 + $0x70] sm:$0xff]   ;;  %v3281_v48 = vld [vmem:[%s3494_s27 + $0x78] sm:$0xff]   ;;  %v1366_v6 = vld [vmem:[%s4179_s4 + $0x8] sm:$0xff] }
  0x19   : > { %3062 = vmatprep.mubr.msk.bf16.mxu0 %vm3435_vm0, %v3434_v0  ;;  %3068 = vmatprep.mubr.msk.bf16.mxu1 %vm3435_vm0, %v3434_v0  ;;  %v3629_v1 = vld [vmem:[%s4178_s3 + $0x18] sm:$0xff] }
  0x1a   : > { %3072 = vmatprep.subr.bf16.mxu0 %v3434_v0  ;;  %3078 = vmatprep.subr.bf16.mxu1 %v3434_v0  ;;  %v3672_v29 = vld [vmem:[%s4178_s3 + $0x38] sm:$0xff] }
  0x1f   : > { %3063 = vmatmul.mubr.msk.bf16.vlgmr.msra.gmra.mxu0 %vm390_vm1, %v3256_v13  ;;  %3069 = vmatmul.mubr.msk.bf16.vlgmr.msra.gmra.mxu1 %vm390_vm1, %v3257_v14  ;;  %v3647_v13 = vld [vmem:[%s4178_s3 + $0x20] sm:$0xff] }
  0x20   : > { %3073 = vmatpush3.bf16.xpose.msra.mxu0 %v623_v15  ;;  %3079 = vmatpush3.bf16.xpose.msra.mxu1 %v680_v16  ;;  %v3652_v15 = vld [vmem:[%s4178_s3 + $0x30] sm:$0xff] }
  0x21   : > { %3074 = vmatprep.mubr.msk.bf16.mxu0 %vm3435_vm0, %v3434_v0  ;;  %3080 = vmatprep.mubr.msk.bf16.mxu1 %vm3435_vm0, %v3434_v0 }
  0x22   : > { %3084 = vmatprep.subr.bf16.mxu0 %v3434_v0  ;;  %3090 = vmatprep.subr.bf16.mxu1 %v3434_v0 }
  0x27   : > { %3075 = vmatmul.mubr.msk.bf16.vlgmr.msra.gmra.mxu0 %vm390_vm1, %v3260_v19  ;;  %3081 = vmatmul.mubr.msk.bf16.vlgmr.msra.gmra.mxu1 %vm390_vm1, %v3261_v20 }
  0x28   : > { %3085 = vmatpush3.bf16.xpose.msra.mxu0 %v737_v21  ;;  %3091 = vmatpush3.bf16.xpose.msra.mxu1 %v794_v22 }
  0x29   : > { %3086 = vmatprep.mubr.msk.bf16.mxu0 %vm3435_vm0, %v3434_v0  ;;  %3092 = vmatprep.mubr.msk.bf16.mxu1 %vm3435_vm0, %v3434_v0 }
  0x2a   : > { %3096 = vmatprep.subr.bf16.mxu0 %v3434_v0  ;;  %3102 = vmatprep.subr.bf16.mxu1 %v3434_v0 }
  0x2f   : > { %3087 = vmatmul.mubr.msk.bf16.vlgmr.msra.gmra.mxu0 %vm390_vm1, %v3264_v25  ;;  %3093 = vmatmul.mubr.msk.bf16.vlgmr.msra.gmra.mxu1 %vm390_vm1, %v3265_v26 }
  0x30   : > { %3097 = vmatpush3.bf16.xpose.msra.mxu0 %v851_v27  ;;  %3103 = vmatpush3.bf16.xpose.msra.mxu1 %v908_v28  ;;  %v3667_v27 = vld [vmem:[%s4178_s3 + $0x28] sm:$0xff] }
  0x31   : > { %3098 = vmatprep.mubr.msk.bf16.mxu0 %vm3435_vm0, %v3434_v0  ;;  %3104 = vmatprep.mubr.msk.bf16.mxu1 %vm3435_vm0, %v3434_v0 }
  0x32   : > { %3108 = vmatprep.subr.bf16.mxu0 %v3434_v0  ;;  %3114 = vmatprep.subr.bf16.mxu1 %v3434_v0 }
  0x37   : > { %3099 = vmatmul.mubr.msk.bf16.vlgmr.msra.gmra.mxu0 %vm390_vm1, %v3268_v31  ;;  %3105 = vmatmul.mubr.msk.bf16.vlgmr.msra.gmra.mxu1 %vm390_vm1, %v3269_v32 }
  0x38   : > { %3109 = vmatpush3.bf16.xpose.msra.mxu0 %v965_v33  ;;  %3115 = vmatpush3.bf16.xpose.msra.mxu1 %v1022_v34 }
  0x39   : > { %3110 = vmatprep.mubr.msk.bf16.mxu0 %vm3435_vm0, %v3434_v0  ;;  %3116 = vmatprep.mubr.msk.bf16.mxu1 %vm3435_vm0, %v3434_v0 }
  0x3a   : > { %3120 = vmatprep.subr.bf16.mxu0 %v3434_v0  ;;  %3126 = vmatprep.subr.bf16.mxu1 %v3434_v0 }
  0x3f   : > { %3111 = vmatmul.mubr.msk.bf16.vlgmr.msra.gmra.mxu0 %vm390_vm1, %v3272_v37  ;;  %3117 = vmatmul.mubr.msk.bf16.vlgmr.msra.gmra.mxu1 %vm390_vm1, %v3273_v38 }
  0x40   : > { %3121 = vmatpush3.bf16.xpose.msra.mxu0 %v1079_v39  ;;  %3127 = vmatpush3.bf16.xpose.msra.mxu1 %v1136_v40 }
  0x41   : > { %3122 = vmatprep.mubr.msk.bf16.mxu0 %vm3435_vm0, %v3434_v0  ;;  %3128 = vmatprep.mubr.msk.bf16.mxu1 %vm3435_vm0, %v3434_v0 }
  0x42   : > { %3132 = vmatprep.subr.bf16.mxu0 %v3434_v0  ;;  %3138 = vmatprep.subr.bf16.mxu1 %v3434_v0 }
  0x47   : > { %3123 = vmatmul.mubr.msk.bf16.vlgmr.msra.gmra.mxu0 %vm390_vm1, %v3276_v43  ;;  %3129 = vmatmul.mubr.msk.bf16.vlgmr.msra.gmra.mxu1 %vm390_vm1, %v3277_v44 }
  0x48   : > { %3133 = vmatpush3.bf16.xpose.msra.mxu0 %v1193_v45  ;;  %3139 = vmatpush3.bf16.xpose.msra.mxu1 %v1250_v46  ;;  %v1367_v46 = vld [vmem:[%s4179_s4 + $0x10] sm:$0xff] }
  0x49   : > { %3134 = vmatprep.mubr.msk.bf16.mxu0 %vm3435_vm0, %v3434_v0  ;;  %3140 = vmatprep.mubr.msk.bf16.mxu1 %vm3435_vm0, %v3434_v0 }
  0x4a   : > { %3144 = vmatprep.subr.bf16.mxu0 %v3434_v0  ;;  %3150 = vmatprep.subr.bf16.mxu1 %v3434_v0 }
  0x4f   : > { %3135 = vmatmul.mubr.msk.bf16.vlgmr.msra.gmra.mxu0 %vm390_vm1, %v3280_v47  ;;  %3141 = vmatmul.mubr.msk.bf16.vlgmr.msra.gmra.mxu1 %vm390_vm1, %v3281_v48 }
  0x50   : > { %3146 = vmatprep.mubr.msk.bf16.mxu0 %vm3435_vm0, %v3434_v0  ;;  %3152 = vmatprep.mubr.msk.bf16.mxu1 %vm3435_vm0, %v3434_v0 }
  0xd7   : > { %v431_v49 = vpop.f32.mrf.mxu0  ;;  %v488_v52 = vpop.f32.mrf.mxu1 }
  0xd8   : > { %v1293_v51 = vmul.f32 0.35355338, %v431_v49  ;;  %v1295_v54 = vmul.f32 0.35355338, %v488_v52 }
  0xd9   : > { %v3052_v55 = vpop.f32.mrf.mxu0  ;;  %v3058_v58 = vpop.f32.mrf.mxu1 }
  0xda   : > { %v1333_v57 = vadd.f32 %v3609_v50, %v1293_v51  ;;  %v1335_v59 = vadd.f32 %v3614_v53, %v1295_v54 }
  0xdb   : > { %v434_v60 = vpop.f32.mrf.mxu0  ;;  %v491_v63 = vpop.f32.mrf.mxu1 }
  0xdc   : > { %v1294_v62 = vmul.f32 0.35355338, %v434_v60  ;;  %v3631_v2 = vadd.f32 %v1365_v56, %v1333_v57  ;;  %v1296_v3 = vmul.f32 0.35355338, %v491_v63  ;;  %v3633_v5 = vadd.f32 %v1365_v56, %v1335_v59 }
  0xdd   : > { %v3053_v4 = vpop.f32.mrf.mxu0  ;;  %v3059_v8 = vpop.f32.mrf.mxu1 }
  0xde   : > { %v1334_v7 = vadd.f32 %v3624_v61, %v1294_v62  ;;  %v1406_v9 = vsel %vm1405_vm2, %v3631_v2, -inf  ;;  %v1336_v10 = vadd.f32 %v3629_v1, %v1296_v3  ;;  %v1412_v11 = vsel %vm1405_vm2, %v3633_v5, -inf  ;;  %v1368_v62 = vld [vmem:[%s4179_s4 + $0x18] sm:$0xff] }
  0xdf   : > { %1407 = vmax.xlane.f32.xlu0 %v1406_v9  ;;  %v545_v12 = vpop.f32.mrf.mxu0  ;;  %1413 = vmax.xlane.f32.xlu1 %v1412_v11  ;;  %v602_v14 = vpop.f32.mrf.mxu1 }
  0xe0   : > { %v1297_v16 = vmul.f32 0.35355338, %v545_v12  ;;  %v3654_v17 = vadd.f32 %v1366_v6, %v1334_v7  ;;  %v1299_v18 = vmul.f32 0.35355338, %v602_v14  ;;  %v3656_v20 = vadd.f32 %v1366_v6, %v1336_v10 }
  0xe1   : > { %v3064_v19 = vpop.f32.mrf.mxu0  ;;  %v3070_v22 = vpop.f32.mrf.mxu1 }
  0xe2   : > { %v1337_v21 = vadd.f32 %v3647_v13, %v1297_v16  ;;  %v1409_v23 = vsel %vm1405_vm2, %v3654_v17, -inf  ;;  %v1339_v24 = vadd.f32 %v3652_v15, %v1299_v18  ;;  %v1415_v25 = vsel %vm1405_vm2, %v3656_v20, -inf }
  0xe3   : > { %1410 = vmax.xlane.f32.xlu0 %v1409_v23  ;;  %v548_v26 = vpop.f32.mrf.mxu0  ;;  %1416 = vmax.xlane.f32.xlu1 %v1415_v25  ;;  %v605_v28 = vpop.f32.mrf.mxu1 }
  0xe4   : > { %v1298_v30 = vmul.f32 0.35355338, %v548_v26  ;;  %v3674_v31 = vadd.f32 %v1365_v56, %v1337_v21  ;;  %v1300_v32 = vmul.f32 0.35355338, %v605_v28  ;;  %v3676_v34 = vadd.f32 %v1365_v56, %v1339_v24 }
  0xe5   : > { %v3065_v33 = vpop.f32.mrf.mxu0  ;;  %v3071_v36 = vpop.f32.mrf.mxu1 }
  0xe6   : > { %v1338_v35 = vadd.f32 %v3667_v27, %v1298_v30  ;;  %v1418_v37 = vsel %vm1405_vm2, %v3674_v31, -inf  ;;  %v1340_v38 = vadd.f32 %v3672_v29, %v1300_v32  ;;  %v1424_v42 = vsel %vm1405_vm2, %v3676_v34, -inf }
  0xe7   : > { %1419 = vmax.xlane.f32.xlu0 %v1418_v37  ;;  %v659_v39 = vpop.f32.mrf.mxu0  ;;  %v716_v40 = vpop.f32.mrf.mxu1 }
  0xe8   : > { %v1301_v41 = vmul.f32 0.35355338, %v659_v39  ;;  %v3684_v43 = vadd.f32 %v1366_v6, %v1338_v35  ;;  %v1303_v44 = vmul.f32 0.35355338, %v716_v40  ;;  %v3692_v51 = vadd.f32 %v1366_v6, %v1340_v38 }
  0xe9   : > { %v3076_v45 = vpop.f32.mrf.mxu0  ;;  %v3082_v48 = vpop.f32.mrf.mxu1 }
  0xea   : > { %v1341_v47 = vadd.f32 %v3609_v50, %v1301_v41  ;;  %v1421_v49 = vsel %vm1405_vm2, %v3684_v43, -inf  ;;  %v1343_v52 = vadd.f32 %v3614_v53, %v1303_v44  ;;  %v1427_v4 = vsel %vm1405_vm2, %v3692_v51, -inf  ;;  %v1369_v48 = vld [vmem:[%s4179_s4 + $0x20] sm:$0xff] }
  0xeb   : > { %1425 = vmax.xlane.f32.xlu0 %v1424_v42  ;;  %1422 = vmax.xlane.f32.xlu1 %v1421_v49  ;;  %v662_v54 = vpop.f32.mrf.mxu0  ;;  %v719_v55 = vpop.f32.mrf.mxu1 }
  0xec   : > { %v1302_v56 = vmul.f32 0.35355338, %v662_v54  ;;  %v3695_v57 = vadd.f32 %v1367_v46, %v1341_v47  ;;  %v1304_v58 = vmul.f32 0.35355338, %v719_v55  ;;  %v3697_v60 = vadd.f32 %v1367_v46, %v1343_v52 }
  0xed   : > { %v3077_v59 = vpop.f32.mrf.mxu0  ;;  %v3083_v3 = vpop.f32.mrf.mxu1 }
  0xee   : > { %v1342_v63 = vadd.f32 %v3624_v61, %v1302_v56  ;;  %v1430_v6 = vsel %vm1405_vm2, %v3695_v57, -inf  ;;  %v1344_v7 = vadd.f32 %v3629_v1, %v1304_v58  ;;  %v1436_v11 = vsel %vm1405_vm2, %v3697_v60, -inf }
  0xef   : > { %1428 = vmax.xlane.f32.xlu1 %v1427_v4  ;;  %1431 = vmax.xlane.f32.xlu0 %v1430_v6  ;;  %v773_v8 = vpop.f32.mrf.mxu0  ;;  %v830_v9 = vpop.f32.mrf.mxu1 }
  0xf0   : > { %v1305_v10 = vmul.f32 0.35355338, %v773_v8  ;;  %v3710_v12 = vadd.f32 %v1368_v62, %v1342_v63  ;;  %v1307_v14 = vmul.f32 0.35355338, %v830_v9  ;;  %v3715_v22 = vadd.f32 %v1368_v62, %v1344_v7  ;;  %v1370_v8 = vld [vmem:[%s4179_s4 + $0x28] sm:$0xff] }
  0xf1   : > { %v3088_v16 = vpop.f32.mrf.mxu0  ;;  %v3094_v19 = vpop.f32.mrf.mxu1 }
  0xf2   : > { %v1345_v18 = vadd.f32 %v3647_v13, %v1305_v10  ;;  %v1433_v21 = vsel %vm1405_vm2, %v3710_v12, -inf  ;;  %v1347_v23 = vadd.f32 %v3652_v15, %v1307_v14  ;;  %v1439_v37 = vsel %vm1405_vm2, %v3715_v22, -inf }
  0xf3   : > { %1437 = vmax.xlane.f32.xlu0 %v1436_v11  ;;  %1434 = vmax.xlane.f32.xlu1 %v1433_v21  ;;  %v776_v24 = vpop.f32.mrf.mxu0  ;;  %v833_v25 = vpop.f32.mrf.mxu1 }
  0xf4   : > { %v1306_v26 = vmul.f32 0.35355338, %v776_v24  ;;  %v3718_v28 = vadd.f32 %v1367_v46, %v1345_v18  ;;  %v1308_v30 = vmul.f32 0.35355338, %v833_v25  ;;  %v3720_v33 = vadd.f32 %v1367_v46, %v1347_v23 }
  0xf5   : > { %v3089_v32 = vpop.f32.mrf.mxu0  ;;  %v3095_v36 = vpop.f32.mrf.mxu1 }
  0xf6   : > { %v1346_v35 = vadd.f32 %v3667_v27, %v1306_v26  ;;  %v1442_v38 = vsel %vm1405_vm2, %v3718_v28, -inf  ;;  %v1348_v39 = vadd.f32 %v3672_v29, %v1308_v30  ;;  %v1448_v44 = vsel %vm1405_vm2, %v3720_v33, -inf }
  0xf7   : > { %1440 = vmax.xlane.f32.xlu1 %v1439_v37  ;;  %1443 = vmax.xlane.f32.xlu0 %v1442_v38  ;;  %v887_v40 = vpop.f32.mrf.mxu0  ;;  %v944_v41 = vpop.f32.mrf.mxu1 }
  0xf8   : > { %v1309_v42 = vmul.f32 0.35355338, %v887_v40  ;;  %v3730_v45 = vadd.f32 %v1368_v62, %v1346_v35  ;;  %v1311_v46 = vmul.f32 0.35355338, %v944_v41  ;;  %v3738_v55 = vadd.f32 %v1368_v62, %v1348_v39 }
  0xf9   : > { %v3100_v47 = vpop.f32.mrf.mxu0  ;;  %v3106_v52 = vpop.f32.mrf.mxu1 }
  0xfa   : > { %v1349_v49 = vadd.f32 %v3609_v50, %v1309_v42  ;;  %v1445_v54 = vsel %vm1405_vm2, %v3730_v45, -inf  ;;  %v1351_v56 = vadd.f32 %v3614_v53, %v1311_v46  ;;  %v1451_v10 = vsel %vm1405_vm2, %v3738_v55, -inf }
  0xfb   : > { %1449 = vmax.xlane.f32.xlu0 %v1448_v44  ;;  %1446 = vmax.xlane.f32.xlu1 %v1445_v54  ;;  %v890_v58 = vpop.f32.mrf.mxu0  ;;  %v947_v59 = vpop.f32.mrf.mxu1 }
  0xfc   : > { %v1310_v63 = vmul.f32 0.35355338, %v890_v58  ;;  %v3741_v3 = vadd.f32 %v1369_v48, %v1349_v49  ;;  %v1312_v4 = vmul.f32 0.35355338, %v947_v59  ;;  %v3743_v7 = vadd.f32 %v1369_v48, %v1351_v56 }
  0xfd   : > { %v3101_v6 = vpop.f32.mrf.mxu0  ;;  %v3107_v9 = vpop.f32.mrf.mxu1 }
  0xfe   : > { %v1350_v62 = vadd.f32 %v3624_v61, %v1310_v63  ;;  %v1454_v11 = vsel %vm1405_vm2, %v3741_v3, -inf  ;;  %v1352_v14 = vadd.f32 %v3629_v1, %v1312_v4  ;;  %v1460_v21 = vsel %vm1405_vm2, %v3743_v7, -inf }
  0xff   : > { %1452 = vmax.xlane.f32.xlu1 %v1451_v10  ;;  %1455 = vmax.xlane.f32.xlu0 %v1454_v11  ;;  %v1001_v16 = vpop.f32.mrf.mxu0  ;;  %v1058_v18 = vpop.f32.mrf.mxu1 }
 0x100   : > { %v1313_v19 = vmul.f32 0.35355338, %v1001_v16  ;;  %v3756_v23 = vadd.f32 %v1370_v8, %v1350_v62  ;;  %v1315_v24 = vmul.f32 0.35355338, %v1058_v18  ;;  %v3761_v35 = vadd.f32 %v1370_v8, %v1352_v14  ;;  %v1371_v62 = vld [vmem:[%s4179_s4 + $0x30] sm:$0xff] }
 0x101   : > { %v3112_v25 = vpop.f32.mrf.mxu0  ;;  %v3118_v30 = vpop.f32.mrf.mxu1 }
 0x102   : > { %v1353_v26 = vadd.f32 %v3647_v13, %v1313_v19  ;;  %v1457_v32 = vsel %vm1405_vm2, %v3756_v23, -inf  ;;  %v1355_v36 = vadd.f32 %v3652_v15, %v1315_v24  ;;  %v1463_v49 = vsel %vm1405_vm2, %v3761_v35, -inf }
 0x103   : > { %1461 = vmax.xlane.f32.xlu0 %v1460_v21  ;;  %1458 = vmax.xlane.f32.xlu1 %v1457_v32  ;;  %v1004_v37 = vpop.f32.mrf.mxu0  ;;  %v1061_v38 = vpop.f32.mrf.mxu1 }
 0x104   : > { %v1314_v39 = vmul.f32 0.35355338, %v1004_v37  ;;  %v3764_v40 = vadd.f32 %v1369_v48, %v1353_v26  ;;  %v1316_v41 = vmul.f32 0.35355338, %v1061_v38  ;;  %v3766_v44 = vadd.f32 %v1369_v48, %v1355_v36 }
 0x105   : > { %v3113_v42 = vpop.f32.mrf.mxu0  ;;  %v3119_v47 = vpop.f32.mrf.mxu1 }
 0x106   : > { %v1354_v46 = vadd.f32 %v3667_v27, %v1314_v39  ;;  %v1466_v52 = vsel %vm1405_vm2, %v3764_v40, -inf  ;;  %v1356_v54 = vadd.f32 %v3672_v29, %v1316_v41  ;;  %v1472_v48 = vsel %vm1405_vm2, %v3766_v44, -inf }
 0x107   : > { %1464 = vmax.xlane.f32.xlu1 %v1463_v49  ;;  %1467 = vmax.xlane.f32.xlu0 %v1466_v52  ;;  %v1115_v56 = vpop.f32.mrf.mxu0  ;;  %v1172_v58 = vpop.f32.mrf.mxu1 }
 0x108   : > { %v1317_v59 = vmul.f32 0.35355338, %v1115_v56  ;;  %v3776_v63 = vadd.f32 %v1370_v8, %v1354_v46  ;;  %v1319_v4 = vmul.f32 0.35355338, %v1172_v58  ;;  %v3784_v14 = vadd.f32 %v1370_v8, %v1356_v54 }
 0x109   : > { %v3124_v6 = vpop.f32.mrf.mxu0  ;;  %v3130_v10 = vpop.f32.mrf.mxu1 }
 0x10a   : > { %v1357_v9 = vadd.f32 %v3609_v50, %v1317_v59  ;;  %v1469_v11 = vsel %vm1405_vm2, %v3776_v63, -inf  ;;  %v1359_v16 = vadd.f32 %v3614_v53, %v1319_v4  ;;  %v1372_v50 = vld [vmem:[%s4179_s4 + $0x38] sm:$0xff]  ;;  %v1475_v53 = vsel %vm1405_vm2, %v3784_v14, -inf }
 0x10b   : > { %1473 = vmax.xlane.f32.xlu0 %v1472_v48  ;;  %1470 = vmax.xlane.f32.xlu1 %v1469_v11  ;;  %v1118_v18 = vpop.f32.mrf.mxu0  ;;  %v1175_v19 = vpop.f32.mrf.mxu1 }
 0x10c   : > { %v1318_v21 = vmul.f32 0.35355338, %v1118_v18  ;;  %v3787_v24 = vadd.f32 %v1371_v62, %v1357_v9  ;;  %v1320_v25 = vmul.f32 0.35355338, %v1175_v19  ;;  %v3789_v30 = vadd.f32 %v1371_v62, %v1359_v16 }
 0x10d   : > { %v3125_v26 = vpop.f32.mrf.mxu0  ;;  %v3131_v32 = vpop.f32.mrf.mxu1 }
 0x10e   : > { %v1358_v8 = vadd.f32 %v3624_v61, %v1318_v21  ;;  %v1478_v36 = vsel %vm1405_vm2, %v3787_v24, -inf  ;;  %v1360_v37 = vadd.f32 %v3629_v1, %v1320_v25  ;;  %v1484_v42 = vsel %vm1405_vm2, %v3789_v30, -inf }
 0x10f   : > { %1476 = vmax.xlane.f32.xlu1 %v1475_v53  ;;  %1479 = vmax.xlane.f32.xlu0 %v1478_v36  ;;  %v1229_v38 = vpop.f32.mrf.mxu0  ;;  %v1286_v39 = vpop.f32.mrf.mxu1 }
 0x110   : > { %v1321_v41 = vmul.f32 0.35355338, %v1229_v38  ;;  %v3802_v46 = vadd.f32 %v1372_v50, %v1358_v8  ;;  %v1323_v61 = vmul.f32 0.35355338, %v1286_v39  ;;  %v3807_v56 = vadd.f32 %v1372_v50, %v1360_v37 }
 0x111   : > { %v3136_v47 = vpop.f32.mrf.mxu0  ;;  %v3142_v52 = vpop.f32.mrf.mxu1 }
 0x112   : > { %v1361_v49 = vadd.f32 %v3647_v13, %v1321_v41  ;;  %v1481_v54 = vsel %vm1405_vm2, %v3802_v46, -inf  ;;  %v1363_v1 = vadd.f32 %v3652_v15, %v1323_v61  ;;  %v1487_v16 = vsel %vm1405_vm2, %v3807_v56, -inf }
 0x113   : > { %1485 = vmax.xlane.f32.xlu0 %v1484_v42  ;;  %1482 = vmax.xlane.f32.xlu1 %v1481_v54  ;;  %v1232_v58 = vpop.f32.mrf.mxu0  ;;  %v1289_v59 = vpop.f32.mrf.mxu1 }
 0x114   : > { %v1322_v48 = vmul.f32 0.35355338, %v1232_v58  ;;  %v3810_v4 = vadd.f32 %v1371_v62, %v1361_v49  ;;  %v1324_v6 = vmul.f32 0.35355338, %v1289_v59  ;;  %v3812_v10 = vadd.f32 %v1371_v62, %v1363_v1 }
 0x115   : > { %v3137_v9 = vpop.f32.mrf.mxu0  ;;  %v3143_v11 = vpop.f32.mrf.mxu1 }
 0x116   : > { %v1362_v13 = vadd.f32 %v3667_v27, %v1322_v48  ;;  %v1490_v15 = vsel %vm1405_vm2, %v3810_v4, -inf  ;;  %v1364_v18 = vadd.f32 %v3672_v29, %v1324_v6  ;;  %v1496_v19 = vsel %vm1405_vm2, %v3812_v10, -inf }
 0x117   : > { %1488 = vmax.xlane.f32.xlu1 %v1487_v16  ;;  %1491 = vmax.xlane.f32.xlu0 %v1490_v15 }
 0x118   : > { %v3822_v21 = vadd.f32 %v1372_v50, %v1362_v13  ;;  %v3826_v27 = vadd.f32 %v1372_v50, %v1364_v18 }
 0x11a   : > { %v1493_v62 = vsel %vm1405_vm2, %v3822_v21, -inf  ;;  %v1499_v25 = vsel %vm1405_vm2, %v3826_v27, -inf }
 0x11b   : > { %1497 = vmax.xlane.f32.xlu0 %v1496_v19  ;;  %1494 = vmax.xlane.f32.xlu1 %v1493_v62 }
 0x11f   : > { %1500 = vmax.xlane.f32.xlu1 %v1499_v25 }
 0x168   : > { %v1408_v26 = vpop.xlane.xlu0 %1407  ;;  %v1414_v29 = vpop.xlane.xlu1 %1413 }
 0x169   : > { %v1502_v8 = vsub.f32 %v3631_v2, %v1408_v26  ;;  %v1504_v32 = vsub.f32 %v3633_v5, %v1414_v29 }
 0x16b   : > { %v1534_v53 = vmul.f32 1.442695, %v1502_v8  ;;  %v1538_v36 = vmul.f32 1.442695, %v1504_v32 }
 0x16c   : > { %v1411_v37 = vpop.xlane.xlu0 %1410  ;;  %v1417_v38 = vpop.xlane.xlu1 %1416 }
 0x16d   : > { %3298 = vpow2.f32 %v1534_v53  ;;  %v1503_v50 = vsub.f32 %v3654_v17, %v1411_v37  ;;  %v1505_v39 = vsub.f32 %v3656_v20, %v1417_v38 }
 0x16e   : > { %3300 = vpow2.f32 %v1538_v36 }
 0x16f   : > { %v1536_v41 = vmul.f32 1.442695, %v1503_v50  ;;  %v1540_v42 = vmul.f32 1.442695, %v1505_v39 }
 0x170   : > { %v1420_v61 = vpop.xlane.xlu0 %1419 }
 0x171   : > { %3302 = vpow2.f32 %v1536_v41  ;;  %v1506_v47 = vsub.f32 %v3674_v31, %v1420_v61 }
 0x172   : > { %3304 = vpow2.f32 %v1540_v42 }
 0x173   : > { %v1542_v2 = vmul.f32 1.442695, %v1506_v47 }
 0x174   : > { %v1426_v49 = vpop.xlane.xlu0 %1425  ;;  %v1423_v5 = vpop.xlane.xlu1 %1422 }
 0x175   : > { %3306 = vpow2.f32 %v1542_v2  ;;  %v1508_v52 = vsub.f32 %v3676_v34, %v1426_v49  ;;  %v1507_v54 = vsub.f32 %v3684_v43, %v1423_v5 }
 0x177   : > { %v1546_v1 = vmul.f32 1.442695, %v1508_v52  ;;  %v1544_v17 = vmul.f32 1.442695, %v1507_v54 }
 0x178   : > { %v1429_v58 = vpop.xlane.xlu1 %1428  ;;  %v1432_v20 = vpop.xlane.xlu0 %1431 }
 0x179   : > { %3308 = vpow2.f32 %v1546_v1  ;;  %v1509_v59 = vsub.f32 %v3692_v51, %v1429_v58  ;;  %v1510_v48 = vsub.f32 %v3695_v57, %v1432_v20 }
 0x17a   : > { %v3839_v6 = vpop.eup %3298  ;;  %3310 = vpow2.f32 %v1544_v17 }
 0x17b   : > { %v1548_v31 = vmul.f32 1.442695, %v1509_v59  ;;  %v1550_v9 = vmul.f32 1.442695, %v1510_v48  ;;  %v1598_v13 = vsel %vm1405_vm2, %v3839_v6, 0.0  ;;  %v3843_v34 = vpop.eup %3300 }
 0x17c   : > { %v1438_v43 = vpop.xlane.xlu0 %1437  ;;  %v1435_v11 = vpop.xlane.xlu1 %1434  ;;  %1599 = vadd.xlane.f32.xlu0 %v1598_v13  ;;  %v1604_v19 = vsel %vm1405_vm2, %v3843_v34, 0.0 }
 0x17d   : > { %3312 = vpow2.f32 %v1548_v31  ;;  %v1512_v16 = vsub.f32 %v3697_v60, %v1438_v43  ;;  %v1511_v51 = vsub.f32 %v3710_v12, %v1435_v11 }
 0x17e   : > { %v3847_v15 = vpop.eup %3302  ;;  %3314 = vpow2.f32 %v1550_v9 }
 0x17f   : > { %v1554_v57 = vmul.f32 1.442695, %v1512_v16  ;;  %v1552_v18 = vmul.f32 1.442695, %v1511_v51  ;;  %v1601_v62 = vsel %vm1405_vm2, %v3847_v15, 0.0  ;;  %v3853_v25 = vpop.eup %3304 }
 0x180   : > { %v1441_v26 = vpop.xlane.xlu1 %1440  ;;  %v1444_v29 = vpop.xlane.xlu0 %1443  ;;  %1605 = vadd.xlane.f32.xlu0 %v1604_v19  ;;  %1602 = vadd.xlane.f32.xlu1 %v1601_v62  ;;  %v1607_v37 = vsel %vm1405_vm2, %v3853_v25, 0.0 }
 0x181   : > { %3316 = vpow2.f32 %v1554_v57  ;;  %v1513_v60 = vsub.f32 %v3715_v22, %v1441_v26  ;;  %v1514_v12 = vsub.f32 %v3718_v28, %v1444_v29 }
 0x182   : > { %v3857_v8 = vpop.eup %3306  ;;  %3318 = vpow2.f32 %v1552_v18 }
 0x183   : > { %v1556_v32 = vmul.f32 1.442695, %v1513_v60  ;;  %v1558_v53 = vmul.f32 1.442695, %v1514_v12  ;;  %v1610_v36 = vsel %vm1405_vm2, %v3857_v8, 0.0 }
 0x184   : > { %v1450_v38 = vpop.xlane.xlu0 %1449  ;;  %v1447_v50 = vpop.xlane.xlu1 %1446  ;;  %1611 = vadd.xlane.f32.xlu0 %v1610_v36  ;;  %1608 = vadd.xlane.f32.xlu1 %v1607_v37 }
 0x185   : > { %3320 = vpow2.f32 %v1556_v32  ;;  %v1516_v22 = vsub.f32 %v3720_v33, %v1450_v38  ;;  %v1515_v28 = vsub.f32 %v3730_v45, %v1447_v50 }
 0x186   : > { %v3865_v39 = vpop.eup %3308  ;;  %3322 = vpow2.f32 %v1558_v53 }
 0x187   : > { %v3867_v41 = vpop.eup %3310  ;;  %v1562_v42 = vmul.f32 1.442695, %v1516_v22  ;;  %v1560_v61 = vmul.f32 1.442695, %v1515_v28  ;;  %v1616_v47 = vsel %vm1405_vm2, %v3865_v39, 0.0 }
 0x188   : > { %v1453_v2 = vpop.xlane.xlu1 %1452  ;;  %v1456_v49 = vpop.xlane.xlu0 %1455  ;;  %1617 = vadd.xlane.f32.xlu0 %v1616_v47  ;;  %v1613_v5 = vsel %vm1405_vm2, %v3867_v41, 0.0 }
 0x189   : > { %3324 = vpow2.f32 %v1562_v42  ;;  %v1517_v33 = vsub.f32 %v3738_v55, %v1453_v2  ;;  %v1518_v45 = vsub.f32 %v3741_v3, %v1456_v49  ;;  %1614 = vadd.xlane.f32.xlu1 %v1613_v5  ;;  %v3283_v2 = vld [vmem:[%s3917_s14 + $0x8] sm:$0xff]  }
 0x18a   : > { %v3875_v52 = vpop.eup %3312  ;;  %3326 = vpow2.f32 %v1560_v61  ;;  %v3282_v61 = vld [vmem:[%s3917_s14] sm:$0xff]   ;;  %3151 = vmatpush3.bf16.msra.mxu1 %v3283_v2 }
 0x18b   : > { %v3877_v54 = vpop.eup %3314  ;;  %v1564_v1 = vmul.f32 1.442695, %v1517_v33  ;;  %v1566_v17 = vmul.f32 1.442695, %v1518_v45  ;;  %v1619_v58 = vsel %vm1405_vm2, %v3875_v52, 0.0  ;;  %3145 = vmatpush3.bf16.msra.mxu0 %v3282_v61  ;;  %3162 = vmatprep.subr.bf16.mxu1 %v3434_v0 }
 0x18c   : > { %v1462_v20 = vpop.xlane.xlu0 %1461  ;;  %v1459_v59 = vpop.xlane.xlu1 %1458  ;;  %v1622_v48 = vsel %vm1405_vm2, %v3877_v54, 0.0  ;;  %3156 = vmatprep.subr.bf16.mxu0 %v3434_v0 }
 0x18d   : > { %3328 = vpow2.f32 %v1564_v1  ;;  %v1520_v55 = vsub.f32 %v3743_v7, %v1462_v20  ;;  %v1519_v3 = vsub.f32 %v3756_v23, %v1459_v59  ;;  %1623 = vadd.xlane.f32.xlu0 %v1622_v48  ;;  %1620 = vadd.xlane.f32.xlu1 %v1619_v58 }
 0x18e   : > { %v3885_v31 = vpop.eup %3316  ;;  %3330 = vpow2.f32 %v1566_v17 }
 0x18f   : > { %v3887_v9 = vpop.eup %3318  ;;  %v1570_v13 = vmul.f32 1.442695, %v1520_v55  ;;  %v1568_v43 = vmul.f32 1.442695, %v1519_v3  ;;  %v1628_v11 = vsel %vm1405_vm2, %v3885_v31, 0.0 }
 0x190   : > { %v1465_v16 = vpop.xlane.xlu1 %1464  ;;  %v1468_v51 = vpop.xlane.xlu0 %1467  ;;  %v1625_v57 = vsel %vm1405_vm2, %v3887_v9, 0.0 }
 0x191   : > { %3332 = vpow2.f32 %v1570_v13  ;;  %v1521_v7 = vsub.f32 %v3761_v35, %v1465_v16  ;;  %v1522_v23 = vsub.f32 %v3764_v40, %v1468_v51  ;;  %1629 = vadd.xlane.f32.xlu0 %v1628_v11  ;;  %1626 = vadd.xlane.f32.xlu1 %v1625_v57 }
 0x192   : > { %v3895_v18 = vpop.eup %3320  ;;  %3334 = vpow2.f32 %v1568_v43 }
 0x193   : > { %v3897_v19 = vpop.eup %3322  ;;  %v1572_v62 = vmul.f32 1.442695, %v1521_v7  ;;  %v1574_v26 = vmul.f32 1.442695, %v1522_v23  ;;  %v1631_v29 = vsel %vm1405_vm2, %v3895_v18, 0.0 }
 0x194   : > { %v1474_v60 = vpop.xlane.xlu0 %1473  ;;  %v1471_v12 = vpop.xlane.xlu1 %1470  ;;  %v1634_v35 = vsel %vm1405_vm2, %v3897_v19, 0.0 }
 0x195   : > { %3336 = vpow2.f32 %v1572_v62  ;;  %v1524_v40 = vsub.f32 %v3766_v44, %v1474_v60  ;;  %v1523_v32 = vsub.f32 %v3776_v63, %v1471_v12  ;;  %1635 = vadd.xlane.f32.xlu0 %v1634_v35  ;;  %1632 = vadd.xlane.f32.xlu1 %v1631_v29 }
 0x196   : > { %v3905_v53 = vpop.eup %3324  ;;  %3338 = vpow2.f32 %v1574_v26 }
 0x197   : > { %v3907_v36 = vpop.eup %3326  ;;  %v1578_v37 = vmul.f32 1.442695, %v1524_v40  ;;  %v1576_v38 = vmul.f32 1.442695, %v1523_v32  ;;  %v1640_v50 = vsel %vm1405_vm2, %v3905_v53, 0.0 }
 0x198   : > { %v1477_v22 = vpop.xlane.xlu1 %1476  ;;  %v1480_v28 = vpop.xlane.xlu0 %1479  ;;  %v1637_v42 = vsel %vm1405_vm2, %v3907_v36, 0.0 }
 0x199   : > { %3340 = vpow2.f32 %v1578_v37  ;;  %v1525_v44 = vsub.f32 %v3784_v14, %v1477_v22  ;;  %v1526_v63 = vsub.f32 %v3787_v24, %v1480_v28  ;;  %1641 = vadd.xlane.f32.xlu0 %v1640_v50  ;;  %1638 = vadd.xlane.f32.xlu1 %v1637_v42 }
 0x19a   : > { %v3922_v47 = vpop.eup %3328  ;;  %3342 = vpow2.f32 %v1576_v38 }
 0x19b   : > { %v3925_v49 = vpop.eup %3330  ;;  %v1580_v5 = vmul.f32 1.442695, %v1525_v44  ;;  %v1582_v33 = vmul.f32 1.442695, %v1526_v63  ;;  %v1643_v45 = vsel %vm1405_vm2, %v3922_v47, 0.0 }
 0x19c   : > { %v1486_v1 = vpop.xlane.xlu0 %1485  ;;  %v1483_v17 = vpop.xlane.xlu1 %1482  ;;  %v1646_v14 = vsel %vm1405_vm2, %v3925_v49, 0.0 }
 0x19d   : > { %3344 = vpow2.f32 %v1580_v5  ;;  %v1528_v24 = vsub.f32 %v3789_v30, %v1486_v1  ;;  %v1527_v58 = vsub.f32 %v3802_v46, %v1483_v17  ;;  %1647 = vadd.xlane.f32.xlu0 %v1646_v14  ;;  %1644 = vadd.xlane.f32.xlu1 %v1643_v45 }
 0x19e   : > { %v3934_v20 = vpop.eup %3332  ;;  %3346 = vpow2.f32 %v1582_v33 }
 0x19f   : > { %v3937_v59 = vpop.eup %3334  ;;  %v1586_v48 = vmul.f32 1.442695, %v1528_v24  ;;  %v1584_v55 = vmul.f32 1.442695, %v1527_v58  ;;  %v1652_v3 = vsel %vm1405_vm2, %v3934_v20, 0.0 }
 0x1a0   : > { %v1489_v13 = vpop.xlane.xlu1 %1488  ;;  %v1492_v43 = vpop.xlane.xlu0 %1491  ;;  %v1649_v30 = vsel %vm1405_vm2, %v3937_v59, 0.0 }
 0x1a1   : > { %3348 = vpow2.f32 %v1586_v48  ;;  %v1529_v46 = vsub.f32 %v3807_v56, %v1489_v13  ;;  %1653 = vadd.xlane.f32.xlu0 %v1652_v3  ;;  %v1530_v11 = vsub.f32 %v3810_v4, %v1492_v43  ;;  %1650 = vadd.xlane.f32.xlu1 %v1649_v30 }
 0x1a2   : > { %v3945_v16 = vpop.eup %3336  ;;  %3350 = vpow2.f32 %v1584_v55 }
 0x1a3   : > { %v3947_v51 = vpop.eup %3338  ;;  %v1588_v57 = vmul.f32 1.442695, %v1529_v46  ;;  %v1590_v7 = vmul.f32 1.442695, %v1530_v11  ;;  %v1655_v23 = vsel %vm1405_vm2, %v3945_v16, 0.0 }
 0x1a4   : > { %v1658_v62 = vsel %vm1405_vm2, %v3947_v51, 0.0  ;;  %v1498_v26 = vpop.xlane.xlu0 %1497  ;;  %v1495_v29 = vpop.xlane.xlu1 %1494 }
 0x1a5   : > { %3352 = vpow2.f32 %v1588_v57  ;;  %1659 = vadd.xlane.f32.xlu0 %v1658_v62  ;;  %v1532_v56 = vsub.f32 %v3812_v10, %v1498_v26  ;;  %1656 = vadd.xlane.f32.xlu1 %v1655_v23  ;;  %v1531_v4 = vsub.f32 %v3822_v21, %v1495_v29 }
 0x1a6   : > { %v3955_v60 = vpop.eup %3340  ;;  %3354 = vpow2.f32 %v1590_v7 }
 0x1a7   : > { %v3957_v12 = vpop.eup %3342  ;;  %v1594_v35 = vmul.f32 1.442695, %v1532_v56  ;;  %v1592_v40 = vmul.f32 1.442695, %v1531_v4  ;;  %v1664_v32 = vsel %vm1405_vm2, %v3955_v60, 0.0 }
 0x1a8   : > { %v1661_v37 = vsel %vm1405_vm2, %v3957_v12, 0.0  ;;  %v1501_v38 = vpop.xlane.xlu1 %1500 }
 0x1a9   : > { %3356 = vpow2.f32 %v1594_v35  ;;  %1665 = vadd.xlane.f32.xlu0 %v1664_v32  ;;  %1662 = vadd.xlane.f32.xlu1 %v1661_v37  ;;  %v1533_v10 = vsub.f32 %v3826_v27, %v1501_v38 }
 0x1aa   : > { %v3964_v21 = vpop.eup %3344  ;;  %3358 = vpow2.f32 %v1592_v40  ;;  %v3284_v40 = vld [vmem:[%s3917_s14 + $0x10] sm:$0xff]  }
 0x1ab   : > { %v3966_v50 = vpop.eup %3346  ;;  %v1596_v22 = vmul.f32 1.442695, %v1533_v10  ;;  %v1667_v28 = vsel %vm1405_vm2, %v3964_v21, 0.0 }
 0x1ac   : > { %v1670_v42 = vsel %vm1405_vm2, %v3966_v50, 0.0 }
 0x1ad   : > { %3360 = vpow2.f32 %v1596_v22  ;;  %1671 = vadd.xlane.f32.xlu0 %v1670_v42  ;;  %1668 = vadd.xlane.f32.xlu1 %v1667_v28 }
 0x1ae   : > { %v3972_v44 = vpop.eup %3348 }
 0x1af   : > { %v3974_v63 = vpop.eup %3350  ;;  %v1676_v27 = vsel %vm1405_vm2, %v3972_v44, 0.0 }
 0x1b0   : > { %v1673_v61 = vsel %vm1405_vm2, %v3974_v63, 0.0 }
 0x1b1   : > { %1677 = vadd.xlane.f32.xlu0 %v1676_v27  ;;  %1674 = vadd.xlane.f32.xlu1 %v1673_v61 }
 0x1b2   : > { %v3980_v2 = vpop.eup %3352 }
 0x1b3   : > { %v3982_v5 = vpop.eup %3354  ;;  %v1679_v33 = vsel %vm1405_vm2, %v3980_v2, 0.0 }
 0x1b4   : > { %v1682_v45 = vsel %vm1405_vm2, %v3982_v5, 0.0 }
 0x1b5   : > { %1683 = vadd.xlane.f32.xlu0 %v1682_v45  ;;  %1680 = vadd.xlane.f32.xlu1 %v1679_v33  ;;  %v3286_v45 = vld [vmem:[%s3917_s14 + $0x20] sm:$0xff]  }
 0x1b6   : > { %v3988_v1 = vpop.eup %3356 }
 0x1b7   : > { %v3990_v17 = vpop.eup %3358  ;;  %v1688_v14 = vsel %vm1405_vm2, %v3988_v1, 0.0 }
 0x1b8   : > { %v1685_v24 = vsel %vm1405_vm2, %v3990_v17, 0.0 }
 0x1b9   : > { %1689 = vadd.xlane.f32.xlu0 %v1688_v14  ;;  %1686 = vadd.xlane.f32.xlu1 %v1685_v24 }
 0x1ba   : > { %v3996_v58 = vpop.eup %3360 }
 0x1bb   : > { %v1691_v48 = vsel %vm1405_vm2, %v3996_v58, 0.0 }
 0x1bd   : > { %1692 = vadd.xlane.f32.xlu1 %v1691_v48 }
 0x205   : > { %v1600_v55 = vpop.xlane.xlu0 %1599 }
 0x206   : > { %3362 = vrcp.f32 %v1600_v55 }
 0x209   : > { %v1606_v3 = vpop.xlane.xlu0 %1605  ;;  %v1603_v13 = vpop.xlane.xlu1 %1602 }
 0x20a   : > { %3364 = vrcp.f32 %v1603_v13 }
 0x20b   : > { %3366 = vrcp.f32 %v1606_v3 }
 0x20d   : > { %v1612_v43 = vpop.xlane.xlu0 %1611  ;;  %v1609_v30 = vpop.xlane.xlu1 %1608 }
 0x20e   : > { %3368 = vrcp.f32 %v1609_v30 }
 0x20f   : > { %3370 = vrcp.f32 %v1612_v43  ;;  %v3287_v43 = vld [vmem:[%s3917_s14 + $0x28] sm:$0xff]  }
 0x211   : > { %v1618_v46 = vpop.xlane.xlu0 %1617 }
 0x212   : > { %v1615_v11 = vpop.xlane.xlu1 %1614 }
 0x213   : > { %3372 = vrcp.f32 %v1615_v11  ;;  %v3363_v57 = vpop.eup %3362 }
 0x214   : > { %3374 = vrcp.f32 %v1618_v46  ;;  %v1726_v26 = vmul.f32 %v3363_v57, %v3839_v6 }
 0x216   : > { %v1624_v7 = vpop.xlane.xlu0 %1623  ;;  %v1621_v23 = vpop.xlane.xlu1 %1620 }
 0x217   : > { %v3365_v62 = vpop.eup %3364  ;;  %3376 = vrcp.f32 %v1621_v23  ;;  %v3288_v23 = vld [vmem:[%s3917_s14 + $0x30] sm:$0xff]  }
 0x218   : > { %v1727_v29 = vmul.f32 %v3365_v62, %v3847_v15  ;;  %v3367_v56 = vpop.eup %3366  ;;  %3378 = vrcp.f32 %v1624_v7  ;;  %v3285_v15 = vld [vmem:[%s3917_s14 + $0x18] sm:$0xff]  }
 0x219   : > { %v1728_v38 = vmul.f32 %v3367_v56, %v3843_v34 }
 0x21a   : > { %v1630_v4 = vpop.xlane.xlu0 %1629  ;;  %v1627_v35 = vpop.xlane.xlu1 %1626  ;;  %v1758_v32 = vpack.c.bf16 %v1727_v29, %v1726_v26 }
 0x21b   : > { %v3369_v37 = vpop.eup %3368  ;;  %3380 = vrcp.f32 %v1627_v35  ;;  %v3289_v35 = vld [vmem:[%s3917_s14 + $0x38] sm:$0xff]  }
 0x21c   : > { %3147 = vmatmul.mubr.msk.bf16.vlgmr.msra.gmra.mxu0 %vm1405_vm2, %v1758_v32  ;;  %v1729_v10 = vmul.f32 %v3369_v37, %v3853_v25  ;;  %v3371_v22 = vpop.eup %3370  ;;  %3382 = vrcp.f32 %v1630_v4 }
 0x21d   : > { %3157 = vmatpush3.bf16.msra.mxu0 %v3284_v40  ;;  %3158 = vmatprep.mubr.msk.bf16.mxu0 %vm3435_vm0, %v3434_v0  ;;  %v1730_v34 = vmul.f32 %v3371_v22, %v3857_v8  ;;  %v3290_v22 = vld [vmem:[%s3917_s14 + $0x40] sm:$0xff]  }
 0x21e   : > { %v1636_v6 = vpop.xlane.xlu0 %1635  ;;  %v1633_v28 = vpop.xlane.xlu1 %1632  ;;  %v1759_v42 = vpack.c.bf16 %v1729_v10, %v1728_v38  ;;  %3168 = vmatprep.subr.bf16.mxu0 %v3434_v0 }
 0x21f   : > { %3384 = vrcp.f32 %v1633_v28 }
 0x220   : > { %v3373_v27 = vpop.eup %3372  ;;  %3153 = vmatmul.mubr.msk.bf16.vlgmr.msra.gmra.mxu1 %vm1405_vm2, %v1759_v42  ;;  %3386 = vrcp.f32 %v1636_v6 }
 0x221   : > { %v1731_v25 = vmul.f32 %v3373_v27, %v3867_v41  ;;  %3163 = vmatpush3.bf16.msra.mxu1 %v3285_v15  ;;  %3164 = vmatprep.mubr.msk.bf16.mxu1 %vm3435_vm0, %v3434_v0  ;;  %v3375_v14 = vpop.eup %3374 }
 0x222   : > { %v1642_v61 = vpop.xlane.xlu0 %1641  ;;  %v1639_v33 = vpop.xlane.xlu1 %1638  ;;  %3174 = vmatprep.subr.bf16.mxu1 %v3434_v0  ;;  %v1732_v55 = vmul.f32 %v3375_v14, %v3865_v39 }
 0x223   : > { %v1760_v24 = vpack.c.bf16 %v1731_v25, %v1730_v34  ;;  %3388 = vrcp.f32 %v1639_v33  ;;  %v3291_v34 = vld [vmem:[%s3917_s14 + $0x48] sm:$0xff]  }
 0x224   : > { %v3377_v48 = vpop.eup %3376  ;;  %3390 = vrcp.f32 %v1642_v61 }
 0x225   : > { %3159 = vmatmul.mubr.msk.bf16.vlgmr.msra.gmra.mxu0 %vm1405_vm2, %v1760_v24  ;;  %v1733_v3 = vmul.f32 %v3377_v48, %v3875_v52  ;;  %v3379_v13 = vpop.eup %3378  ;;  %v3292_v24 = vld [vmem:[%s3917_s14 + $0x50] sm:$0xff]  }
 0x226   : > { %v1648_v8 = vpop.xlane.xlu0 %1647  ;;  %v1645_v41 = vpop.xlane.xlu1 %1644  ;;  %3169 = vmatpush3.bf16.msra.mxu0 %v3286_v45  ;;  %3170 = vmatprep.mubr.msk.bf16.mxu0 %vm3435_vm0, %v3434_v0  ;;  %v1734_v39 = vmul.f32 %v3379_v13, %v3877_v54  ;;  %v3293_v13 = vld [vmem:[%s3917_s14 + $0x58] sm:$0xff]  }
 0x227   : > { %3180 = vmatprep.subr.bf16.mxu0 %v3434_v0  ;;  %3392 = vrcp.f32 %v1645_v41  ;;  %v1761_v30 = vpack.c.bf16 %v1733_v3, %v1732_v55 }
 0x228   : > { %v3381_v46 = vpop.eup %3380  ;;  %3394 = vrcp.f32 %v1648_v8 }
 0x229   : > { %3165 = vmatmul.mubr.msk.bf16.vlgmr.msra.gmra.mxu1 %vm1405_vm2, %v1761_v30  ;;  %v1735_v52 = vmul.f32 %v3381_v46, %v3887_v9  ;;  %v3383_v7 = vpop.eup %3382 }
 0x22a   : > { %v1654_v11 = vpop.xlane.xlu0 %1653  ;;  %v1651_v57 = vpop.xlane.xlu1 %1650  ;;  %3175 = vmatpush3.bf16.msra.mxu1 %v3287_v43  ;;  %3176 = vmatprep.mubr.msk.bf16.mxu1 %vm3435_vm0, %v3434_v0  ;;  %v1736_v54 = vmul.f32 %v3383_v7, %v3885_v31 }
 0x22b   : > { %3396 = vrcp.f32 %v1651_v57  ;;  %v1762_v62 = vpack.c.bf16 %v1735_v52, %v1734_v39  ;;  %3186 = vmatprep.subr.bf16.mxu1 %v3434_v0  ;;  %v3294_v39 = vld [vmem:[%s3917_s14 + $0x60] sm:$0xff]  }
 0x22c   : > { %v3385_v26 = vpop.eup %3384  ;;  %3398 = vrcp.f32 %v1654_v11 }
 0x22d   : > { %3171 = vmatmul.mubr.msk.bf16.vlgmr.msra.gmra.mxu0 %vm1405_vm2, %v1762_v62  ;;  %v1737_v9 = vmul.f32 %v3385_v26, %v3895_v18  ;;  %v3387_v4 = vpop.eup %3386  ;;  %v3295_v26 = vld [vmem:[%s3917_s14 + $0x68] sm:$0xff]  }
 0x22e   : > { %v1660_v29 = vpop.xlane.xlu0 %1659  ;;  %v1657_v56 = vpop.xlane.xlu1 %1656  ;;  %3181 = vmatpush3.bf16.msra.mxu0 %v3288_v23  ;;  %3182 = vmatprep.mubr.msk.bf16.mxu0 %vm3435_vm0, %v3434_v0  ;;  %v1738_v31 = vmul.f32 %v3387_v4, %v3897_v19 }
 0x22f   : > { %3400 = vrcp.f32 %v1657_v56  ;;  %v1763_v40 = vpack.c.bf16 %v1737_v9, %v1736_v54  ;;  %3192 = vmatprep.subr.bf16.mxu0 %v3434_v0 }
 0x230   : > { %v3389_v32 = vpop.eup %3388  ;;  %3402 = vrcp.f32 %v1660_v29 }
 0x231   : > { %3177 = vmatmul.mubr.msk.bf16.vlgmr.msra.gmra.mxu1 %vm1405_vm2, %v1763_v40  ;;  %v1739_v18 = vmul.f32 %v3389_v32, %v3907_v36  ;;  %v3391_v10 = vpop.eup %3390 }
 0x232   : > { %v1666_v37 = vpop.xlane.xlu0 %1665  ;;  %v1663_v38 = vpop.xlane.xlu1 %1662  ;;  %3187 = vmatpush3.bf16.msra.mxu1 %v3289_v35  ;;  %3188 = vmatprep.mubr.msk.bf16.mxu1 %vm3435_vm0, %v3434_v0  ;;  %v1740_v19 = vmul.f32 %v3391_v10, %v3905_v53 }
 0x233   : > { %3404 = vrcp.f32 %v1663_v38  ;;  %v1764_v6 = vpack.c.bf16 %v1739_v18, %v1738_v31  ;;  %3198 = vmatprep.subr.bf16.mxu1 %v3434_v0 }
 0x234   : > { %v3393_v28 = vpop.eup %3392  ;;  %3406 = vrcp.f32 %v1666_v37 }
 0x235   : > { %3183 = vmatmul.mubr.msk.bf16.vlgmr.msra.gmra.mxu0 %vm1405_vm2, %v1764_v6  ;;  %v1741_v36 = vmul.f32 %v3393_v28, %v3922_v47  ;;  %v3395_v27 = vpop.eup %3394 }
 0x236   : > { %v1672_v15 = vpop.xlane.xlu0 %1671  ;;  %v1669_v42 = vpop.xlane.xlu1 %1668  ;;  %3193 = vmatpush3.bf16.msra.mxu0 %v3290_v22  ;;  %3194 = vmatprep.mubr.msk.bf16.mxu0 %vm3435_vm0, %v3434_v0  ;;  %v1742_v53 = vmul.f32 %v3395_v27, %v3925_v49 }
 0x237   : > { %3408 = vrcp.f32 %v1669_v42  ;;  %v1765_v25 = vpack.c.bf16 %v1741_v36, %v1740_v19  ;;  %3204 = vmatprep.subr.bf16.mxu0 %v3434_v0 }
 0x238   : > { %v3397_v61 = vpop.eup %3396  ;;  %3410 = vrcp.f32 %v1672_v15 }
 0x239   : > { %3189 = vmatmul.mubr.msk.bf16.vlgmr.msra.gmra.mxu1 %vm1405_vm2, %v1765_v25  ;;  %v1743_v47 = vmul.f32 %v3397_v61, %v3937_v59  ;;  %v3399_v14 = vpop.eup %3398 }
 0x23a   : > { %v1678_v33 = vpop.xlane.xlu0 %1677  ;;  %v1675_v45 = vpop.xlane.xlu1 %1674  ;;  %3199 = vmatpush3.bf16.msra.mxu1 %v3291_v34  ;;  %3200 = vmatprep.mubr.msk.bf16.mxu1 %vm3435_vm0, %v3434_v0  ;;  %v1744_v49 = vmul.f32 %v3399_v14, %v3934_v20 }
 0x23b   : > { %3412 = vrcp.f32 %v1675_v45  ;;  %v1766_v48 = vpack.c.bf16 %v1743_v47, %v1742_v53  ;;  %3210 = vmatprep.subr.bf16.mxu1 %v3434_v0 }
 0x23c   : > { %v3401_v8 = vpop.eup %3400  ;;  %3414 = vrcp.f32 %v1678_v33 }
 0x23d   : > { %3195 = vmatmul.mubr.msk.bf16.vlgmr.msra.gmra.mxu0 %vm1405_vm2, %v1766_v48  ;;  %v1745_v59 = vmul.f32 %v3401_v8, %v3945_v16  ;;  %v3403_v3 = vpop.eup %3402 }
 0x23e   : > { %v1684_v41 = vpop.xlane.xlu0 %1683  ;;  %v1681_v55 = vpop.xlane.xlu1 %1680  ;;  %3205 = vmatpush3.bf16.msra.mxu0 %v3292_v24  ;;  %3206 = vmatprep.mubr.msk.bf16.mxu0 %vm3435_vm0, %v3434_v0  ;;  %v1746_v20 = vmul.f32 %v3403_v3, %v3947_v51 }
 0x23f   : > { %3416 = vrcp.f32 %v1681_v55  ;;  %v1767_v43 = vpack.c.bf16 %v1745_v59, %v1744_v49  ;;  %3216 = vmatprep.subr.bf16.mxu0 %v3434_v0 }
 0x240   : > { %v3405_v30 = vpop.eup %3404  ;;  %3418 = vrcp.f32 %v1684_v41 }
 0x241   : > { %3201 = vmatmul.mubr.msk.bf16.vlgmr.msra.gmra.mxu1 %vm1405_vm2, %v1767_v43  ;;  %v1747_v16 = vmul.f32 %v3405_v30, %v3957_v12  ;;  %v3407_v57 = vpop.eup %3406 }
 0x242   : > { %v1690_v46 = vpop.xlane.xlu0 %1689  ;;  %v1687_v11 = vpop.xlane.xlu1 %1686  ;;  %3211 = vmatpush3.bf16.msra.mxu1 %v3293_v13  ;;  %3212 = vmatprep.mubr.msk.bf16.mxu1 %vm3435_vm0, %v3434_v0  ;;  %v1748_v51 = vmul.f32 %v3407_v57, %v3955_v60 }
 0x243   : > { %3420 = vrcp.f32 %v1687_v11  ;;  %v1768_v52 = vpack.c.bf16 %v1747_v16, %v1746_v20  ;;  %3222 = vmatprep.subr.bf16.mxu1 %v3434_v0 }
 0x244   : > { %v3409_v7 = vpop.eup %3408  ;;  %3422 = vrcp.f32 %v1690_v46 }
 0x245   : > { %3207 = vmatmul.mubr.msk.bf16.vlgmr.msra.gmra.mxu0 %vm1405_vm2, %v1768_v52  ;;  %v1749_v12 = vmul.f32 %v3409_v7, %v3964_v21  ;;  %v3411_v62 = vpop.eup %3410  ;;  %v3296_v21 = vld [vmem:[%s3917_s14 + $0x70] sm:$0xff]  }
 0x246   : > { %v1693_v23 = vpop.xlane.xlu1 %1692  ;;  %3217 = vmatpush3.bf16.msra.mxu0 %v3294_v39  ;;  %3218 = vmatprep.mubr.msk.bf16.mxu0 %vm3435_vm0, %v3434_v0  ;;  %v1750_v54 = vmul.f32 %v3411_v62, %v3966_v50  ;;  %v3297_v50 = vld [vmem:[%s3917_s14 + $0x78] sm:$0xff]  }
 0x247   : > { %3424 = vrcp.f32 %v1693_v23  ;;  %v1769_v29 = vpack.c.bf16 %v1749_v12, %v1748_v51  ;;  %3228 = vmatprep.subr.bf16.mxu0 %v3434_v0 }
 0x248   : > { %v3413_v56 = vpop.eup %3412 }
 0x249   : > { %3213 = vmatmul.mubr.msk.bf16.vlgmr.msra.gmra.mxu1 %vm1405_vm2, %v1769_v29  ;;  %v1751_v60 = vmul.f32 %v3413_v56, %v3974_v63  ;;  %v3415_v9 = vpop.eup %3414 }
 0x24a   : > { %3223 = vmatpush3.bf16.msra.mxu1 %v3295_v26  ;;  %3224 = vmatprep.mubr.msk.bf16.mxu1 %vm3435_vm0, %v3434_v0  ;;  %v1752_v40 = vmul.f32 %v3415_v9, %v3972_v44 }
 0x24b   : > { %v1770_v4 = vpack.c.bf16 %v1751_v60, %v1750_v54  ;;  %3234 = vmatprep.subr.bf16.mxu1 %v3434_v0 }
 0x24c   : > { %v3417_v35 = vpop.eup %3416 }
 0x24d   : > { %3219 = vmatmul.mubr.msk.bf16.vlgmr.msra.gmra.mxu0 %vm1405_vm2, %v1770_v4  ;;  %v1753_v32 = vmul.f32 %v3417_v35, %v3980_v2  ;;  %v3419_v37 = vpop.eup %3418 }
 0x24e   : > { %3229 = vmatpush3.bf16.msra.mxu0 %v3296_v21  ;;  %3230 = vmatprep.mubr.msk.bf16.mxu0 %vm3435_vm0, %v3434_v0  ;;  %v1754_v18 = vmul.f32 %v3419_v37, %v3982_v5 }
 0x24f   : > { %v1771_v63 = vpack.c.bf16 %v1753_v32, %v1752_v40 }
 0x250   : > { %v3421_v38 = vpop.eup %3420 }
 0x251   : > { %v3423_v31 = vpop.eup %3422  ;;  %3225 = vmatmul.mubr.msk.bf16.vlgmr.msra.gmra.mxu1 %vm1405_vm2, %v1771_v63  ;;  %v1755_v10 = vmul.f32 %v3421_v38, %v3990_v17 }
 0x252   : > { %3235 = vmatpush3.bf16.msra.mxu1 %v3297_v50  ;;  %3236 = vmatprep.mubr.msk.bf16.mxu1 %vm3435_vm0, %v3434_v0  ;;  %v1756_v22 = vmul.f32 %v3423_v31, %v3988_v1 }
 0x253   : > { %v1772_v2 = vpack.c.bf16 %v1755_v10, %v1754_v18 }
 0x254   : > { %v3425_v44 = vpop.eup %3424 }
 0x255   : > { %v1757_v6 = vmul.f32 %v3425_v44, %v3996_v58  ;;  %3231 = vmatmul.mubr.msk.bf16.vlgmr.msra.gmra.mxu0 %vm1405_vm2, %v1772_v2 }
 0x257   : > { %v1773_v28 = vpack.c.bf16 %v1757_v6, %v1756_v22 }
 0x259   : > { %3237 = vmatmul.mubr.msk.bf16.vlgmr.msra.gmra.mxu1 %vm1405_vm2, %v1773_v28 }
 0x2dc   : > { %v1817_v0 = vpop.f32.mrf.mxu0 }
 0x2dd   : > { %v2952_v5 = vpack.c.bf16 %v1817_v0, %v1817_v0 }
 0x2de   : > { %v3148_v17 = vpop.f32.mrf.mxu0 }
 0x2df   : > { %2703 = vst.msk [vmem:[%s4106_s17] sm:$0xf] %vm2702_vm3, %v2952_v5 }
 0x2e0   : > { %v1820_v1 = vpop.f32.mrf.mxu0  ;;  %v1867_v58 = vpop.f32.mrf.mxu1 }
 0x2e1   : > { %v2953_v15 = vpack.c.bf16 %v1820_v1, %v1820_v1  ;;  %v2954_v42 = vpack.c.bf16 %v1867_v58, %v1867_v58 }
 0x2e2   : > { %v3149_v19 = vpop.f32.mrf.mxu0  ;;  %v3154_v36 = vpop.f32.mrf.mxu1 }
 0x2e3   : > { %2704 = vst.msk [vmem:[%s4106_s17 + $0x4] sm:$0xf] %vm2702_vm3, %v2953_v15  ;;  %2705 = vst.msk [vmem:[%s4106_s17 + $0x8] sm:$0xf] %vm2702_vm3, %v2954_v42 }
 0x2e4   : > { %v1870_v27 = vpop.f32.mrf.mxu1 }
 0x2e5   : > { %v1917_v34 = vpop.f32.mrf.mxu0  ;;  %v2955_v25 = vpack.c.bf16 %v1870_v27, %v1870_v27 }
 0x2e6   : > { %v2956_v61 = vpack.c.bf16 %v1917_v34, %v1917_v34  ;;  %v3155_v33 = vpop.f32.mrf.mxu1 }
 0x2e7   : > { %v3160_v45 = vpop.f32.mrf.mxu0  ;;  %2706 = vst.msk [vmem:[%s4106_s17 + $0xc] sm:$0xf] %vm2702_vm3, %v2955_v25 }
 0x2e8   : > { %2707 = vst.msk [vmem:[%s4106_s17 + $0x10] sm:$0xf] %vm2702_vm3, %v2956_v61 }
 0x2e9   : > { %v1920_v53 = vpop.f32.mrf.mxu0  ;;  %v1967_v14 = vpop.f32.mrf.mxu1 }
 0x2ea   : > { %v2957_v47 = vpack.c.bf16 %v1920_v53, %v1920_v53  ;;  %v2958_v24 = vpack.c.bf16 %v1967_v14, %v1967_v14 }
 0x2eb   : > { %v3161_v48 = vpop.f32.mrf.mxu0  ;;  %v3166_v8 = vpop.f32.mrf.mxu1 }
 0x2ec   : > { %2708 = vst.msk [vmem:[%s4106_s17 + $0x14] sm:$0xf] %vm2702_vm3, %v2957_v47  ;;  %2709 = vst.msk [vmem:[%s4106_s17 + $0x18] sm:$0xf] %vm2702_vm3, %v2958_v24 }
 0x2ed   : > { %v1970_v41 = vpop.f32.mrf.mxu1  ;;  %v2017_v55 = vpop.f32.mrf.mxu0 }
 0x2ee   : > { %v2959_v49 = vpack.c.bf16 %v1970_v41, %v1970_v41  ;;  %v2960_v59 = vpack.c.bf16 %v2017_v55, %v2017_v55 }
 0x2ef   : > { %v3167_v3 = vpop.f32.mrf.mxu1  ;;  %v3172_v13 = vpop.f32.mrf.mxu0 }
 0x2f0   : > { %2710 = vst.msk [vmem:[%s4106_s17 + $0x1c] sm:$0xf] %vm2702_vm3, %v2959_v49  ;;  %2711 = vst.msk [vmem:[%s4106_s17 + $0x20] sm:$0xf] %vm2702_vm3, %v2960_v59 }
 0x2f1   : > { %v2020_v43 = vpop.f32.mrf.mxu0  ;;  %v2067_v30 = vpop.f32.mrf.mxu1 }
 0x2f2   : > { %v2961_v46 = vpack.c.bf16 %v2020_v43, %v2020_v43  ;;  %v2962_v11 = vpack.c.bf16 %v2067_v30, %v2067_v30 }
 0x2f3   : > { %v3173_v20 = vpop.f32.mrf.mxu0  ;;  %v3178_v16 = vpop.f32.mrf.mxu1 }
 0x2f4   : > { %2712 = vst.msk [vmem:[%s4106_s17 + $0x24] sm:$0xf] %vm2702_vm3, %v2961_v46  ;;  %2713 = vst.msk [vmem:[%s4106_s17 + $0x28] sm:$0xf] %vm2702_vm3, %v2962_v11 }
 0x2f5   : > { %v2070_v57 = vpop.f32.mrf.mxu1  ;;  %v2117_v39 = vpop.f32.mrf.mxu0 }
 0x2f6   : > { %v2963_v52 = vpack.c.bf16 %v2070_v57, %v2070_v57  ;;  %v2964_v7 = vpack.c.bf16 %v2117_v39, %v2117_v39 }
 0x2f7   : > { %v3179_v23 = vpop.f32.mrf.mxu1  ;;  %v3184_v51 = vpop.f32.mrf.mxu0 }
 0x2f8   : > { %2714 = vst.msk [vmem:[%s4106_s17 + $0x2c] sm:$0xf] %vm2702_vm3, %v2963_v52  ;;  %2715 = vst.msk [vmem:[%s4106_s17 + $0x30] sm:$0xf] %vm2702_vm3, %v2964_v7 }
 0x2f9   : > { %v2120_v12 = vpop.f32.mrf.mxu0  ;;  %v2167_v62 = vpop.f32.mrf.mxu1 }
 0x2fa   : > { %v2965_v26 = vpack.c.bf16 %v2120_v12, %v2120_v12  ;;  %v2966_v29 = vpack.c.bf16 %v2167_v62, %v2167_v62 }
 0x2fb   : > { %v3185_v56 = vpop.f32.mrf.mxu0  ;;  %v3190_v54 = vpop.f32.mrf.mxu1 }
 0x2fc   : > { %2716 = vst.msk [vmem:[%s4106_s17 + $0x34] sm:$0xf] %vm2702_vm3, %v2965_v26  ;;  %2717 = vst.msk [vmem:[%s4106_s17 + $0x38] sm:$0xf] %vm2702_vm3, %v2966_v29 }
 0x2fd   : > { %v2170_v60 = vpop.f32.mrf.mxu1  ;;  %v2217_v9 = vpop.f32.mrf.mxu0 }
 0x2fe   : > { %v2967_v21 = vpack.c.bf16 %v2170_v60, %v2170_v60  ;;  %v2968_v4 = vpack.c.bf16 %v2217_v9, %v2217_v9 }
 0x2ff   : > { %v3191_v35 = vpop.f32.mrf.mxu1  ;;  %v3196_v40 = vpop.f32.mrf.mxu0 }
 0x300   : > { %2718 = vst.msk [vmem:[%s4106_s17 + $0x3c] sm:$0xf] %vm2702_vm3, %v2967_v21  ;;  %2719 = vst.msk [vmem:[%s4106_s17 + $0x40] sm:$0xf] %vm2702_vm3, %v2968_v4 }
 0x301   : > { %v2220_v32 = vpop.f32.mrf.mxu0  ;;  %v2267_v37 = vpop.f32.mrf.mxu1 }
 0x302   : > { %v2969_v50 = vpack.c.bf16 %v2220_v32, %v2220_v32  ;;  %v2970_v63 = vpack.c.bf16 %v2267_v37, %v2267_v37 }
 0x303   : > { %v3197_v38 = vpop.f32.mrf.mxu0  ;;  %v3202_v31 = vpop.f32.mrf.mxu1 }
 0x304   : > { %2720 = vst.msk [vmem:[%s4106_s17 + $0x44] sm:$0xf] %vm2702_vm3, %v2969_v50  ;;  %2721 = vst.msk [vmem:[%s4106_s17 + $0x48] sm:$0xf] %vm2702_vm3, %v2970_v63 }
 0x305   : > { %v2270_v18 = vpop.f32.mrf.mxu1  ;;  %v2317_v10 = vpop.f32.mrf.mxu0 }
 0x306   : > { %v2971_v44 = vpack.c.bf16 %v2270_v18, %v2270_v18  ;;  %v2972_v2 = vpack.c.bf16 %v2317_v10, %v2317_v10 }
 0x307   : > { %v3203_v22 = vpop.f32.mrf.mxu1  ;;  %v3208_v6 = vpop.f32.mrf.mxu0 }
 0x308   : > { %2722 = vst.msk [vmem:[%s4106_s17 + $0x4c] sm:$0xf] %vm2702_vm3, %v2971_v44  ;;  %2723 = vst.msk [vmem:[%s4106_s17 + $0x50] sm:$0xf] %vm2702_vm3, %v2972_v2 }
 0x309   : > { %v2320_v28 = vpop.f32.mrf.mxu0  ;;  %v2367_v0 = vpop.f32.mrf.mxu1 }
 0x30a   : > { %v2973_v5 = vpack.c.bf16 %v2320_v28, %v2320_v28  ;;  %v2974_v17 = vpack.c.bf16 %v2367_v0, %v2367_v0 }
 0x30b   : > { %v3209_v1 = vpop.f32.mrf.mxu0  ;;  %v3214_v58 = vpop.f32.mrf.mxu1 }
 0x30c   : > { %2724 = vst.msk [vmem:[%s4106_s17 + $0x54] sm:$0xf] %vm2702_vm3, %v2973_v5  ;;  %2725 = vst.msk [vmem:[%s4106_s17 + $0x58] sm:$0xf] %vm2702_vm3, %v2974_v17 }
 0x30d   : > { %v2370_v15 = vpop.f32.mrf.mxu1  ;;  %v2417_v42 = vpop.f32.mrf.mxu0 }
 0x30e   : > { %v2975_v19 = vpack.c.bf16 %v2370_v15, %v2370_v15  ;;  %v2976_v36 = vpack.c.bf16 %v2417_v42, %v2417_v42 }
 0x30f   : > { %v3215_v27 = vpop.f32.mrf.mxu1  ;;  %v3220_v34 = vpop.f32.mrf.mxu0 }
 0x310   : > { %2726 = vst.msk [vmem:[%s4106_s17 + $0x5c] sm:$0xf] %vm2702_vm3, %v2975_v19  ;;  %2727 = vst.msk [vmem:[%s4106_s17 + $0x60] sm:$0xf] %vm2702_vm3, %v2976_v36 }
 0x311   : > { %v2420_v25 = vpop.f32.mrf.mxu0  ;;  %v2467_v61 = vpop.f32.mrf.mxu1 }
 0x312   : > { %v2977_v33 = vpack.c.bf16 %v2420_v25, %v2420_v25  ;;  %v2978_v45 = vpack.c.bf16 %v2467_v61, %v2467_v61 }
 0x313   : > { %v3221_v53 = vpop.f32.mrf.mxu0  ;;  %v3226_v47 = vpop.f32.mrf.mxu1 }
 0x314   : > { %2728 = vst.msk [vmem:[%s4106_s17 + $0x64] sm:$0xf] %vm2702_vm3, %v2977_v33  ;;  %2729 = vst.msk [vmem:[%s4106_s17 + $0x68] sm:$0xf] %vm2702_vm3, %v2978_v45 }
 0x315   : > { %v2470_v14 = vpop.f32.mrf.mxu1  ;;  %v2517_v24 = vpop.f32.mrf.mxu0 }
 0x316   : > { %v2979_v48 = vpack.c.bf16 %v2470_v14, %v2470_v14  ;;  %v2980_v8 = vpack.c.bf16 %v2517_v24, %v2517_v24 }
 0x317   : > { %v3227_v41 = vpop.f32.mrf.mxu1  ;;  %v3232_v55 = vpop.f32.mrf.mxu0 }
 0x318   : > { %2730 = vst.msk [vmem:[%s4106_s17 + $0x6c] sm:$0xf] %vm2702_vm3, %v2979_v48  ;;  %2731 = vst.msk [vmem:[%s4106_s17 + $0x70] sm:$0xf] %vm2702_vm3, %v2980_v8 }
 0x319   : > { %v2520_v49 = vpop.f32.mrf.mxu0  ;;  %v2567_v59 = vpop.f32.mrf.mxu1 }
 0x31a   : > { %v2981_v3 = vpack.c.bf16 %v2520_v49, %v2520_v49  ;;  %v2982_v13 = vpack.c.bf16 %v2567_v59, %v2567_v59 }
 0x31b   : > { %v3233_v43 = vpop.f32.mrf.mxu0  ;;  %v3238_v30 = vpop.f32.mrf.mxu1 }
 0x31c   : > { %2732 = vst.msk [vmem:[%s4106_s17 + $0x74] sm:$0xf] %vm2702_vm3, %v2981_v3  ;;  %2733 = vst.msk [vmem:[%s4106_s17 + $0x78] sm:$0xf] %vm2702_vm3, %v2982_v13 }
 0x31d   : > { %v2570_v46 = vpop.f32.mrf.mxu1 }
 0x31e   : > { %v2983_v11 = vpack.c.bf16 %v2570_v46, %v2570_v46 }
 0x31f   : > { %v3239_v20 = vpop.f32.mrf.mxu1 }
 0x320   : > { %2734 = vst.msk [vmem:[%s4106_s17 + $0x7c] sm:$0xf] %vm2702_vm3, %v2983_v11 }
 0x321 PF: > { %s15_s18 = sadd.s32 1, %s3432_s18  }
 0x322   : > { %p12_p4 = scmp.ge.s32.totalorder %s15_s18, 4  }
 0x324   :  { %14 = sbr.rel (!%p12_p4) target bundleno = 1 (0x1), region = 76 }

// kernel: _lambda_.5
= control target key start
LH: loop header
LB: loop body
LE: loop exit
PB: predicated region body
PF: predicated region fallthrough
CT: control target
= control target key end

     0   :  { %vm115_vm0 = vcmask 261120   ;;  %s2511_s2 = inlined_call_operand.vmem [shape: bf16[32,32], index: 2, kind: input, shape index: {}]   ;;  %s2512_s1 = inlined_call_operand.vmem [shape: bf16[128,32], index: 1, kind: input, shape index: {}]   ;;  %s2513_s3 = inlined_call_operand.vmem [shape: f32[1,32], index: 3, kind: input, shape index: {}]   ;;  %s2514_s0 = inlined_call_operand.vmem [shape: f32[128,32], index: 0, kind: input, shape index: {}]   ;;  %s2515_s6 = inlined_call_operand.vmem [shape: bf16[32,128], index: 6, kind: input, shape index: {}]   ;;  %s2516_s4 = inlined_call_operand.vmem [shape: f32[1,32], index: 4, kind: input, shape index: {}]   ;;  %s2517_s5 = inlined_call_operand.vmem [shape: f32[1,32], index: 5, kind: input, shape index: {}]   ;;  %s2518_s8 = inlined_call_operand.vmem [shape: bf16[128,32], index: 8, kind: input, shape index: {}]   ;;  %s2519_s7 = inlined_call_operand.vmem [shape: f32[1,128], index: 7, kind: input, shape index: {}]   ;;  %s2520_s9 = inlined_call_operand.vmem [shape: f32[1,32], index: 9, kind: input, shape index: {}]   ;;  %s2521_s10 = inlined_call_operand.vmem [shape: f32[128,32], index: 10, kind: output, shape index: {}]  }
   0x1   :  { %v1486_v0 = vld [vmem:[%s2511_s2 + $0x8] sm:$0xff]   ;;  %v1487_v1 = vld [vmem:[%s2511_s2] sm:$0xff]   ;;  %v1490_v4 = vld [vmem:[%s2512_s1 + $0x10] sm:$0xff]  }
   0x2   :  { %1397 = vmatprep.subr.bf16.mxu0 %v1486_v0  ;;  %v1488_v2 = vld [vmem:[%s2512_s1] sm:$0xff]   ;;  %v1489_v3 = vld [vmem:[%s2512_s1 + $0x8] sm:$0xff]   ;;  %v1491_v5 = vld [vmem:[%s2512_s1 + $0x18] sm:$0xff]  }
   0x3   :  { %1398 = vmatpush3.bf16.msra.mxu0 %v1486_v0  ;;  %1401 = vmatprep.mubr.msk.bf16.mxu0 %vm115_vm0, %v1488_v2  ;;  %v1492_v6 = vld [vmem:[%s2512_s1 + $0x20] sm:$0xff]   ;;  %v1493_v7 = vld [vmem:[%s2512_s1 + $0x28] sm:$0xff]   ;;  %v1494_v8 = vld [vmem:[%s2512_s1 + $0x30] sm:$0xff]  }
   0x4   :  { %1399 = vmatprep.subr.bf16.mxu0 %v1487_v1  ;;  %v1495_v9 = vld [vmem:[%s2512_s1 + $0x38] sm:$0xff]   ;;  %v1699_v10 = vld [vmem:[%s2513_s3] ss:$0 sm:$0xff]  ;;  %v239_v12 = vld [vmem:[%s2514_s0 + $0x10] sm:$0xff] }
   0x5   :  { %v237_v15 = vld [vmem:[%s2514_s0] sm:$0xff]  ;;  %v240_v19 = vld [vmem:[%s2514_s0 + $0x18] sm:$0xff]  ;;  %v238_v24 = vld [vmem:[%s2514_s0 + $0x8] sm:$0xff] }
   0x6   :  { %v241_v33 = vld [vmem:[%s2514_s0 + $0x20] sm:$0xff]  ;;  %v243_v34 = vld [vmem:[%s2514_s0 + $0x30] sm:$0xff]  ;;  %v242_v41 = vld [vmem:[%s2514_s0 + $0x28] sm:$0xff] }
   0x7   :  { %1400 = vmatpush3.bf16.msra.mxu0 %v1487_v1  ;;  %v244_v45 = vld [vmem:[%s2514_s0 + $0x38] sm:$0xff]  ;;  %v245_v49 = vld [vmem:[%s2514_s0 + $0x40] sm:$0xff]  ;;  %v247_v55 = vld [vmem:[%s2514_s0 + $0x50] sm:$0xff] }
   0x8   :  { %v246_v60 = vld [vmem:[%s2514_s0 + $0x48] sm:$0xff]  ;;  %v248_v62 = vld [vmem:[%s2514_s0 + $0x58] sm:$0xff] }
   0xa   :  { %1402 = vmatmul.mubr.msk.bf16.vlgmr.msra.gmra.mxu0 %vm115_vm0, %v1489_v3 }
   0xb   :  { %1405 = vmatprep.mubr.msk.bf16.mxu0 %vm115_vm0, %v1490_v4 }
  0x12   :  { %1406 = vmatmul.mubr.msk.bf16.gmra.mxu0 %vm115_vm0, %v1491_v5 }
  0x13   :  { %1409 = vmatprep.mubr.msk.bf16.mxu0 %vm115_vm0, %v1492_v6  ;;  %v249_v6 = vld [vmem:[%s2514_s0 + $0x60] sm:$0xff] }
  0x1a   :  { %1410 = vmatmul.mubr.msk.bf16.gmra.mxu0 %vm115_vm0, %v1493_v7 }
  0x1b   :  { %1413 = vmatprep.mubr.msk.bf16.mxu0 %vm115_vm0, %v1494_v8 }
  0x22   :  { %1414 = vmatmul.mubr.msk.bf16.gmra.mxu0 %vm115_vm0, %v1495_v9 }
  0xca   :  { %v1403_v11 = vpop.f32.mrf.mxu0 }
  0xcb   :  { %v183_v13 = vadd.f32 %v1403_v11, %v1699_v10 }
  0xcc   :  { %v174_v14 = vpop.f32.mrf.mxu0 }
  0xcd   :  { %v1708_v16 = vadd.f32 %v239_v12, %v183_v13  ;;  %v175_v17 = vadd.f32 %v1699_v10, %v174_v14  ;;  %v251_v12 = vld [vmem:[%s2514_s0 + $0x70] sm:$0xff] }
  0xce   :  { %v1404_v18 = vpop.f32.mrf.mxu0 }
  0xcf   :  { %v1714_v20 = vadd.f32 %v237_v15, %v175_v17  ;;  %v186_v21 = vadd.f32 %v1404_v18, %v1699_v10  ;;  %v275_v22 = vsel %vm115_vm0, %v1708_v16, 0.0  ;;  %v250_v17 = vld [vmem:[%s2514_s0 + $0x68] sm:$0xff] }
  0xd0   :  { %v177_v23 = vpop.f32.mrf.mxu0  ;;  %276 = vadd.xlane.f32.xlu1 %v275_v22 }
  0xd1   :  { %v1722_v25 = vadd.f32 %v240_v19, %v186_v21  ;;  %v178_v26 = vadd.f32 %v1699_v10, %v177_v23  ;;  %v269_v27 = vsel %vm115_vm0, %v1714_v20, 0.0 }
  0xd2   :  { %v1407_v28 = vpop.f32.mrf.mxu0  ;;  %270 = vadd.xlane.f32.xlu0 %v269_v27 }
  0xd3   :  { %v1727_v29 = vadd.f32 %v238_v24, %v178_v26  ;;  %v278_v30 = vsel %vm115_vm0, %v1722_v25, 0.0  ;;  %v199_v31 = vadd.f32 %v1407_v28, %v1699_v10  ;;  %v252_v24 = vld [vmem:[%s2514_s0 + $0x78] sm:$0xff] }
  0xd4   :  { %v190_v32 = vpop.f32.mrf.mxu0  ;;  %279 = vadd.xlane.f32.xlu1 %v278_v30 }
  0xd5   :  { %v191_v35 = vadd.f32 %v1699_v10, %v190_v32  ;;  %v272_v36 = vsel %vm115_vm0, %v1727_v29, 0.0  ;;  %v1743_v39 = vadd.f32 %v243_v34, %v199_v31 }
  0xd6   :  { %v1408_v37 = vpop.f32.mrf.mxu0  ;;  %273 = vadd.xlane.f32.xlu0 %v272_v36 }
  0xd7   :  { %v1741_v38 = vadd.f32 %v241_v33, %v191_v35  ;;  %v202_v42 = vadd.f32 %v1408_v37, %v1699_v10  ;;  %v287_v50 = vsel %vm115_vm0, %v1743_v39, 0.0 }
  0xd8   :  { %v193_v40 = vpop.f32.mrf.mxu0 }
  0xd9   :  { %v194_v43 = vadd.f32 %v1699_v10, %v193_v40  ;;  %v281_v44 = vsel %vm115_vm0, %v1741_v38, 0.0  ;;  %v1762_v51 = vadd.f32 %v244_v45, %v202_v42 }
  0xda   :  { %v1411_v46 = vpop.f32.mrf.mxu0  ;;  %282 = vadd.xlane.f32.xlu0 %v281_v44 }
  0xdb   :  { %v1755_v47 = vadd.f32 %v242_v41, %v194_v43  ;;  %v215_v52 = vadd.f32 %v1411_v46, %v1699_v10  ;;  %v290_v0 = vsel %vm115_vm0, %v1762_v51, 0.0 }
  0xdc   :  { %v206_v48 = vpop.f32.mrf.mxu0 }
  0xdd   :  { %2533 = vst [vmem:[#allocation2_spill] sm:$0xff] %v1755_v47  ;;  %v207_v53 = vadd.f32 %v1699_v10, %v206_v48  ;;  %v284_v54 = vsel %vm115_vm0, %v1755_v47, 0.0  ;;  %v1777_v61 = vadd.f32 %v247_v55, %v215_v52 }
  0xde   :  { %v1412_v56 = vpop.f32.mrf.mxu0  ;;  %285 = vadd.xlane.f32.xlu1 %v284_v54  ;;  %288 = vadd.xlane.f32.xlu0 %v287_v50 }
  0xdf   :  { %v1771_v57 = vadd.f32 %v245_v49, %v207_v53  ;;  %v218_v58 = vadd.f32 %v1412_v56, %v1699_v10  ;;  %2535 = vst [vmem:[#allocation4_spill] sm:$0xff] %v1777_v61  ;;  %v299_v11 = vsel %vm115_vm0, %v1777_v61, 0.0 }
  0xe0   :  { %v209_v59 = vpop.f32.mrf.mxu0 }
  0xe1   :  { %2534 = vst [vmem:[#allocation3_spill] sm:$0xff] %v1771_v57  ;;  %v210_v63 = vadd.f32 %v1699_v10, %v209_v59  ;;  %v293_v1 = vsel %vm115_vm0, %v1771_v57, 0.0  ;;  %v1789_v4 = vadd.f32 %v248_v62, %v218_v58 }
  0xe2   :  { %v1415_v2 = vpop.f32.mrf.mxu0  ;;  %291 = vadd.xlane.f32.xlu1 %v290_v0  ;;  %294 = vadd.xlane.f32.xlu0 %v293_v1 }
  0xe3   :  { %v1787_v3 = vadd.f32 %v246_v60, %v210_v63  ;;  %2537 = vst [vmem:[#allocation6_spill] sm:$0xff] %v1789_v4  ;;  %v231_v7 = vadd.f32 %v1415_v2, %v1699_v10  ;;  %v302_v18 = vsel %vm115_vm0, %v1789_v4, 0.0 }
  0xe4   :  { %v222_v5 = vpop.f32.mrf.mxu0 }
  0xe5   :  { %2536 = vst [vmem:[#allocation5_spill] sm:$0xff] %v1787_v3  ;;  %v223_v8 = vadd.f32 %v1699_v10, %v222_v5  ;;  %v296_v9 = vsel %vm115_vm0, %v1787_v3, 0.0  ;;  %v1810_v19 = vadd.f32 %v251_v12, %v231_v7 }
  0xe6   :  { %v1416_v13 = vpop.f32.mrf.mxu0  ;;  %297 = vadd.xlane.f32.xlu1 %v296_v9  ;;  %300 = vadd.xlane.f32.xlu0 %v299_v11 }
  0xe7   :  { %v1803_v14 = vadd.f32 %v249_v6, %v223_v8  ;;  %2539 = vst [vmem:[#allocation8_spill] sm:$0xff] %v1810_v19  ;;  %v234_v21 = vadd.f32 %v1416_v13, %v1699_v10  ;;  %v311_v30 = vsel %vm115_vm0, %v1810_v19, 0.0 }
  0xe8   :  { %v225_v15 = vpop.f32.mrf.mxu0 }
  0xe9   :  { %2538 = vst [vmem:[#allocation7_spill] sm:$0xff] %v1803_v14  ;;  %v226_v22 = vadd.f32 %v1699_v10, %v225_v15  ;;  %v305_v23 = vsel %vm115_vm0, %v1803_v14, 0.0  ;;  %v1821_v27 = vadd.f32 %v252_v24, %v234_v21 }
  0xea   :  { %303 = vadd.xlane.f32.xlu1 %v302_v18  ;;  %306 = vadd.xlane.f32.xlu0 %v305_v23 }
  0xeb   :  { %v1819_v26 = vadd.f32 %v250_v17, %v226_v22  ;;  %2541 = vst [vmem:[#allocation10_spill] sm:$0xff] %v1821_v27  ;;  %v314_v10 = vsel %vm115_vm0, %v1821_v27, 0.0 }
  0xed   :  { %2540 = vst [vmem:[#allocation9_spill] sm:$0xff] %v1819_v26  ;;  %v308_v28 = vsel %vm115_vm0, %v1819_v26, 0.0 }
  0xee   :  { %309 = vadd.xlane.f32.xlu1 %v308_v28  ;;  %312 = vadd.xlane.f32.xlu0 %v311_v30 }
  0xf2   :  { %315 = vadd.xlane.f32.xlu1 %v314_v10 }
 0x159   :  { %v277_v31 = vpop.xlane.xlu1 %276 }
 0x15a   :  { %v320_v32 = vmul.f32 0.03125, %v277_v31 }
 0x15b   :  { %v271_v33 = vpop.xlane.xlu0 %270 }
 0x15c   :  { %v318_v34 = vmul.f32 0.03125, %v271_v33  ;;  %v1830_v36 = vsub.f32 %v1708_v16, %v320_v32 }
 0x15d   :  { %v280_v35 = vpop.xlane.xlu1 %279 }
 0x15e   :  { %v1833_v37 = vsub.f32 %v1714_v20, %v318_v34  ;;  %v321_v40 = vmul.f32 0.03125, %v280_v35  ;;  %v352_v48 = vmul.f32 %v1830_v36, %v1830_v36 }
 0x15f   :  { %v274_v41 = vpop.xlane.xlu0 %273 }
 0x160   :  { %v319_v42 = vmul.f32 0.03125, %v274_v41  ;;  %v350_v43 = vmul.f32 %v1833_v37, %v1833_v37  ;;  %v1838_v44 = vsub.f32 %v1722_v25, %v321_v40  ;;  %v372_v54 = vsel %vm115_vm0, %v352_v48, 0.0 }
 0x162   :  { %v1841_v45 = vsub.f32 %v1727_v29, %v319_v42  ;;  %v366_v46 = vsel %vm115_vm0, %v350_v43, 0.0  ;;  %v353_v56 = vmul.f32 %v1838_v44, %v1838_v44 }
 0x163   :  { %367 = vadd.xlane.f32.xlu0 %v366_v46  ;;  %v283_v49 = vpop.xlane.xlu0 %282 }
 0x164   :  { %v322_v50 = vmul.f32 0.03125, %v283_v49  ;;  %v351_v52 = vmul.f32 %v1841_v45, %v1841_v45  ;;  %v375_v2 = vsel %vm115_vm0, %v353_v56, 0.0 }
 0x166   :  { %v1849_v53 = vsub.f32 %v1741_v38, %v322_v50  ;;  %v369_v55 = vsel %vm115_vm0, %v351_v52, 0.0 }
 0x167   :  { %v286_v58 = vpop.xlane.xlu1 %285  ;;  %373 = vadd.xlane.f32.xlu0 %v372_v54  ;;  %370 = vadd.xlane.f32.xlu1 %v369_v55  ;;  %v289_v59 = vpop.xlane.xlu0 %288 }
 0x168   :  { %v323_v60 = vmul.f32 0.03125, %v286_v58  ;;  %v324_v62 = vmul.f32 0.03125, %v289_v59  ;;  %v354_v63 = vmul.f32 %v1849_v53, %v1849_v53 }
 0x16a   :  { %v1858_v0 = vsub.f32 %v1755_v47, %v323_v60  ;;  %v1861_v1 = vsub.f32 %v1743_v39, %v324_v62  ;;  %v378_v5 = vsel %vm115_vm0, %v354_v63, 0.0 }
 0x16b   :  { %v292_v6 = vpop.xlane.xlu1 %291  ;;  %376 = vadd.xlane.f32.xlu1 %v375_v2  ;;  %379 = vadd.xlane.f32.xlu0 %v378_v5  ;;  %v295_v7 = vpop.xlane.xlu0 %294 }
 0x16c   :  { %v325_v8 = vmul.f32 0.03125, %v292_v6  ;;  %v326_v9 = vmul.f32 0.03125, %v295_v7  ;;  %v355_v11 = vmul.f32 %v1858_v0, %v1858_v0  ;;  %v356_v12 = vmul.f32 %v1861_v1, %v1861_v1 }
 0x16e   :  { %v1870_v13 = vsub.f32 %v1762_v51, %v325_v8  ;;  %v1873_v15 = vsub.f32 %v1771_v57, %v326_v9  ;;  %v381_v17 = vsel %vm115_vm0, %v355_v11, 0.0  ;;  %v384_v18 = vsel %vm115_vm0, %v356_v12, 0.0 }
 0x16f   :  { %v298_v21 = vpop.xlane.xlu1 %297  ;;  %382 = vadd.xlane.f32.xlu1 %v381_v17  ;;  %385 = vadd.xlane.f32.xlu0 %v384_v18  ;;  %v301_v22 = vpop.xlane.xlu0 %300 }
 0x170   :  { %v327_v23 = vmul.f32 0.03125, %v298_v21  ;;  %v328_v24 = vmul.f32 0.03125, %v301_v22  ;;  %v357_v28 = vmul.f32 %v1870_v13, %v1870_v13  ;;  %v358_v30 = vmul.f32 %v1873_v15, %v1873_v15  ;;  %v1496_v21 = vld [vmem:[%s2515_s6 + $0x8] sm:$0xff]   ;;  %v1497_v22 = vld [vmem:[%s2515_s6] sm:$0xff]  }
 0x171   :  { %1417 = vmatprep.subr.bf16.mxu1 %v1496_v21 }
 0x172   :  { %v1882_v10 = vsub.f32 %v1787_v3, %v327_v23  ;;  %v1885_v31 = vsub.f32 %v1777_v61, %v328_v24  ;;  %v387_v32 = vsel %vm115_vm0, %v357_v28, 0.0  ;;  %v390_v33 = vsel %vm115_vm0, %v358_v30, 0.0  ;;  %1418 = vmatpush3.bf16.msra.mxu1 %v1496_v21 }
 0x173   :  { %v304_v34 = vpop.xlane.xlu1 %303  ;;  %388 = vadd.xlane.f32.xlu1 %v387_v32  ;;  %391 = vadd.xlane.f32.xlu0 %v390_v33  ;;  %v307_v35 = vpop.xlane.xlu0 %306 }
 0x174   :  { %v329_v40 = vmul.f32 0.03125, %v304_v34  ;;  %v330_v41 = vmul.f32 0.03125, %v307_v35  ;;  %v359_v42 = vmul.f32 %v1882_v10, %v1882_v10  ;;  %v360_v43 = vmul.f32 %v1885_v31, %v1885_v31  ;;  %1419 = vmatprep.subr.bf16.mxu1 %v1497_v22 }
 0x176   :  { %v1894_v46 = vsub.f32 %v1789_v4, %v329_v40  ;;  %v1897_v48 = vsub.f32 %v1803_v14, %v330_v41  ;;  %v393_v49 = vsel %vm115_vm0, %v359_v42, 0.0  ;;  %v396_v50 = vsel %vm115_vm0, %v360_v43, 0.0  ;;  %1420 = vmatpush3.bf16.msra.mxu1 %v1497_v22 }
 0x177   :  { %v310_v52 = vpop.xlane.xlu1 %309  ;;  %394 = vadd.xlane.f32.xlu1 %v393_v49  ;;  %397 = vadd.xlane.f32.xlu0 %v396_v50  ;;  %v313_v54 = vpop.xlane.xlu0 %312 }
 0x178   :  { %v331_v55 = vmul.f32 0.03125, %v310_v52  ;;  %v332_v56 = vmul.f32 0.03125, %v313_v54  ;;  %v361_v58 = vmul.f32 %v1894_v46, %v1894_v46  ;;  %v362_v59 = vmul.f32 %v1897_v48, %v1897_v48 }
 0x17a   :  { %v1906_v60 = vsub.f32 %v1819_v26, %v331_v55  ;;  %v1909_v62 = vsub.f32 %v1810_v19, %v332_v56  ;;  %v399_v63 = vsel %vm115_vm0, %v361_v58, 0.0  ;;  %v402_v2 = vsel %vm115_vm0, %v362_v59, 0.0 }
 0x17b   :  { %v316_v5 = vpop.xlane.xlu1 %315  ;;  %400 = vadd.xlane.f32.xlu1 %v399_v63  ;;  %403 = vadd.xlane.f32.xlu0 %v402_v2  ;;  %v2542_v26 = vmov -1.0  }
 0x17c   :  { %v333_v6 = vmul.f32 0.03125, %v316_v5  ;;  %v363_v7 = vmul.f32 %v1906_v60, %v1906_v60  ;;  %v364_v8 = vmul.f32 %v1909_v62, %v1909_v62 }
 0x17e   :  { %v1918_v9 = vsub.f32 %v1821_v27, %v333_v6  ;;  %v405_v11 = vsel %vm115_vm0, %v363_v7, 0.0  ;;  %v408_v12 = vsel %vm115_vm0, %v364_v8, 0.0 }
 0x17f   :  { %406 = vadd.xlane.f32.xlu1 %v405_v11  ;;  %409 = vadd.xlane.f32.xlu0 %v408_v12 }
 0x180   :  { %v365_v17 = vmul.f32 %v1918_v9, %v1918_v9 }
 0x182   :  { %v411_v18 = vsel %vm115_vm0, %v365_v17, 0.0 }
 0x183   :  { %412 = vadd.xlane.f32.xlu1 %v411_v18  ;;  %v1935_v18 = vld [vmem:[%s2516_s4] ss:$0 sm:$0xff] }
 0x1ec   :  { %v368_v23 = vpop.xlane.xlu0 %367 }
 0x1ed   :  { %v414_v24 = vmul.f32 0.03125, %v368_v23 }
 0x1ef   :  { %v430_v28 = vadd.f32 1e-05, %v414_v24 }
 0x1f0   :  { %v371_v30 = vpop.xlane.xlu1 %370  ;;  %v374_v32 = vpop.xlane.xlu0 %373 }
 0x1f1   :  { %1506 = vrsqrt.f32 %v430_v28  ;;  %v415_v33 = vmul.f32 0.03125, %v371_v30  ;;  %v416_v34 = vmul.f32 0.03125, %v374_v32 }
 0x1f3   :  { %v431_v35 = vadd.f32 1e-05, %v415_v33  ;;  %v432_v40 = vadd.f32 1e-05, %v416_v34 }
 0x1f4   :  { %v377_v41 = vpop.xlane.xlu1 %376  ;;  %v380_v42 = vpop.xlane.xlu0 %379 }
 0x1f5   :  { %1508 = vrsqrt.f32 %v431_v35  ;;  %v417_v43 = vmul.f32 0.03125, %v377_v41  ;;  %v418_v49 = vmul.f32 0.03125, %v380_v42 }
 0x1f6   :  { %1510 = vrsqrt.f32 %v432_v40 }
 0x1f7   :  { %v433_v50 = vadd.f32 1e-05, %v417_v43  ;;  %v434_v52 = vadd.f32 1e-05, %v418_v49 }
 0x1f8   :  { %v383_v54 = vpop.xlane.xlu1 %382  ;;  %v386_v55 = vpop.xlane.xlu0 %385 }
 0x1f9   :  { %1512 = vrsqrt.f32 %v433_v50  ;;  %v419_v56 = vmul.f32 0.03125, %v383_v54  ;;  %v420_v58 = vmul.f32 0.03125, %v386_v55 }
 0x1fa   :  { %1514 = vrsqrt.f32 %v434_v52 }
 0x1fb   :  { %v435_v59 = vadd.f32 1e-05, %v419_v56  ;;  %v436_v63 = vadd.f32 1e-05, %v420_v58 }
 0x1fc   :  { %v389_v2 = vpop.xlane.xlu1 %388  ;;  %v392_v5 = vpop.xlane.xlu0 %391 }
 0x1fd   :  { %1516 = vrsqrt.f32 %v435_v59  ;;  %v421_v6 = vmul.f32 0.03125, %v389_v2  ;;  %v422_v7 = vmul.f32 0.03125, %v392_v5 }
 0x1fe   :  { %v1507_v8 = vpop.eup %1506  ;;  %1518 = vrsqrt.f32 %v436_v63 }
 0x1ff   :  { %v437_v11 = vadd.f32 1e-05, %v421_v6  ;;  %v438_v12 = vadd.f32 1e-05, %v422_v7  ;;  %v462_v17 = vmul.f32 %v1507_v8, %v1833_v37  ;;  %v1942_v37 = vld [vmem:[%s2517_s5] ss:$0 sm:$0xff] }
 0x200   :  { %v395_v21 = vpop.xlane.xlu1 %394  ;;  %v398_v22 = vpop.xlane.xlu0 %397 }
 0x201   :  { %1520 = vrsqrt.f32 %v437_v11  ;;  %v423_v23 = vmul.f32 0.03125, %v395_v21  ;;  %v424_v24 = vmul.f32 0.03125, %v398_v22  ;;  %v485_v30 = vmul.f32 %v1935_v18, %v462_v17 }
 0x202   :  { %v1509_v28 = vpop.eup %1508  ;;  %1522 = vrsqrt.f32 %v438_v12 }
 0x203   :  { %v1511_v32 = vpop.eup %1510  ;;  %v439_v33 = vadd.f32 1e-05, %v423_v23  ;;  %v440_v34 = vadd.f32 1e-05, %v424_v24  ;;  %v463_v35 = vmul.f32 %v1509_v28, %v1841_v45  ;;  %v508_v54 = vadd.f32 %v1942_v37, %v485_v30 }
 0x204   :  { %v401_v40 = vpop.xlane.xlu1 %400  ;;  %v404_v41 = vpop.xlane.xlu0 %403  ;;  %v464_v42 = vmul.f32 %v1511_v32, %v1830_v36 }
 0x205   :  { %1524 = vrsqrt.f32 %v439_v33  ;;  %v425_v43 = vmul.f32 0.03125, %v401_v40  ;;  %v426_v49 = vmul.f32 0.03125, %v404_v41  ;;  %v486_v50 = vmul.f32 %v1935_v18, %v463_v35 }
 0x206   :  { %v1513_v52 = vpop.eup %1512  ;;  %1526 = vrsqrt.f32 %v440_v34  ;;  %v487_v36 = vmul.f32 %v1935_v18, %v464_v42 }
 0x207   :  { %v1515_v55 = vpop.eup %1514  ;;  %v441_v45 = vadd.f32 1e-05, %v425_v43  ;;  %v442_v56 = vadd.f32 1e-05, %v426_v49  ;;  %v509_v58 = vadd.f32 %v1942_v37, %v486_v50  ;;  %v465_v59 = vmul.f32 %v1513_v52, %v1838_v44 }
 0x208   :  { %v407_v63 = vpop.xlane.xlu1 %406  ;;  %v410_v2 = vpop.xlane.xlu0 %409  ;;  %v466_v5 = vmul.f32 %v1515_v55, %v1849_v53  ;;  %v510_v53 = vadd.f32 %v1942_v37, %v487_v36 }
 0x209   :  { %1528 = vrsqrt.f32 %v441_v45  ;;  %v427_v6 = vmul.f32 0.03125, %v407_v63  ;;  %v428_v7 = vmul.f32 0.03125, %v410_v2  ;;  %v524_v8 = vpack.c.bf16 %v509_v58, %v508_v54 }
 0x20a   :  { %v1517_v11 = vpop.eup %1516  ;;  %1530 = vrsqrt.f32 %v442_v56  ;;  %v488_v12 = vmul.f32 %v1935_v18, %v465_v59  ;;  %v489_v17 = vmul.f32 %v1935_v18, %v466_v5 }
 0x20b   :  { %v1519_v21 = vpop.eup %1518  ;;  %v443_v22 = vadd.f32 1e-05, %v427_v6  ;;  %v444_v23 = vadd.f32 1e-05, %v428_v7  ;;  %1421 = vmatprep.mubr.msk.bf16.mxu1 %vm115_vm0, %v524_v8  ;;  %v467_v44 = vmul.f32 %v1517_v11, %v1858_v0 }
 0x20c   :  { %v413_v24 = vpop.xlane.xlu1 %412  ;;  %v511_v28 = vadd.f32 %v1942_v37, %v488_v12  ;;  %v468_v30 = vmul.f32 %v1519_v21, %v1861_v1  ;;  %v512_v40 = vadd.f32 %v1942_v37, %v489_v17 }
 0x20d   :  { %1532 = vrsqrt.f32 %v443_v22  ;;  %v429_v32 = vmul.f32 0.03125, %v413_v24  ;;  %v490_v33 = vmul.f32 %v1935_v18, %v467_v44 }
 0x20e   :  { %v1521_v34 = vpop.eup %1520  ;;  %1534 = vrsqrt.f32 %v444_v23  ;;  %v525_v35 = vpack.c.bf16 %v511_v28, %v510_v53  ;;  %v491_v49 = vmul.f32 %v1935_v18, %v468_v30 }
 0x20f   :  { %v1523_v41 = vpop.eup %1522  ;;  %v445_v42 = vadd.f32 1e-05, %v429_v32  ;;  %v513_v0 = vadd.f32 %v1942_v37, %v490_v33  ;;  %v469_v43 = vmul.f32 %v1521_v34, %v1870_v13 }
 0x210   :  { %1422 = vmatmul.mubr.msk.bf16.vlgmr.msra.gmra.mxu1 %vm115_vm0, %v525_v35  ;;  %v470_v1 = vmul.f32 %v1523_v41, %v1873_v15  ;;  %v514_v45 = vadd.f32 %v1942_v37, %v491_v49  ;;  %v1501_v41 = vld [vmem:[%s2518_s8 + $0x20] sm:$0xff]  }
 0x211   :  { %1536 = vrsqrt.f32 %v445_v42  ;;  %v526_v50 = vpack.c.bf16 %v513_v0, %v512_v40  ;;  %v492_v52 = vmul.f32 %v1935_v18, %v469_v43  ;;  %v1502_v42 = vld [vmem:[%s2518_s8 + $0x18] sm:$0xff]   ;;  %v1503_v0 = vld [vmem:[%s2518_s8 + $0x10] sm:$0xff]   ;;  %v1504_v43 = vld [vmem:[%s2518_s8 + $0x8] sm:$0xff]  }
 0x212   :  { %v1525_v54 = vpop.eup %1524  ;;  %v493_v58 = vmul.f32 %v1935_v18, %v470_v1  ;;  %v1505_v49 = vld [vmem:[%s2518_s8] sm:$0xff]  }
 0x213   :  { %v1527_v55 = vpop.eup %1526  ;;  %1425 = vmatprep.mubr.msk.bf16.mxu1 %vm115_vm0, %v526_v50  ;;  %v515_v56 = vadd.f32 %v1942_v37, %v492_v52  ;;  %v471_v13 = vmul.f32 %v1525_v54, %v1882_v10  ;;  %v2024_v1 = vld [vmem:[%s2519_s7] ss:$0 sm:$0xff] }
 0x214   :  { %v472_v59 = vmul.f32 %v1527_v55, %v1885_v31  ;;  %v516_v5 = vadd.f32 %v1942_v37, %v493_v58 }
 0x215   :  { %v527_v63 = vpack.c.bf16 %v515_v56, %v514_v45  ;;  %v494_v15 = vmul.f32 %v1935_v18, %v471_v13 }
 0x216   :  { %v1529_v2 = vpop.eup %1528  ;;  %v495_v8 = vmul.f32 %v1935_v18, %v472_v59 }
 0x217   :  { %v1531_v36 = vpop.eup %1530  ;;  %v517_v6 = vadd.f32 %v1942_v37, %v494_v15  ;;  %v473_v7 = vmul.f32 %v1529_v2, %v1894_v46 }
 0x218   :  { %1426 = vmatmul.mubr.msk.bf16.gmra.mxu1 %vm115_vm0, %v527_v63  ;;  %v474_v10 = vmul.f32 %v1531_v36, %v1897_v48  ;;  %v518_v21 = vadd.f32 %v1942_v37, %v495_v8 }
 0x219   :  { %v528_v11 = vpack.c.bf16 %v517_v6, %v516_v5  ;;  %v496_v31 = vmul.f32 %v1935_v18, %v473_v7 }
 0x21a   :  { %v1533_v12 = vpop.eup %1532  ;;  %v497_v46 = vmul.f32 %v1935_v18, %v474_v10 }
 0x21b   :  { %v1535_v17 = vpop.eup %1534  ;;  %1429 = vmatprep.mubr.msk.bf16.mxu1 %vm115_vm0, %v528_v11  ;;  %v519_v22 = vadd.f32 %v1942_v37, %v496_v31  ;;  %v475_v23 = vmul.f32 %v1533_v12, %v1906_v60 }
 0x21c   :  { %v476_v44 = vmul.f32 %v1535_v17, %v1909_v62  ;;  %v520_v28 = vadd.f32 %v1942_v37, %v497_v46 }
 0x21d   :  { %v529_v24 = vpack.c.bf16 %v519_v22, %v518_v21  ;;  %v498_v48 = vmul.f32 %v1935_v18, %v475_v23 }
 0x21e   :  { %v1537_v53 = vpop.eup %1536  ;;  %v499_v33 = vmul.f32 %v1935_v18, %v476_v44 }
 0x21f   :  { %v521_v30 = vadd.f32 %v1942_v37, %v498_v48  ;;  %v477_v32 = vmul.f32 %v1537_v53, %v1918_v9  ;;  %v1498_v9 = vld [vmem:[%s2518_s8 + $0x38] sm:$0xff]  }
 0x220   :  { %1430 = vmatmul.mubr.msk.bf16.gmra.mxu1 %vm115_vm0, %v529_v24  ;;  %v522_v62 = vadd.f32 %v1942_v37, %v499_v33  ;;  %1437 = vmatprep.subr.bf16.mxu0 %v1498_v9 }
 0x221   :  { %v530_v34 = vpack.c.bf16 %v521_v30, %v520_v28  ;;  %v500_v60 = vmul.f32 %v1935_v18, %v477_v32  ;;  %1469 = vmatprep.subr.bf16.mxu1 %v1498_v9  ;;  %1438 = vmatpush3.bf16.msra.mxu0 %v1498_v9  ;;  %v1499_v18 = vld [vmem:[%s2518_s8 + $0x30] sm:$0xff]  }
 0x222   :  { %1477 = vmatpush3.bf16.msra.mxu1 %v1498_v9  ;;  %1439 = vmatprep.subr.bf16.mxu0 %v1499_v18 }
 0x223   :  { %1433 = vmatprep.mubr.msk.bf16.mxu1 %vm115_vm0, %v530_v34  ;;  %v523_v35 = vadd.f32 %v1942_v37, %v500_v60  ;;  %1470 = vmatprep.subr.bf16.mxu1 %v1499_v18  ;;  %v1500_v37 = vld [vmem:[%s2518_s8 + $0x28] sm:$0xff]  }
 0x225   :  { %v531_v40 = vpack.c.bf16 %v523_v35, %v522_v62  ;;  %1440 = vmatpush3.bf16.msra.mxu0 %v1499_v18 }
 0x226   :  { %1478 = vmatpush3.bf16.msra.mxu1 %v1499_v18  ;;  %1441 = vmatprep.subr.bf16.mxu0 %v1500_v37 }
 0x227   :  { %1471 = vmatprep.subr.bf16.mxu1 %v1500_v37 }
 0x228   :  { %1434 = vmatmul.mubr.msk.bf16.gmra.mxu1 %vm115_vm0, %v531_v40 }
 0x229   :  { %1442 = vmatpush3.bf16.msra.mxu0 %v1500_v37 }
 0x22a   :  { %1479 = vmatpush3.bf16.msra.mxu1 %v1500_v37  ;;  %1443 = vmatprep.subr.bf16.mxu0 %v1501_v41 }
 0x22b   :  { %1472 = vmatprep.subr.bf16.mxu1 %v1501_v41 }
 0x22d   :  { %1444 = vmatpush3.bf16.msra.mxu0 %v1501_v41 }
 0x22e   :  { %1480 = vmatpush3.bf16.msra.mxu1 %v1501_v41  ;;  %1445 = vmatprep.subr.bf16.mxu0 %v1502_v42 }
 0x22f   :  { %1473 = vmatprep.subr.bf16.mxu1 %v1502_v42 }
 0x231   :  { %1446 = vmatpush3.bf16.msra.mxu0 %v1502_v42 }
 0x232   :  { %1481 = vmatpush3.bf16.msra.mxu1 %v1502_v42  ;;  %1447 = vmatprep.subr.bf16.mxu0 %v1503_v0 }
 0x233   :  { %1474 = vmatprep.subr.bf16.mxu1 %v1503_v0 }
 0x235   :  { %1448 = vmatpush3.bf16.msra.mxu0 %v1503_v0 }
 0x236   :  { %1482 = vmatpush3.bf16.msra.mxu1 %v1503_v0  ;;  %1449 = vmatprep.subr.bf16.mxu0 %v1504_v43 }
 0x237   :  { %1475 = vmatprep.subr.bf16.mxu1 %v1504_v43 }
 0x239   :  { %1450 = vmatpush3.bf16.msra.mxu0 %v1504_v43 }
 0x23a   :  { %1483 = vmatpush3.bf16.msra.mxu1 %v1504_v43  ;;  %1451 = vmatprep.subr.bf16.mxu0 %v1505_v49 }
 0x23b   :  { %1476 = vmatprep.subr.bf16.mxu1 %v1505_v49 }
 0x23d   :  { %1452 = vmatpush3.bf16.msra.mxu0 %v1505_v49 }
 0x23e   :  { %1484 = vmatpush3.bf16.msra.mxu1 %v1505_v49 }
 0x2d0   :  { %v1423_v50 = vpop.f32.mrf.mxu1 }
 0x2d1   :  { %v622_v52 = vadd.f32 %v1423_v50, %v2024_v1 }
 0x2d2   :  { %v613_v54 = vpop.f32.mrf.mxu1 }
 0x2d3   :  { %v2027_v55 = vmul.f32 0.70710677, %v622_v52  ;;  %v614_v45 = vadd.f32 %v2024_v1, %v613_v54  ;;  %v2099_v49 = vmul.f32 0.5, %v622_v52 }
 0x2d4   :  { %v1424_v56 = vpop.f32.mrf.mxu1 }
 0x2d5   :  { %v2031_v13 = vand.u32 2147483647, %v2027_v55  ;;  %v2033_v58 = vmul.f32 0.70710677, %v614_v45  ;;  %v2036_v59 = vadd.f32 %v1424_v56, %v2024_v1  ;;  %vm710_vm1 = vcmp.ge.f32.partialorder %v2027_v55, 0.0 }
 0x2d6   :  { %v616_v63 = vpop.f32.mrf.mxu1 }
 0x2d7   :  { %v758_v15 = vmul.f32 0.3275911, %v2031_v13  ;;  %v2040_v2 = vand.u32 2147483647, %v2033_v58  ;;  %v2043_v36 = vmul.f32 0.70710677, %v2036_v59  ;;  %v2046_v5 = vadd.f32 %v2024_v1, %v616_v63 }
 0x2d8   :  { %v1427_v6 = vpop.f32.mrf.mxu1  ;;  %v966_v50 = vsub.f32 0.0, %v2031_v13  ;;  %vm708_vm2 = vcmp.ge.f32.partialorder %v2033_v58, 0.0 }
 0x2d9   :  { %v774_v7 = vadd.f32 1.0, %v758_v15  ;;  %v756_v8 = vmul.f32 0.3275911, %v2040_v2  ;;  %v2050_v10 = vand.u32 2147483647, %v2043_v36  ;;  %v2060_v23 = vadd.f32 %v1427_v6, %v2024_v1 }
 0x2da   :  { %v2053_v11 = vmul.f32 0.70710677, %v2046_v5  ;;  %v629_v31 = vpop.f32.mrf.mxu1  ;;  %v964_v15 = vsub.f32 0.0, %v2040_v2  ;;  %vm711_vm3 = vcmp.ge.f32.partialorder %v2043_v36, 0.0 }
 0x2db   :  { %1538 = vrcp.f32 %v774_v7  ;;  %v772_v12 = vadd.f32 1.0, %v756_v8  ;;  %v759_v17 = vmul.f32 0.3275911, %v2050_v10  ;;  %v2064_v24 = vadd.f32 %v2024_v1, %v629_v31 }
 0x2dc   :  { %v2057_v21 = vand.u32 2147483647, %v2053_v11  ;;  %v1428_v46 = vpop.f32.mrf.mxu1  ;;  %v2067_v48 = vmul.f32 0.70710677, %v2060_v23  ;;  %v2109_v8 = vmul.f32 0.5, %v614_v45  ;;  %v2153_v36 = vsel %vm711_vm3, 1.0, %v2542_v26 }
 0x2dd   :  { %1540 = vrcp.f32 %v772_v12  ;;  %v775_v22 = vadd.f32 1.0, %v759_v17  ;;  %v2070_v28 = vmul.f32 0.70710677, %v2064_v24  ;;  %v2076_v32 = vadd.f32 %v1428_v46, %v2024_v1 }
 0x2de   :  { %v757_v44 = vmul.f32 0.3275911, %v2057_v21  ;;  %v2073_v30 = vand.u32 2147483647, %v2067_v48  ;;  %v632_v33 = vpop.f32.mrf.mxu1  ;;  %v2522_v12 = vmov -1.0   ;;  %v967_v46 = vsub.f32 0.0, %v2050_v10 }
 0x2df   :  { %1542 = vrcp.f32 %v775_v22  ;;  %v2080_v60 = vand.u32 2147483647, %v2070_v28  ;;  %v2083_v62 = vmul.f32 0.70710677, %v2076_v32  ;;  %v2086_v35 = vadd.f32 %v2024_v1, %v632_v33 }
 0x2e0   :  { %v773_v53 = vadd.f32 1.0, %v757_v44  ;;  %v762_v34 = vmul.f32 0.3275911, %v2073_v30  ;;  %v1431_v7 = vpop.f32.mrf.mxu1  ;;  %v2117_v17 = vsel %vm710_vm1, 1.0, %v2522_v12  ;;  %vm709_vm4 = vcmp.ge.f32.partialorder %v2053_v11, 0.0 }
 0x2e1   :  { %v760_v9 = vmul.f32 0.3275911, %v2080_v60  ;;  %v2090_v18 = vand.u32 2147483647, %v2083_v62  ;;  %v2093_v37 = vmul.f32 0.70710677, %v2086_v35  ;;  %v2123_v58 = vadd.f32 %v1431_v7, %v2024_v1 }
 0x2e2   :  { %1544 = vrcp.f32 %v773_v53  ;;  %v778_v40 = vadd.f32 1.0, %v762_v34  ;;  %v982_v34 = vmul.f32 %v966_v50, %v2031_v13  ;;  %v2136_v7 = vmul.f32 0.5, %v2036_v59 }
 0x2e3   :  { %v776_v42 = vadd.f32 1.0, %v760_v9  ;;  %v763_v43 = vmul.f32 0.3275911, %v2090_v18  ;;  %v2104_v54 = vand.u32 2147483647, %v2093_v37  ;;  %v980_v9 = vmul.f32 %v964_v15, %v2040_v2 }
 0x2e4   :  { %1546 = vrcp.f32 %v778_v40  ;;  %v2127_v40 = vsel %vm708_vm2, 1.0, %v2522_v12  ;;  %v2140_v50 = vmul.f32 0.70710677, %v2123_v58  ;;  %v983_v15 = vmul.f32 %v967_v46, %v2050_v10 }
 0x2e5   :  { %1548 = vrcp.f32 %v776_v42  ;;  %v779_v6 = vadd.f32 1.0, %v763_v43  ;;  %v761_v55 = vmul.f32 0.3275911, %v2104_v54  ;;  %vm714_vm5 = vcmp.ge.f32.partialorder %v2067_v48, 0.0 }
 0x2e6   :  { %v1002_v46 = vmul.f32 1.442695, %v983_v15  ;;  %vm712_vm6 = vcmp.ge.f32.partialorder %v2070_v28, 0.0  ;;  %vm715_vm7 = vcmp.ge.f32.partialorder %v2083_v62, 0.0  ;;  %vm713_vm8 = vcmp.ge.f32.partialorder %v2093_v37, 0.0 }
 0x2e7   :  { %1550 = vrcp.f32 %v779_v6  ;;  %v777_v53 = vadd.f32 1.0, %v761_v55  ;;  %v1000_v55 = vmul.f32 1.442695, %v982_v34  ;;  %vm718_vm9 = vcmp.ge.f32.partialorder %v2140_v50, 0.0 }
 0x2e8   :  { %v2095_v41 = vpop.eup %1538 }
 0x2e9   :  { %v822_v0 = vmul.f32 1.0614054, %v2095_v41  ;;  %1552 = vrcp.f32 %v777_v53 }
 0x2ea   :  { %v2106_v56 = vpop.eup %1540  ;;  %1554 = vpow2.f32 %v1000_v55 }
 0x2eb   :  { %v838_v63 = vadd.f32 -1.4531521, %v822_v0  ;;  %v820_v52 = vmul.f32 1.0614054, %v2106_v56 }
 0x2ec   :  { %v2114_v31 = vpop.eup %1542 }
 0x2ed   :  { %v854_v22 = vmul.f32 %v2095_v41, %v838_v63  ;;  %v836_v44 = vadd.f32 -1.4531521, %v820_v52  ;;  %v823_v45 = vmul.f32 1.0614054, %v2114_v31  ;;  %v965_v63 = vsub.f32 0.0, %v2057_v21 }
 0x2ef   :  { %v870_v33 = vadd.f32 1.4214138, %v854_v22  ;;  %v2130_v42 = vpop.eup %1544  ;;  %v852_v0 = vmul.f32 %v2106_v56, %v836_v44  ;;  %v839_v43 = vadd.f32 -1.4531521, %v823_v45  ;;  %v996_v22 = vmul.f32 1.442695, %v980_v9 }
 0x2f0   :  { %v821_v13 = vmul.f32 1.0614054, %v2130_v42  ;;  %v981_v59 = vmul.f32 %v965_v63, %v2057_v21 }
 0x2f1   :  { %v886_v6 = vmul.f32 %v2095_v41, %v870_v33  ;;  %v868_v52 = vadd.f32 1.4214138, %v852_v0  ;;  %v855_v2 = vmul.f32 %v2114_v31, %v839_v43  ;;  %v2148_v33 = vand.u32 2147483647, %v2140_v50  ;;  %v2150_v12 = vpop.eup %1546 }
 0x2f2   :  { %v837_v44 = vadd.f32 -1.4531521, %v821_v13  ;;  %v2156_v43 = vmul.f32 0.5, %v2046_v5  ;;  %v826_v34 = vmul.f32 1.0614054, %v2150_v12  ;;  %v645_v13 = vpop.f32.mrf.mxu1  ;;  %1556 = vpow2.f32 %v996_v22 }
 0x2f3   :  { %v884_v45 = vmul.f32 %v2106_v56, %v868_v52  ;;  %v871_v53 = vadd.f32 1.4214138, %v855_v2  ;;  %v902_v0 = vadd.f32 -0.28449672, %v886_v6  ;;  %v766_v9 = vmul.f32 0.3275911, %v2148_v33  ;;  %v2163_v52 = vpop.eup %1548 }
 0x2f4   :  { %v853_v10 = vmul.f32 %v2130_v42, %v837_v44  ;;  %v998_v5 = vmul.f32 1.442695, %v981_v59  ;;  %v842_v2 = vadd.f32 -1.4531521, %v826_v34  ;;  %v968_v44 = vsub.f32 0.0, %v2080_v60 }
 0x2f5   :  { %v900_v21 = vadd.f32 -0.28449672, %v884_v45  ;;  %v887_v63 = vmul.f32 %v2114_v31, %v871_v53  ;;  %v918_v15 = vmul.f32 %v2095_v41, %v902_v0  ;;  %v824_v55 = vmul.f32 1.0614054, %v2163_v52  ;;  %v2170_v53 = vpop.eup %1550 }
 0x2f6   :  { %v869_v6 = vadd.f32 1.4214138, %v853_v10  ;;  %v969_v45 = vsub.f32 0.0, %v2104_v54  ;;  %1558 = vpow2.f32 %v1002_v46  ;;  %v970_v10 = vsub.f32 0.0, %v2073_v30  ;;  %v2180_v57 = vpop.eup %1552 }
 0x2f7   :  { %v782_v14 = vadd.f32 1.0, %v766_v9  ;;  %v2174_v22 = vadd.f32 %v2024_v1, %v645_v13  ;;  %v916_v59 = vmul.f32 %v2106_v56, %v900_v21  ;;  %v903_v34 = vadd.f32 -0.28449672, %v887_v63 }
 0x2f8   :  { %v885_v27 = vmul.f32 %v2130_v42, %v869_v6  ;;  %v840_v19 = vadd.f32 -1.4531521, %v824_v55  ;;  %v827_v0 = vmul.f32 1.0614054, %v2170_v53  ;;  %1560 = vpow2.f32 %v998_v5 }
 0x2f9   :  { %v858_v3 = vmul.f32 %v2150_v12, %v842_v2  ;;  %v984_v4 = vmul.f32 %v968_v44, %v2080_v60  ;;  %v934_v46 = vadd.f32 0.2548296, %v918_v15  ;;  %v985_v13 = vmul.f32 %v969_v45, %v2104_v54 }
 0x2fa   :  { %v901_v6 = vadd.f32 -0.28449672, %v885_v27  ;;  %v856_v9 = vmul.f32 %v2163_v52, %v840_v19  ;;  %v843_v61 = vadd.f32 -1.4531521, %v827_v0  ;;  %v971_v21 = vsub.f32 0.0, %v2090_v18 }
 0x2fb   :  { %v825_v63 = vmul.f32 1.0614054, %v2180_v57  ;;  %1562 = vrcp.f32 %v782_v14  ;;  %v2187_v27 = vmul.f32 0.70710677, %v2174_v22  ;;  %v932_v5 = vadd.f32 0.2548296, %v916_v59 }
 0x2fc   :  { %v919_v2 = vmul.f32 %v2114_v31, %v903_v34  ;;  %v872_v60 = vadd.f32 1.4214138, %v856_v9  ;;  %v859_v44 = vmul.f32 %v2170_v53, %v843_v61  ;;  %v917_v15 = vmul.f32 %v2130_v42, %v901_v6 }
 0x2fd   :  { %v874_v19 = vadd.f32 1.4214138, %v858_v3  ;;  %v986_v55 = vmul.f32 %v970_v10, %v2073_v30  ;;  %v841_v54 = vadd.f32 -1.4531521, %v825_v63  ;;  %v950_v45 = vmul.f32 %v2095_v41, %v934_v46  ;;  %v1555_v46 = vpop.eup %1554 }
 0x2fe   :  { %v888_v0 = vmul.f32 %v2163_v52, %v872_v60  ;;  %v875_v14 = vadd.f32 1.4214138, %v859_v44  ;;  %v1006_v47 = vmul.f32 1.442695, %v985_v13  ;;  %v2198_v59 = vsel %vm709_vm4, 1.0, %v2542_v26 }
 0x2ff   :  { %v2201_v34 = vmul.f32 0.5, %v2064_v24  ;;  %v987_v61 = vmul.f32 %v971_v21, %v2090_v18  ;;  %v857_v3 = vmul.f32 %v2180_v57, %v841_v54  ;;  %v948_v30 = vmul.f32 %v2106_v56, %v932_v5  ;;  %v1557_v24 = vpop.eup %1556 }
 0x300   :  { %v935_v10 = vadd.f32 0.2548296, %v919_v2  ;;  %v1004_v41 = vmul.f32 1.442695, %v984_v4  ;;  %v2207_v6 = vand.u32 2147483647, %v2187_v27  ;;  %v890_v11 = vmul.f32 %v2150_v12, %v874_v19  ;;  %v1432_v19 = vpop.f32.mrf.mxu1 }
 0x301   :  { %v933_v9 = vadd.f32 0.2548296, %v917_v15  ;;  %v891_v13 = vmul.f32 %v2170_v53, %v875_v14  ;;  %v873_v63 = vadd.f32 1.4214138, %v857_v3  ;;  %v1030_v60 = vmul.f32 %v1555_v46, %v950_v45 }
 0x302   :  { %v1008_v44 = vmul.f32 1.442695, %v986_v55  ;;  %v904_v18 = vadd.f32 -0.28449672, %v888_v0  ;;  %1564 = vpow2.f32 %v1006_v47  ;;  %v1010_v4 = vmul.f32 1.442695, %v987_v61 }
 0x303   :  { %v889_v56 = vmul.f32 %v2180_v57, %v873_v63  ;;  %v1559_v21 = vpop.eup %1558  ;;  %v1028_v5 = vmul.f32 %v1557_v24, %v948_v30  ;;  %v951_v2 = vmul.f32 %v2114_v31, %v935_v10  ;;  %1566 = vpow2.f32 %v1004_v41 }
 0x304   :  { %v764_v15 = vmul.f32 0.3275911, %v2207_v6  ;;  %v949_v54 = vmul.f32 %v2130_v42, %v933_v9  ;;  %v906_v55 = vadd.f32 -0.28449672, %v890_v11  ;;  %v907_v45 = vadd.f32 -0.28449672, %v891_v13  ;;  %v648_v11 = vpop.f32.mrf.mxu1 }
 0x305   :  { %v905_v47 = vadd.f32 -0.28449672, %v889_v56  ;;  %v1561_v0 = vpop.eup %1560  ;;  %v1046_v14 = vsub.f32 1.0, %v1030_v60  ;;  %1568 = vpow2.f32 %v1008_v44  ;;  %v920_v61 = vmul.f32 %v2163_v52, %v904_v18 }
 0x306   :  { %v780_v3 = vadd.f32 1.0, %v764_v15  ;;  %v2221_v30 = vsel %vm714_vm5, 1.0, %v2542_v26  ;;  %1570 = vpow2.f32 %v1010_v4  ;;  %v974_v10 = vsub.f32 0.0, %v2148_v33 }
 0x307   :  { %v921_v31 = vmul.f32 %v2180_v57, %v905_v47  ;;  %v1044_v41 = vsub.f32 1.0, %v1028_v5  ;;  %v1031_v46 = vmul.f32 %v1559_v21, %v951_v2  ;;  %v2230_v9 = vsel %vm712_vm6, 1.0, %v2542_v26 }
 0x308   :  { %v2225_v42 = vpop.eup %1562  ;;  %1572 = vrcp.f32 %v780_v3  ;;  %v1029_v13 = vmul.f32 %v1561_v0, %v949_v54  ;;  %v922_v48 = vmul.f32 %v2150_v12, %v906_v55  ;;  %v923_v63 = vmul.f32 %v2170_v53, %v907_v45 }
 0x309   :  { %v937_v24 = vadd.f32 0.2548296, %v921_v31  ;;  %v1062_v60 = vmul.f32 %v1046_v14, %v2117_v17  ;;  %v936_v44 = vadd.f32 0.2548296, %v920_v61  ;;  %v2236_v18 = vmul.f32 0.5, %v2076_v32  ;;  %v1435_v32 = vpop.f32.mrf.mxu1 }
 0x30a   :  { %v2239_v4 = vadd.f32 %v1432_v19, %v2024_v1  ;;  %v830_v28 = vmul.f32 1.0614054, %v2225_v42  ;;  %v990_v56 = vmul.f32 %v974_v10, %v2148_v33  ;;  %v1060_v21 = vmul.f32 %v1044_v41, %v2127_v40 }
 0x30b   :  { %v1047_v5 = vsub.f32 1.0, %v1031_v46  ;;  %v953_v17 = vmul.f32 %v2180_v57, %v937_v24  ;;  %v1045_v15 = vsub.f32 1.0, %v1029_v13  ;;  %v938_v19 = vadd.f32 0.2548296, %v922_v48  ;;  %v661_v41 = vpop.f32.mrf.mxu1 }
 0x30c   :  { %v2248_v2 = vmul.f32 0.70710677, %v2239_v4  ;;  %v939_v54 = vadd.f32 0.2548296, %v923_v63  ;;  %v2251_v55 = vadd.f32 %v2024_v1, %v648_v11  ;;  %v1078_v45 = vadd.f32 1.0, %v1062_v60 }
 0x30d   :  { %v952_v47 = vmul.f32 %v2163_v52, %v936_v44  ;;  %v2255_v33 = vmul.f32 0.5, %v2086_v35  ;;  %v2261_v57 = vsel %vm715_vm7, 1.0, %v2542_v26  ;;  %v729_v14 = vsel %vm713_vm8, 1.0, %v2542_v26 }
 0x30e   :  { %v751_v40 = vand.u32 2147483647, %v2248_v2  ;;  %v846_v61 = vadd.f32 -1.4531521, %v830_v28  ;;  %v1016_v3 = vmul.f32 1.442695, %v990_v56  ;;  %v1063_v52 = vmul.f32 %v1047_v5, %v2153_v36 }
 0x30f   :  { %v1565_v0 = vpop.eup %1564  ;;  %v1076_v31 = vadd.f32 1.0, %v1060_v21  ;;  %v1061_v11 = vmul.f32 %v1045_v15, %v2198_v59  ;;  %v954_v13 = vmul.f32 %v2150_v12, %v938_v19  ;;  %v955_v62 = vmul.f32 %v2170_v53, %v939_v54  ;;  %v1436_v21 = vpop.f32.mrf.mxu1 }
 0x310   :  { %v1033_v10 = vmul.f32 %v1565_v0, %v953_v17  ;;  %v767_v35 = vmul.f32 0.3275911, %v751_v40  ;;  %v1567_v46 = vpop.eup %1566  ;;  %v2271_v48 = vmul.f32 0.70710677, %v2251_v55  ;;  %v2274_v37 = vmul.f32 %v1078_v45, %v2099_v49 }
 0x311   :  { %v1032_v63 = vmul.f32 %v1567_v46, %v952_v47  ;;  %v2277_v36 = vadd.f32 %v1435_v32, %v2024_v1  ;;  %v862_v44 = vmul.f32 %v2225_v42, %v846_v61  ;;  %1574 = vpow2.f32 %v1016_v3 }
 0x312   :  { %v783_v24 = vadd.f32 1.0, %v767_v35  ;;  %v1569_v60 = vpop.eup %1568  ;;  %v972_v59 = vsub.f32 0.0, %v2207_v6  ;;  %v2282_v12 = vand.u32 2147483647, %v2271_v48  ;;  %v2285_v28 = vmul.f32 %v1076_v31, %v2109_v8 }
 0x313   :  { %v1571_v53 = vpop.eup %1570  ;;  %v1079_v49 = vadd.f32 1.0, %v1063_v52  ;;  %v1049_v56 = vsub.f32 1.0, %v1033_v10  ;;  %v1077_v17 = vadd.f32 1.0, %v1061_v11  ;;  %v1034_v32 = vmul.f32 %v1569_v60, %v954_v13 }
 0x314   :  { %1576 = vrcp.f32 %v783_v24  ;;  %v1035_v15 = vmul.f32 %v1571_v53, %v955_v62  ;;  %v765_v19 = vmul.f32 0.3275911, %v2282_v12  ;;  %v1048_v54 = vsub.f32 1.0, %v1032_v63 }
 0x315   :  { %v2287_v5 = vpop.eup %1572  ;;  %v2292_v47 = vmul.f32 0.70710677, %v2277_v36  ;;  %v2295_v8 = vadd.f32 %v2024_v1, %v661_v41  ;;  %v878_v0 = vadd.f32 1.4214138, %v862_v44  ;;  %v988_v61 = vmul.f32 %v972_v59, %v2207_v6 }
 0x316   :  { %v828_v45 = vmul.f32 1.0614054, %v2287_v5  ;;  %v781_v3 = vadd.f32 1.0, %v765_v19  ;;  %v2299_v31 = vadd.f32 %v1436_v21, %v2024_v1  ;;  %v1065_v52 = vmul.f32 %v1049_v56, %v729_v14 }
 0x317   :  { %v975_v35 = vsub.f32 0.0, %v751_v40  ;;  %v2302_v46 = vand.u32 2147483647, %v2292_v47  ;;  %v1095_v11 = vmul.f32 %v1079_v49, %v2136_v7  ;;  %v1050_v13 = vsub.f32 1.0, %v1034_v32 }
 0x318   :  { %v844_v10 = vadd.f32 -1.4531521, %v828_v45  ;;  %v1051_v62 = vsub.f32 1.0, %v1035_v15  ;;  %1578 = vrcp.f32 %v781_v3  ;;  %v1064_v41 = vmul.f32 %v1048_v54, %v2230_v9 }
 0x319   :  { %v770_v6 = vmul.f32 0.3275911, %v2302_v46  ;;  %v2309_v24 = vmul.f32 0.70710677, %v2295_v8  ;;  %v1093_v14 = vmul.f32 %v1077_v17, %v2156_v43  ;;  %v894_v60 = vmul.f32 %v2225_v42, %v878_v0  ;;  %v664_v43 = vpop.f32.mrf.mxu1 }
 0x31a   :  { %v860_v63 = vmul.f32 %v2287_v5, %v844_v10  ;;  %v1012_v44 = vmul.f32 1.442695, %v988_v61  ;;  %v2314_v59 = vmul.f32 0.70710677, %v2299_v31  ;;  %v1081_v7 = vadd.f32 1.0, %v1065_v52 }
 0x31b   :  { %v991_v49 = vmul.f32 %v975_v35, %v751_v40  ;;  %v786_v56 = vadd.f32 1.0, %v770_v6  ;;  %v1109_v9 = vpack.c.bf16 %v1095_v11, %v2274_v37  ;;  %v1066_v21 = vmul.f32 %v1050_v13, %v2221_v30 }
 0x31c   :  { %v876_v53 = vadd.f32 1.4214138, %v860_v63  ;;  %v1067_v32 = vmul.f32 %v1051_v62, %v2261_v57  ;;  %v2320_v15 = vand.u32 2147483647, %v2309_v24  ;;  %v1080_v17 = vadd.f32 1.0, %v1064_v41 }
 0x31d   :  { %v973_v54 = vsub.f32 0.0, %v2282_v12  ;;  %1580 = vrcp.f32 %v786_v56  ;;  %v910_v45 = vadd.f32 -0.28449672, %v894_v60  ;;  %v2326_v37 = vand.u32 2147483647, %v2314_v59 }
 0x31e   :  { %v892_v19 = vmul.f32 %v2287_v5, %v876_v53  ;;  %1582 = vpow2.f32 %v1012_v44  ;;  %v768_v40 = vmul.f32 0.3275911, %v2320_v15  ;;  %v2328_v30 = vpop.eup %1574  ;;  %v1097_v57 = vmul.f32 %v1081_v7, %v2255_v33 }
 0x31f   :  { %v1018_v0 = vmul.f32 1.442695, %v991_v49  ;;  %v2332_v61 = vadd.f32 %v2024_v1, %v664_v43  ;;  %v1108_v3 = vpack.c.bf16 %v1093_v14, %v2285_v28  ;;  %v1083_v10 = vadd.f32 1.0, %v1067_v32 }
 0x320   :  { %v908_v35 = vadd.f32 -0.28449672, %v892_v19  ;;  %v784_v11 = vadd.f32 1.0, %v768_v40  ;;  %v771_v13 = vmul.f32 0.3275911, %v2326_v37  ;;  %v1096_v62 = vmul.f32 %v1080_v17, %v2201_v34 }
 0x321   :  { %v2335_v52 = vpop.eup %1576  ;;  %v989_v63 = vmul.f32 %v973_v54, %v2282_v12  ;;  %v2342_v33 = vmul.f32 0.70710677, %v2332_v61  ;;  %1453 = vmatprep.mubr.bf16.mxu0 %v1108_v3  ;;  %v1082_v1 = vadd.f32 1.0, %v1066_v21  ;;  %v926_v28 = vmul.f32 %v2225_v42, %v910_v45 }
 0x322   :  { %v831_v41 = vmul.f32 1.0614054, %v2335_v52  ;;  %1584 = vrcp.f32 %v784_v11  ;;  %v787_v6 = vadd.f32 1.0, %v771_v13  ;;  %1454 = vmatmul.mubr.bf16.vlgmr.msra.gmra.mxu0 %v1109_v9  ;;  %v682_v14 = vmul.f32 0.5, %v2060_v23 }
 0x323   :  { %v1110_v44 = vpack.c.bf16 %v1097_v57, %v1096_v62  ;;  %v1099_v34 = vmul.f32 %v1083_v10, %v2236_v18  ;;  %v924_v7 = vmul.f32 %v2287_v5, %v908_v35  ;;  %1586 = vpow2.f32 %v1018_v0 }
 0x324   :  { %v847_v60 = vadd.f32 -1.4531521, %v831_v41  ;;  %v2349_v12 = vand.u32 2147483647, %v2342_v33  ;;  %v1014_v56 = vmul.f32 1.442695, %v989_v63  ;;  %1588 = vrcp.f32 %v787_v6 }
 0x325   :  { %v2351_v53 = vpop.eup %1578  ;;  %1457 = vmatprep.mubr.bf16.mxu0 %v1110_v44  ;;  %v1098_v9 = vmul.f32 %v1082_v1, %v682_v14  ;;  %v942_v21 = vadd.f32 0.2548296, %v926_v28  ;;  %v976_v43 = vsub.f32 0.0, %v2320_v15  ;;  %v940_v17 = vadd.f32 0.2548296, %v924_v7 }
 0x326   :  { %v863_v49 = vmul.f32 %v2335_v52, %v847_v60  ;;  %v829_v23 = vmul.f32 1.0614054, %v2351_v53  ;;  %v769_v32 = vmul.f32 0.3275911, %v2349_v12  ;;  %1590 = vpow2.f32 %v1014_v56 }
 0x327   :  { %v1111_v45 = vpack.c.bf16 %v1099_v34, %v1098_v9  ;;  %v978_v57 = vsub.f32 0.0, %v2302_v46  ;;  %v958_v3 = vmul.f32 %v2225_v42, %v942_v21  ;;  %v979_v35 = vsub.f32 0.0, %v2326_v37 }
 0x328   :  { %v879_v18 = vadd.f32 1.4214138, %v863_v49  ;;  %v845_v19 = vadd.f32 -1.4531521, %v829_v23  ;;  %v785_v54 = vadd.f32 1.0, %v769_v32  ;;  %vm716_vm10 = vcmp.ge.f32.partialorder %v2187_v27, 0.0 }
 0x329   :  { %v956_v41 = vmul.f32 %v2287_v5, %v940_v17  ;;  %v992_v1 = vmul.f32 %v976_v43, %v2320_v15  ;;  %v734_v42 = vsel %vm718_vm9, 1.0, %v2542_v26  ;;  %v994_v14 = vmul.f32 %v978_v57, %v2302_v46 }
 0x32a   :  { %v895_v40 = vmul.f32 %v2335_v52, %v879_v18  ;;  %v2360_v0 = vpop.eup %1580  ;;  %v861_v10 = vmul.f32 %v2351_v53, %v845_v19  ;;  %1592 = vrcp.f32 %v785_v54  ;;  %1458 = vmatmul.mubr.bf16.gmra.mxu0 %v1111_v45  ;;  %v1038_v60 = vmul.f32 %v2328_v30, %v958_v3 }
 0x32b   :  { %v1583_v11 = vpop.eup %1582  ;;  %v834_v62 = vmul.f32 1.0614054, %v2360_v0  ;;  %vm719_vm11 = vcmp.ge.f32.partialorder %v2248_v2, 0.0  ;;  %v995_v5 = vmul.f32 %v979_v35, %v2326_v37  ;;  %v732_v15 = vsel %vm716_vm10, 1.0, %v2542_v26 }
 0x32c   :  { %v911_v13 = vadd.f32 -0.28449672, %v895_v40  ;;  %v877_v63 = vadd.f32 1.4214138, %v861_v10  ;;  %v977_v7 = vsub.f32 0.0, %v2349_v12  ;;  %v1036_v49 = vmul.f32 %v1583_v11, %v956_v41 }
 0x32d   :  { %v850_v6 = vadd.f32 -1.4531521, %v834_v62  ;;  %v1020_v30 = vmul.f32 1.442695, %v992_v1  ;;  %v735_v2 = vsel %vm719_vm11, 1.0, %v2542_v26  ;;  %v1054_v18 = vsub.f32 1.0, %v1038_v60 }
 0x32e   :  { %v927_v28 = vmul.f32 %v2335_v52, %v911_v13  ;;  %v893_v27 = vmul.f32 %v2351_v53, %v877_v63  ;;  %v1024_v23 = vmul.f32 1.442695, %v994_v14  ;;  %v1026_v19 = vmul.f32 1.442695, %v995_v5 }
 0x32f   :  { %v2378_v44 = vpop.eup %1584  ;;  %v866_v50 = vmul.f32 %v2360_v0, %v850_v6  ;;  %v993_v57 = vmul.f32 %v977_v7, %v2349_v12  ;;  %v1052_v3 = vsub.f32 1.0, %v1036_v49  ;;  %1594 = vpow2.f32 %v1020_v30 }
 0x330   :  { %v943_v34 = vadd.f32 0.2548296, %v927_v28  ;;  %v909_v56 = vadd.f32 -0.28449672, %v893_v27  ;;  %v832_v46 = vmul.f32 1.0614054, %v2378_v44  ;;  %v1587_v9 = vpop.eup %1586  ;;  %1596 = vpow2.f32 %v1024_v23 }
 0x331   :  { %v882_v37 = vadd.f32 1.4214138, %v866_v50  ;;  %v2386_v32 = vpop.eup %1588  ;;  %vm717_vm12 = vcmp.ge.f32.partialorder %v2271_v48, 0.0  ;;  %1598 = vpow2.f32 %v1026_v19  ;;  %v1022_v14 = vmul.f32 1.442695, %v993_v57 }
 0x332   :  { %v959_v21 = vmul.f32 %v2335_v52, %v943_v34  ;;  %v925_v43 = vmul.f32 %v2351_v53, %v909_v56  ;;  %v848_v17 = vadd.f32 -1.4531521, %v832_v46  ;;  %v835_v40 = vmul.f32 1.0614054, %v2386_v32 }
 0x333   :  { %v898_v45 = vmul.f32 %v2360_v0, %v882_v37  ;;  %v1591_v62 = vpop.eup %1590  ;;  %v1068_v60 = vmul.f32 %v1052_v3, %v732_v15  ;;  %v1070_v50 = vmul.f32 %v1054_v18, %v734_v42  ;;  %1600 = vpow2.f32 %v1022_v14 }
 0x334   :  { %v1039_v54 = vmul.f32 %v1587_v9, %v959_v21  ;;  %v941_v10 = vadd.f32 0.2548296, %v925_v43  ;;  %v864_v52 = vmul.f32 %v2378_v44, %v848_v17  ;;  %v851_v13 = vadd.f32 -1.4531521, %v835_v40 }
 0x335   :  { %v914_v11 = vadd.f32 -0.28449672, %v898_v45  ;;  %v1086_v23 = vadd.f32 1.0, %v1070_v50  ;;  %v684_v42 = vmul.f32 0.5, %v2174_v22  ;;  %v687_v18 = vmul.f32 0.5, %v2239_v4 }
 0x336   :  { %v1055_v35 = vsub.f32 1.0, %v1039_v54  ;;  %v957_v41 = vmul.f32 %v2351_v53, %v941_v10  ;;  %v880_v63 = vadd.f32 1.4214138, %v864_v52  ;;  %v867_v6 = vmul.f32 %v2386_v32, %v851_v13 }
 0x337   :  { %v2395_v1 = vpop.eup %1592  ;;  %v930_v12 = vmul.f32 %v2360_v0, %v914_v11  ;;  %v733_v53 = vsel %vm717_vm12, 1.0, %v2542_v26  ;;  %v685_v17 = vmul.f32 0.5, %v2251_v55  ;;  %v686_v40 = vmul.f32 0.5, %v2123_v58 }
 0x338   :  { %v1071_v28 = vmul.f32 %v1055_v35, %v735_v2  ;;  %v1037_v27 = vmul.f32 %v1591_v62, %v957_v41  ;;  %v896_v5 = vmul.f32 %v2378_v44, %v880_v63  ;;  %v833_v34 = vmul.f32 1.0614054, %v2395_v1 }
 0x339   :  { %v883_v48 = vadd.f32 1.4214138, %v867_v6  ;;  %v946_v30 = vadd.f32 0.2548296, %v930_v12  ;;  %v1084_v2 = vadd.f32 1.0, %v1068_v60  ;;  %v1102_v13 = vmul.f32 %v1086_v23, %v686_v40 }
 0x33a   :  { %v1053_v7 = vsub.f32 1.0, %v1037_v27  ;;  %v912_v49 = vadd.f32 -0.28449672, %v896_v5  ;;  %v849_v56 = vadd.f32 -1.4531521, %v833_v34  ;;  %v1087_v46 = vadd.f32 1.0, %v1071_v28 }
 0x33b   :  { %v899_v9 = vmul.f32 %v2386_v32, %v883_v48  ;;  %v962_v3 = vmul.f32 %v2360_v0, %v946_v30  ;;  %v1100_v52 = vmul.f32 %v1084_v2, %v684_v42  ;;  %vm723_vm13 = vcmp.ge.f32.partialorder %v2314_v59, 0.0 }
 0x33c   :  { %v1069_v21 = vmul.f32 %v1053_v7, %v733_v53  ;;  %v928_v15 = vmul.f32 %v2378_v44, %v912_v49  ;;  %v865_v37 = vmul.f32 %v2395_v1, %v849_v56  ;;  %v1103_v57 = vmul.f32 %v1087_v46, %v687_v18  ;;  %v1595_v4 = vpop.eup %1594 }
 0x33d   :  { %v915_v43 = vadd.f32 -0.28449672, %v899_v9  ;;  %v1597_v55 = vpop.eup %1596  ;;  %vm720_vm14 = vcmp.ge.f32.partialorder %v2309_v24, 0.0  ;;  %vm722_vm15 = vcmp.ge.f32.partialorder %v2292_v47, 0.0  ;;  %v739_v48 = vsel %vm723_vm13, 1.0, %v2542_v26 }
 0x33e   :  { %v1085_v19 = vadd.f32 1.0, %v1069_v21  ;;  %v944_v54 = vadd.f32 0.2548296, %v928_v15  ;;  %v881_v45 = vadd.f32 1.4214138, %v865_v37  ;;  %v1599_v12 = vpop.eup %1598  ;;  %v1113_v58 = vpack.c.bf16 %v1103_v57, %v1102_v13 }
 0x33f   :  { %v931_v10 = vmul.f32 %v2386_v32, %v915_v43  ;;  %v1042_v6 = vmul.f32 %v1597_v55, %v962_v3  ;;  %v736_v53 = vsel %vm720_vm14, 1.0, %v2542_v26  ;;  %v738_v59 = vsel %vm722_vm15, 1.0, %v2542_v26 }
 0x340   :  { %v1101_v35 = vmul.f32 %v1085_v19, %v685_v17  ;;  %v960_v11 = vmul.f32 %v2378_v44, %v944_v54  ;;  %v897_v22 = vmul.f32 %v2395_v1, %v881_v45  ;;  %v1601_v50 = vpop.eup %1600  ;;  %vm721_vm1 = vcmp.ge.f32.partialorder %v2342_v33, 0.0 }
 0x341   :  { %v947_v62 = vadd.f32 0.2548296, %v931_v10  ;;  %v1058_v5 = vsub.f32 1.0, %v1042_v6  ;;  %v737_v47 = vsel %vm721_vm1, 1.0, %v2542_v26  ;;  %v691_v15 = vmul.f32 0.5, %v2299_v31  ;;  %v2544_v6 = vld [vmem:[#allocation4_spill] sm:$0xff] }
 0x342   :  { %v1040_v41 = vmul.f32 %v1595_v4, %v960_v11  ;;  %v913_v63 = vadd.f32 -0.28449672, %v897_v22  ;;  %v1112_v28 = vpack.c.bf16 %v1101_v35, %v1100_v52  ;;  %v689_v37 = vmul.f32 0.5, %v2332_v61  ;;  %v1352_v26 = vld [vmem:[%s2520_s9] ss:$0 sm:$0xff] }
 0x343   :  { %v963_v0 = vmul.f32 %v2386_v32, %v947_v62  ;;  %v1074_v56 = vmul.f32 %v1058_v5, %v738_v59  ;;  %v690_v42 = vmul.f32 0.5, %v2277_v36 }
 0x344   :  { %v929_v14 = vmul.f32 %v2395_v1, %v913_v63  ;;  %1461 = vmatprep.mubr.bf16.mxu1 %v1112_v28  ;;  %v1056_v60 = vsub.f32 1.0, %v1040_v41 }
 0x345   :  { %v1043_v44 = vmul.f32 %v1599_v12, %v963_v0  ;;  %1462 = vmatmul.mubr.bf16.vlgmr.msra.gmra.mxu1 %v1113_v58  ;;  %v1090_v21 = vadd.f32 1.0, %v1074_v56 }
 0x346   :  { %v945_v27 = vadd.f32 0.2548296, %v929_v14  ;;  %v1072_v49 = vmul.f32 %v1056_v60, %v736_v53 }
 0x347   :  { %v1059_v34 = vsub.f32 1.0, %v1043_v44  ;;  %v1106_v17 = vmul.f32 %v1090_v21, %v690_v42  ;;  %v2545_v44 = vld [vmem:[#allocation3_spill] sm:$0xff] }
 0x348   :  { %v961_v32 = vmul.f32 %v2395_v1, %v945_v27  ;;  %v1088_v9 = vadd.f32 1.0, %v1072_v49  ;;  %v688_v1 = vmul.f32 0.5, %v2295_v8 }
 0x349   :  { %v1075_v7 = vmul.f32 %v1059_v34, %v739_v48  ;;  %v2546_v34 = vld [vmem:[#allocation6_spill] sm:$0xff] }
 0x34a   :  { %v1041_v24 = vmul.f32 %v1601_v50, %v961_v32  ;;  %v1104_v33 = vmul.f32 %v1088_v9, %v688_v1  ;;  %v2547_v32 = vld [vmem:[#allocation5_spill] sm:$0xff] }
 0x34b   :  { %v1091_v30 = vadd.f32 1.0, %v1075_v7 }
 0x34c   :  { %v1057_v46 = vsub.f32 1.0, %v1041_v24  ;;  %v2548_v24 = vld [vmem:[#allocation8_spill] sm:$0xff] }
 0x34d   :  { %v1107_v18 = vmul.f32 %v1091_v30, %v691_v15  ;;  %v2550_v15 = vld [vmem:[#allocation10_spill] sm:$0xff] }
 0x34e   :  { %v1073_v2 = vmul.f32 %v1057_v46, %v737_v47  ;;  %v2549_v47 = vld [vmem:[#allocation7_spill] sm:$0xff] }
 0x34f   :  { %v1115_v54 = vpack.c.bf16 %v1107_v18, %v1106_v17 }
 0x350   :  { %v1089_v23 = vadd.f32 1.0, %v1073_v2 }
 0x352   :  { %v1105_v43 = vmul.f32 %v1089_v23, %v689_v37  ;;  %v2551_v23 = vld [vmem:[#allocation9_spill] sm:$0xff] }
 0x354   :  { %v1114_v19 = vpack.c.bf16 %v1105_v43, %v1104_v33 }
 0x356   :  { %1465 = vmatprep.mubr.bf16.mxu1 %v1114_v19 }
 0x357   :  { %1466 = vmatmul.mubr.bf16.gmra.mxu1 %v1115_v54 }
 0x3e2   :  { %v1455_v31 = vpop.f32.mrf.mxu0 }
 0x3e3   :  { %v1230_v45 = vadd.f32 %v1455_v31, %v1352_v26 }
 0x3e4   :  { %v1221_v8 = vpop.f32.mrf.mxu0 }
 0x3e5   :  { %v1286_v61 = vadd.f32 %v1230_v45, %v1708_v16  ;;  %v1222_v40 = vadd.f32 %v1352_v26, %v1221_v8 }
 0x3e6   :  { %v1456_v57 = vpop.f32.mrf.mxu0 }
 0x3e7   :  { %1302 = vst.msk [vmem:[%s2521_s10 + $0x10] sm:$0xff] %vm115_vm0, %v1286_v61  ;;  %v1284_v36 = vadd.f32 %v1222_v40, %v1714_v20  ;;  %v1233_v3 = vadd.f32 %v1456_v57, %v1352_v26 }
 0x3e8   :  { %v1224_v10 = vpop.f32.mrf.mxu0 }
 0x3e9   :  { %1300 = vst.msk [vmem:[%s2521_s10] sm:$0xff] %vm115_vm0, %v1284_v36  ;;  %v1287_v52 = vadd.f32 %v1233_v3, %v1722_v25  ;;  %v1225_v35 = vadd.f32 %v1352_v26, %v1224_v10 }
 0x3ea   :  { %v1459_v16 = vpop.f32.mrf.mxu0 }
 0x3eb   :  { %1303 = vst.msk [vmem:[%s2521_s10 + $0x18] sm:$0xff] %vm115_vm0, %v1287_v52  ;;  %v1285_v11 = vadd.f32 %v1225_v35, %v1727_v29  ;;  %v1246_v22 = vadd.f32 %v1459_v16, %v1352_v26 }
 0x3ec   :  { %v1237_v20 = vpop.f32.mrf.mxu0 }
 0x3ed   :  { %1301 = vst.msk [vmem:[%s2521_s10 + $0x8] sm:$0xff] %vm115_vm0, %v1285_v11  ;;  %v1290_v4 = vadd.f32 %v1246_v22, %v1743_v39  ;;  %v1238_v13 = vadd.f32 %v1352_v26, %v1237_v20  ;;  %v2543_v39 = vld [vmem:[#allocation2_spill] sm:$0xff] }
 0x3ee   :  { %v1460_v25 = vpop.f32.mrf.mxu0 }
 0x3ef   :  { %1306 = vst.msk [vmem:[%s2521_s10 + $0x30] sm:$0xff] %vm115_vm0, %v1290_v4  ;;  %v1288_v62 = vadd.f32 %v1238_v13, %v1741_v38  ;;  %v1249_v55 = vadd.f32 %v1460_v25, %v1352_v26 }
 0x3f0   :  { %v1240_v29 = vpop.f32.mrf.mxu0 }
 0x3f1   :  { %1304 = vst.msk [vmem:[%s2521_s10 + $0x20] sm:$0xff] %vm115_vm0, %v1288_v62  ;;  %v1291_v41 = vadd.f32 %v1249_v55, %v1762_v51  ;;  %v1241_v63 = vadd.f32 %v1352_v26, %v1240_v29 }
 0x3f3   :  { %1307 = vst.msk [vmem:[%s2521_s10 + $0x38] sm:$0xff] %vm115_vm0, %v1291_v41  ;;  %v1289_v28 = vadd.f32 %v1241_v63, %v2543_v39 }
 0x3f5   :  { %1305 = vst.msk [vmem:[%s2521_s10 + $0x28] sm:$0xff] %vm115_vm0, %v1289_v28 }
 0x405   :  { %v1463_v38 = vpop.f32.mrf.mxu1 }
 0x406   :  { %v1262_v12 = vadd.f32 %v1463_v38, %v1352_v26 }
 0x407   :  { %v1253_v58 = vpop.f32.mrf.mxu1 }
 0x408   :  { %v1294_v0 = vadd.f32 %v1262_v12, %v2544_v6  ;;  %v1254_v14 = vadd.f32 %v1352_v26, %v1253_v58 }
 0x409   :  { %v1464_v51 = vpop.f32.mrf.mxu1 }
 0x40a   :  { %1310 = vst.msk [vmem:[%s2521_s10 + $0x50] sm:$0xff] %vm115_vm0, %v1294_v0  ;;  %v1292_v60 = vadd.f32 %v1254_v14, %v2545_v44  ;;  %v1265_v27 = vadd.f32 %v1464_v51, %v1352_v26 }
 0x40b   :  { %v1256_v5 = vpop.f32.mrf.mxu1 }
 0x40c   :  { %1308 = vst.msk [vmem:[%s2521_s10 + $0x40] sm:$0xff] %vm115_vm0, %v1292_v60  ;;  %v1295_v50 = vadd.f32 %v1265_v27, %v2546_v34  ;;  %v1257_v48 = vadd.f32 %v1352_v26, %v1256_v5 }
 0x40e   :  { %1311 = vst.msk [vmem:[%s2521_s10 + $0x58] sm:$0xff] %vm115_vm0, %v1295_v50  ;;  %v1293_v53 = vadd.f32 %v1257_v48, %v2547_v32 }
 0x410   :  { %1309 = vst.msk [vmem:[%s2521_s10 + $0x48] sm:$0xff] %vm115_vm0, %v1293_v53 }
 0x417   :  { %v1467_v7 = vpop.f32.mrf.mxu1 }
 0x418   :  { %v1278_v59 = vadd.f32 %v1467_v7, %v1352_v26 }
 0x419   :  { %v1269_v49 = vpop.f32.mrf.mxu1 }
 0x41a   :  { %v1298_v56 = vadd.f32 %v1278_v59, %v2548_v24  ;;  %v1270_v46 = vadd.f32 %v1352_v26, %v1269_v49 }
 0x41b   :  { %v1468_v30 = vpop.f32.mrf.mxu1 }
 0x41c   :  { %1314 = vst.msk [vmem:[%s2521_s10 + $0x70] sm:$0xff] %vm115_vm0, %v1298_v56  ;;  %v1296_v9 = vadd.f32 %v1270_v46, %v2549_v47  ;;  %v1281_v2 = vadd.f32 %v1468_v30, %v1352_v26 }
 0x41d   :  { %v1272_v21 = vpop.f32.mrf.mxu1 }
 0x41e   :  { %1312 = vst.msk [vmem:[%s2521_s10 + $0x60] sm:$0xff] %vm115_vm0, %v1296_v9  ;;  %v1299_v1 = vadd.f32 %v1281_v2, %v2550_v15  ;;  %v1273_v37 = vadd.f32 %v1352_v26, %v1272_v21 }
 0x420   :  { %1315 = vst.msk [vmem:[%s2521_s10 + $0x78] sm:$0xff] %vm115_vm0, %v1299_v1  ;;  %v1297_v42 = vadd.f32 %v1273_v37, %v2551_v23 }
 0x422   :  { %1313 = vst.msk [vmem:[%s2521_s10 + $0x68] sm:$0xff] %vm115_vm0, %v1297_v42 }

</bundles_post_ra>
